<compile_context>
chip_gen: v5e
topology: v5e:2x2
jax: 0.10.0
libtpu: 0.0.40
codegen_flags: <defaults>
</compile_context>

<pallas_src>
import functools

import jax
import jax.numpy as jnp
from jax.experimental import pallas as pl
from jax.experimental.pallas import tpu as pltpu


# ----------------------------------------------------------------------------
# Config (mirrors the fields GemmaModel / GemmaDecoderLayer need)
# ----------------------------------------------------------------------------
class GemmaConfig:
    def __init__(
        self,
        vocab_size=64,
        hidden_size=128,
        intermediate_size=512,
        num_hidden_layers=2,
        num_attention_heads=2,
        num_key_value_heads=1,
        head_dim=128,
        rms_norm_eps=1e-6,
        rope_theta=10000.0,
        pad_token_id=0,
    ):
        self.vocab_size = vocab_size
        self.hidden_size = hidden_size
        self.intermediate_size = intermediate_size
        self.num_hidden_layers = num_hidden_layers
        self.num_attention_heads = num_attention_heads
        self.num_key_value_heads = num_key_value_heads
        self.head_dim = head_dim
        self.rms_norm_eps = rms_norm_eps
        self.rope_theta = rope_theta
        self.pad_token_id = pad_token_id


# ----------------------------------------------------------------------------
# Fused decoder-layer kernel
# ----------------------------------------------------------------------------
def _decoder_layer_kernel(
    x_ref, cos_ref, sinr_ref,
    ln1_ref, wq_ref, wkv_ref, wo_ref,
    ln2_ref, wgu_ref, wd_ref, wnorm_ref,
    o_ref,
    k_scr, v_scr,
    *, num_heads, num_kv_heads, head_dim, inter, seq_tile, eps,
    embed_scale, apply_final_norm,
):
    dh = head_dim
    half = dh // 2
    group = num_heads // num_kv_heads
    kw = num_kv_heads * dh
    TQ = seq_tile
    S = x_ref.shape[1]
    H = x_ref.shape[2]

    q_idx = pl.program_id(1)
    q_start = pl.multiple_of(q_idx * TQ, TQ)

    def rms(v, w_ref):
        var = jnp.mean(v * v, axis=-1, keepdims=True)
        return (v * jax.lax.rsqrt(var + eps)) * (1.0 + w_ref[...].astype(jnp.float32))

    def rope(t, cos, sinr):
        # rotate_half via XLU lane rotation: roll(t, dh/2) == [t2, t1]; `sinr`
        # already carries the [-sin, +sin] sign so t*cos + roll(t)*sinr == HF RoPE.
        return t * cos + pltpu.roll(t, half, axis=1) * sinr

    # ---- K/V projection + RoPE: computed once per batch (q-tile 0), cached ---
    @pl.when(q_idx == 0)
    def _():
        x_full = x_ref[0].astype(jnp.float32)                      # (S, H)
        if embed_scale is not None:   # fold inputs_embeds * sqrt(hidden) into layer 0
            x_full = x_full * embed_scale
        hf = rms(x_full, ln1_ref).astype(jnp.bfloat16)             # (S, H)
        kv2d = jnp.dot(hf, wkv_ref[...], preferred_element_type=jnp.float32)  # (S, 2*kw)
        cos_k = cos_ref[...]
        sinr_k = sinr_ref[...]
        for g in range(num_kv_heads):
            k_scr[:, g * dh:(g + 1) * dh] = rope(
                kv2d[:, g * dh:(g + 1) * dh], cos_k, sinr_k).astype(jnp.bfloat16)
        v_scr[...] = kv2d[:, kw:].astype(jnp.bfloat16)

    # ---- Q projection + RoPE for the current query tile ----------------------
    x_q = x_ref[0, pl.ds(q_start, TQ), :].astype(jnp.float32)      # (TQ, H)
    if embed_scale is not None:
        x_q = x_q * embed_scale
    hq = rms(x_q, ln1_ref).astype(jnp.bfloat16)                    # (TQ, H)

    q2d = jnp.dot(hq, wq_ref[...], preferred_element_type=jnp.float32)  # (TQ, nH*dh)
    cos_q = cos_ref[pl.ds(q_start, TQ), :]
    sinr_q = sinr_ref[pl.ds(q_start, TQ), :]

    q_heads = [rope(q2d[:, h * dh:(h + 1) * dh], cos_q, sinr_q)
               for h in range(num_heads)]
    qh = jnp.stack(q_heads, axis=0).astype(jnp.bfloat16)           # (nH, TQ, dh)

    k_all = k_scr[...]                                             # (S, nKV*dh) bf16
    v_all = v_scr[...]                                             # (S, nKV*dh) bf16
    kh = jnp.stack([k_all[:, (h // group) * dh:(h // group + 1) * dh]
                    for h in range(num_heads)], axis=0)            # (nH, S, dh)
    vh = jnp.stack([v_all[:, (h // group) * dh:(h // group + 1) * dh]
                    for h in range(num_heads)], axis=0)            # (nH, S, dh)

    scores = jnp.einsum("hqd,hkd->hqk", qh, kh,
                        preferred_element_type=jnp.float32) * (dh ** -0.5)  # (nH, TQ, S)

    # In-kernel causal mask (no (S,S) DMA).
    row = q_start + jax.lax.broadcasted_iota(jnp.int32, (TQ, S), 0)
    col = jax.lax.broadcasted_iota(jnp.int32, (TQ, S), 1)
    scores = jnp.where((col <= row)[None, :, :], scores, jnp.float32(-1e30))

    scores = scores - jnp.max(scores, axis=-1, keepdims=True)
    p = jnp.exp(scores)
    p = p * pl.reciprocal(jnp.sum(p, axis=-1, keepdims=True), approx=True)

    attn = jnp.einsum("hqk,hkd->hqd", p.astype(jnp.bfloat16), vh,
                      preferred_element_type=jnp.float32)          # (nH, TQ, dh)

    # Output projection as a per-head sum -> no lane-axis concatenate of heads.
    attn_bf = attn.astype(jnp.bfloat16)
    attn_out = jnp.zeros((TQ, H), jnp.float32)
    for h in range(num_heads):
        attn_out = attn_out + jnp.dot(attn_bf[h], wo_ref[h * dh:(h + 1) * dh, :],
                                      preferred_element_type=jnp.float32)

    h1 = x_q + attn_out                       # first residual

    # ---- MLP -----------------------------------------------------------------
    h2 = rms(h1, ln2_ref).astype(jnp.bfloat16)
    gu = jnp.dot(h2, wgu_ref[...], preferred_element_type=jnp.float32)  # (TQ, 2I)
    gate = gu[:, :inter]
    up = gu[:, inter:]
    act = (jax.nn.gelu(gate, approximate=True) * up).astype(jnp.bfloat16)
    mlp_out = jnp.dot(act, wd_ref[...], preferred_element_type=jnp.float32)

    out = h1 + mlp_out                        # second residual
    if apply_final_norm:                      # fold model-final RMSNorm into last layer
        out = rms(out, wnorm_ref)
    o_ref[0] = out.astype(o_ref.dtype)


# ----------------------------------------------------------------------------
# Pallas wrapper
# ----------------------------------------------------------------------------
def decoder_layer(x, layer, cos, sinr, final_norm_w, cfg, *, seq_tile,
                  embed_scale=None, apply_final_norm=False):
    B, S, H = x.shape
    nH, nKV, dh, I = (cfg.num_attention_heads, cfg.num_key_value_heads,
                      cfg.head_dim, cfg.intermediate_size)
    TQ = seq_tile
    assert S % TQ == 0 and nH % nKV == 0

    # bf16 weights halve DMA bytes / VMEM residency; fused K|V and gate|up give
    # lane-dense (>=128-wide) matmul outputs and fewer MXU calls.
    wq = layer["q_proj"].astype(jnp.bfloat16)
    wkv = jnp.concatenate([layer["k_proj"], layer["v_proj"]], axis=1).astype(jnp.bfloat16)
    wo = layer["o_proj"].astype(jnp.bfloat16)
    wgu = jnp.concatenate([layer["gate_proj"], layer["up_proj"]], axis=1).astype(jnp.bfloat16)
    wd = layer["down_proj"].astype(jnp.bfloat16)

    kernel = functools.partial(
        _decoder_layer_kernel,
        num_heads=nH, num_kv_heads=nKV, head_dim=dh, inter=I, seq_tile=TQ,
        eps=cfg.rms_norm_eps, embed_scale=embed_scale,
        apply_final_norm=apply_final_norm)

    return pl.pallas_call(
        kernel,
        out_shape=jax.ShapeDtypeStruct((B, S, H), x.dtype),
        grid=(B, S // TQ),
        in_specs=[
            pl.BlockSpec((1, S, H), lambda b, q: (b, 0, 0)),        # hidden states (full seq)
            pl.BlockSpec((S, dh), lambda b, q: (0, 0)),             # rope cos
            pl.BlockSpec((S, dh), lambda b, q: (0, 0)),             # rope sin (sign-folded)
            pl.BlockSpec((1, H), lambda b, q: (0, 0)),              # input_layernorm
            pl.BlockSpec((H, nH * dh), lambda b, q: (0, 0)),        # q_proj
            pl.BlockSpec((H, 2 * nKV * dh), lambda b, q: (0, 0)),   # fused k|v proj
            pl.BlockSpec((nH * dh, H), lambda b, q: (0, 0)),        # o_proj
            pl.BlockSpec((1, H), lambda b, q: (0, 0)),              # post_attention_layernorm
            pl.BlockSpec((H, 2 * I), lambda b, q: (0, 0)),          # fused gate|up proj
            pl.BlockSpec((I, H), lambda b, q: (0, 0)),              # down_proj
            pl.BlockSpec((1, H), lambda b, q: (0, 0)),              # model-final norm weight
        ],
        out_specs=pl.BlockSpec((1, TQ, H), lambda b, q: (b, q, 0)),
        scratch_shapes=[
            pltpu.VMEM((S, nKV * dh), jnp.bfloat16),   # rope'd K, cached across q tiles
            pltpu.VMEM((S, nKV * dh), jnp.bfloat16),   # V, cached across q tiles
        ],
        compiler_params=pltpu.CompilerParams(
            # batch axis can be sharded across TCs; the seq-tile axis carries the
            # K/V scratch cache, so it must stay sequential ("arbitrary").
            dimension_semantics=("parallel", "arbitrary"),
            vmem_limit_bytes=48 * 1024 * 1024),
    )(x, cos, sinr,
      layer["input_layernorm"].reshape(1, H).astype(jnp.float32),
      wq, wkv, wo,
      layer["post_attention_layernorm"].reshape(1, H).astype(jnp.float32),
      wgu, wd,
      final_norm_w.reshape(1, H).astype(jnp.float32))


# ----------------------------------------------------------------------------
# Parameter init (deterministic), RoPE tables and full model forward
# ----------------------------------------------------------------------------
def init_params(key, cfg):
    H, I = cfg.hidden_size, cfg.intermediate_size
    nH, nKV, dh = cfg.num_attention_heads, cfg.num_key_value_heads, cfg.head_dim
    params = {}
    key, k_emb = jax.random.split(key)
    # embed_tokens exists in the module but forward() consumes inputs_embeds directly.
    params["embed_tokens"] = 0.02 * jax.random.normal(k_emb, (cfg.vocab_size, H), jnp.float32)
    layers = []
    for _ in range(cfg.num_hidden_layers):
        key, *ks = jax.random.split(key, 10)
        layers.append({
            "input_layernorm": 0.1 * jax.random.normal(ks[0], (H,), jnp.float32),
            "post_attention_layernorm": 0.1 * jax.random.normal(ks[1], (H,), jnp.float32),
            "q_proj": 0.02 * jax.random.normal(ks[2], (H, nH * dh), jnp.float32),
            "k_proj": 0.02 * jax.random.normal(ks[3], (H, nKV * dh), jnp.float32),
            "v_proj": 0.02 * jax.random.normal(ks[4], (H, nKV * dh), jnp.float32),
            "o_proj": 0.02 * jax.random.normal(ks[5], (nH * dh, H), jnp.float32),
            "gate_proj": 0.02 * jax.random.normal(ks[6], (H, I), jnp.float32),
            "up_proj": 0.02 * jax.random.normal(ks[7], (H, I), jnp.float32),
            "down_proj": 0.02 * jax.random.normal(ks[8], (I, H), jnp.float32),
        })
    params["layers"] = layers
    key, k_norm = jax.random.split(key)
    params["norm"] = 0.1 * jax.random.normal(k_norm, (H,), jnp.float32)
    return params


def rope_tables(positions, head_dim, theta):
    # HF-style: freqs duplicated -> cos/sin of shape (S, head_dim)
    inv_freq = 1.0 / (theta ** (jnp.arange(0, head_dim, 2, dtype=jnp.float32) / head_dim))
    freqs = positions[:, None].astype(jnp.float32) * inv_freq[None, :]
    emb = jnp.concatenate([freqs, freqs], axis=-1)
    return jnp.cos(emb), jnp.sin(emb)


def gemma_model_forward(params, inputs_embeds, position_ids, cfg, *, seq_tile):
    n_layers = len(params["layers"])
    assert n_layers >= 1, "scale/final-norm are folded into the first/last layer kernels"
    cos, sin = rope_tables(position_ids, cfg.head_dim, cfg.rope_theta)
    half = cfg.head_dim // 2
    # Sign-folded sin so in-kernel rotate_half is a single pltpu.roll + multiply.
    sinr = jnp.concatenate([-sin[:, :half], sin[:, half:]], axis=-1)
    normalizer = float(cfg.hidden_size) ** 0.5

    h = inputs_embeds
    for li, layer in enumerate(params["layers"]):
        h = decoder_layer(
            h, layer, cos, sinr, params["norm"], cfg, seq_tile=seq_tile,
            embed_scale=normalizer if li == 0 else None,
            apply_final_norm=(li == n_layers - 1))
    return h


# ----------------------------------------------------------------------------
# Pure-JAX reference (mirrors the PyTorch module) for a numeric sanity check
# ----------------------------------------------------------------------------
def _reference_forward(params, inputs_embeds, position_ids, cfg):
    H, dh = cfg.hidden_size, cfg.head_dim
    nH, nKV = cfg.num_attention_heads, cfg.num_key_value_heads
    group = nH // nKV
    eps = cfg.rms_norm_eps
    cos, sin = rope_tables(position_ids, dh, cfg.rope_theta)

    def rms(v, w):
        var = jnp.mean(v * v, axis=-1, keepdims=True)
        return v * jax.lax.rsqrt(var + eps) * (1.0 + w)

    def rope(t):
        t1, t2 = t[..., :dh // 2], t[..., dh // 2:]
        return t * cos + jnp.concatenate([-t2, t1], axis=-1) * sin

    B, S, _ = inputs_embeds.shape
    mask = jnp.where(jnp.arange(S)[None, :] <= jnp.arange(S)[:, None], 0.0, -1e30)
    h = inputs_embeds * (float(H) ** 0.5)
    for layer in params["layers"]:
        x = h
        hn = rms(x, layer["input_layernorm"])
        q, k, v = hn @ layer["q_proj"], hn @ layer["k_proj"], hn @ layer["v_proj"]
        heads = []
        for hi in range(nH):
            kvi = hi // group
            qh = rope(q[..., hi * dh:(hi + 1) * dh])
            kh = rope(k[..., kvi * dh:(kvi + 1) * dh])
            vh = v[..., kvi * dh:(kvi + 1) * dh]
            sc = jnp.einsum("bqd,bkd->bqk", qh, kh) * (dh ** -0.5) + mask
            heads.append(jnp.einsum("bqk,bkd->bqd", jax.nn.softmax(sc, axis=-1), vh))
        h1 = x + jnp.concatenate(heads, axis=-1) @ layer["o_proj"]
        hn2 = rms(h1, layer["post_attention_layernorm"])
        act = jax.nn.gelu(hn2 @ layer["gate_proj"], approximate=True) * (hn2 @ layer["up_proj"])
        h = h1 + act @ layer["down_proj"]
    return rms(h, params["norm"])


# ----------------------------------------------------------------------------
# Main
# ----------------------------------------------------------------------------
if __name__ == "__main__":
    cfg = GemmaConfig(
        vocab_size=64,
        hidden_size=128,
        intermediate_size=512,
        num_hidden_layers=2,
        num_attention_heads=2,
        num_key_value_heads=1,
        head_dim=128,
        rms_norm_eps=1e-6,
        rope_theta=10000.0,
    )
    B, S, TQ = 2, 16, 8

    key = jax.random.PRNGKey(0)
    key, k_in = jax.random.split(key)
    params = init_params(key, cfg)

    inputs_embeds = jax.random.normal(k_in, (B, S, cfg.hidden_size), jnp.float32)
    position_ids = jnp.arange(S, dtype=jnp.int32)

    fwd = jax.jit(functools.partial(gemma_model_forward, cfg=cfg, seq_tile=TQ))
    out = fwd(params, inputs_embeds, position_ids)
    out = jax.block_until_ready(out)
    assert out.shape == (B, S, cfg.hidden_size)

    ref = _reference_forward(params, inputs_embeds, position_ids, cfg)
    max_err = float(jnp.max(jnp.abs(out - ref)))
    assert max_err < 5e-2, f"kernel/reference mismatch: max abs err {max_err}"
    print("KERNEL_OK")
</pallas_src>

<mosaic_0001>
module attributes {stable_mosaic.version = 11 : i64} {
  func.func @_decoder_layer_kernel(%arg0: i32, %arg1: i32, %arg2: memref<1x16x128xf32, #tpu.memory_space<vmem>>, %arg3: memref<16x128xf32, #tpu.memory_space<vmem>>, %arg4: memref<16x128xf32, #tpu.memory_space<vmem>>, %arg5: memref<1x128xf32, #tpu.memory_space<vmem>>, %arg6: memref<128x256xbf16, #tpu.memory_space<vmem>>, %arg7: memref<128x256xbf16, #tpu.memory_space<vmem>>, %arg8: memref<256x128xbf16, #tpu.memory_space<vmem>>, %arg9: memref<1x128xf32, #tpu.memory_space<vmem>>, %arg10: memref<128x1024xbf16, #tpu.memory_space<vmem>>, %arg11: memref<512x128xbf16, #tpu.memory_space<vmem>>, %arg12: memref<1x128xf32, #tpu.memory_space<vmem>>, %arg13: memref<1x8x128xf32, #tpu.memory_space<vmem>>, %arg14: memref<16x128xbf16, #tpu.memory_space<vmem>>, %arg15: memref<16x128xbf16, #tpu.memory_space<vmem>>) attributes {dimension_semantics = [#tpu.dimension_semantics<parallel>, #tpu.dimension_semantics<arbitrary>], iteration_bounds = array<i64: 2, 2>, scalar_prefetch = 0 : i64, scratch_operands = 2 : i64, tpu.core_type = #tpu.core_type<tc>, window_params = [{transform_indices = @transform_0, window_bounds = array<i64: 1, 16, 128>}, {pipeline_mode = #tpu.pipeline_mode<synchronous>, transform_indices = @transform_1, window_bounds = array<i64: 16, 128>}, {pipeline_mode = #tpu.pipeline_mode<synchronous>, transform_indices = @transform_2, window_bounds = array<i64: 16, 128>}, {pipeline_mode = #tpu.pipeline_mode<synchronous>, transform_indices = @transform_3, window_bounds = array<i64: 1, 128>}, {pipeline_mode = #tpu.pipeline_mode<synchronous>, transform_indices = @transform_4, window_bounds = array<i64: 128, 256>}, {pipeline_mode = #tpu.pipeline_mode<synchronous>, transform_indices = @transform_5, window_bounds = array<i64: 128, 256>}, {pipeline_mode = #tpu.pipeline_mode<synchronous>, transform_indices = @transform_6, window_bounds = array<i64: 256, 128>}, {pipeline_mode = #tpu.pipeline_mode<synchronous>, transform_indices = @transform_7, window_bounds = array<i64: 1, 128>}, {pipeline_mode = #tpu.pipeline_mode<synchronous>, transform_indices = @transform_8, window_bounds = array<i64: 128, 1024>}, {pipeline_mode = #tpu.pipeline_mode<synchronous>, transform_indices = @transform_9, window_bounds = array<i64: 512, 128>}, {pipeline_mode = #tpu.pipeline_mode<synchronous>, transform_indices = @transform_10, window_bounds = array<i64: 1, 128>}, {transform_indices = @transform_11, window_bounds = array<i64: 1, 8, 128>}]} {
    %c8_i32 = arith.constant 8 : i32
    %0 = arith.muli %arg1, %c8_i32 : i32
    %1 = tpu.assume_multiple %0, 8 : i32
    %c0_i32 = arith.constant 0 : i32
    %2 = arith.cmpi eq, %arg1, %c0_i32 : i32
    %3 = arith.extui %2 : i1 to i32
    %c0_i32_0 = arith.constant 0 : i32
    %4 = arith.cmpi ne, %3, %c0_i32_0 : i32
    scf.if %4 {
      %c0_49 = arith.constant 0 : index
      %c0_50 = arith.constant 0 : index
      %c0_51 = arith.constant 0 : index
      %133 = vector.load %arg2[%c0_49, %c0_50, %c0_51] : memref<1x16x128xf32, #tpu.memory_space<vmem>>, vector<1x16x128xf32>
      %134 = vector.shape_cast %133 : vector<1x16x128xf32> to vector<16x128xf32>
      %cst_52 = arith.constant 11.3137083 : f32
      %135 = vector.broadcast %cst_52 : f32 to vector<16x128xf32>
      %136 = arith.mulf %134, %135 : vector<16x128xf32>
      %137 = arith.mulf %136, %136 : vector<16x128xf32>
      %cst_53 = arith.constant dense<0.000000e+00> : vector<16xf32>
      %138 = vector.multi_reduction <add>, %137, %cst_53 [1] : vector<16x128xf32> to vector<16xf32>
      %139 = vector.shape_cast %138 : vector<16xf32> to vector<16x1xf32>
      %cst_54 = arith.constant 1.280000e+02 : f32
      %140 = vector.broadcast %cst_54 : f32 to vector<16x1xf32>
      %141 = arith.divf %139, %140 : vector<16x1xf32>
      %cst_55 = arith.constant 9.99999997E-7 : f32
      %142 = vector.broadcast %cst_55 : f32 to vector<16x1xf32>
      %143 = arith.addf %141, %142 : vector<16x1xf32>
      %144 = math.rsqrt %143 : vector<16x1xf32>
      %145 = vector.broadcast %144 : vector<16x1xf32> to vector<16x128xf32>
      %146 = arith.mulf %136, %145 : vector<16x128xf32>
      %c0_56 = arith.constant 0 : index
      %c0_57 = arith.constant 0 : index
      %147 = vector.load %arg5[%c0_56, %c0_57] : memref<1x128xf32, #tpu.memory_space<vmem>>, vector<1x128xf32>
      %cst_58 = arith.constant 1.000000e+00 : f32
      %148 = vector.broadcast %cst_58 : f32 to vector<1x128xf32>
      %149 = arith.addf %148, %147 : vector<1x128xf32>
      %150 = vector.broadcast %149 : vector<1x128xf32> to vector<16x128xf32>
      %151 = arith.mulf %146, %150 : vector<16x128xf32>
      %152 = arith.truncf %151 : vector<16x128xf32> to vector<16x128xbf16>
      %c0_59 = arith.constant 0 : index
      %c0_60 = arith.constant 0 : index
      %153 = vector.load %arg7[%c0_59, %c0_60] : memref<128x256xbf16, #tpu.memory_space<vmem>>, vector<128x256xbf16>
      %cst_61 = arith.constant dense<0.000000e+00> : vector<16x256xf32>
      %154 = tpu.matmul %152, %153, %cst_61 {dimension_numbers = #tpu.dot_dimension_numbers<[1], [0], [0], [1], [0, 0, 1, 1], [], []>} : vector<16x128xbf16>, vector<128x256xbf16>, vector<16x256xf32> -> vector<16x256xf32>
      %c0_62 = arith.constant 0 : index
      %c0_63 = arith.constant 0 : index
      %155 = vector.load %arg3[%c0_62, %c0_63] : memref<16x128xf32, #tpu.memory_space<vmem>>, vector<16x128xf32>
      %c0_64 = arith.constant 0 : index
      %c0_65 = arith.constant 0 : index
      %156 = vector.load %arg4[%c0_64, %c0_65] : memref<16x128xf32, #tpu.memory_space<vmem>>, vector<16x128xf32>
      %157 = vector.extract_strided_slice %154 {offsets = [0, 0], sizes = [16, 128], strides = [1, 1]} : vector<16x256xf32> to vector<16x128xf32>
      %158 = arith.mulf %157, %155 : vector<16x128xf32>
      %c64_i32_66 = arith.constant 64 : i32
      %159 = tpu.dynamic_rotate %157 by %c64_i32_66 dim 1 : vector<16x128xf32>, i32 -> vector<16x128xf32>
      %160 = arith.mulf %159, %156 : vector<16x128xf32>
      %161 = arith.addf %158, %160 : vector<16x128xf32>
      %162 = arith.truncf %161 : vector<16x128xf32> to vector<16x128xbf16>
      %c0_67 = arith.constant 0 : index
      %c0_68 = arith.constant 0 : index
      %163 = vector.load %arg14[%c0_67, %c0_68] : memref<16x128xbf16, #tpu.memory_space<vmem>>, vector<16x128xbf16>
      tpu.vector_store %arg14[%c0_67, %c0_68], %162 {strides = array<i32>} : memref<16x128xbf16, #tpu.memory_space<vmem>>, vector<16x128xbf16>,
      %164 = vector.extract_strided_slice %154 {offsets = [0, 128], sizes = [16, 128], strides = [1, 1]} : vector<16x256xf32> to vector<16x128xf32>
      %165 = arith.truncf %164 : vector<16x128xf32> to vector<16x128xbf16>
      %c0_69 = arith.constant 0 : index
      %c0_70 = arith.constant 0 : index
      %166 = vector.load %arg15[%c0_69, %c0_70] : memref<16x128xbf16, #tpu.memory_space<vmem>>, vector<16x128xbf16>
      tpu.vector_store %arg15[%c0_69, %c0_70], %165 {strides = array<i32>} : memref<16x128xbf16, #tpu.memory_space<vmem>>, vector<16x128xbf16>,
    } else {
    }
    %c0 = arith.constant 0 : index
    %5 = arith.index_cast %1 : i32 to index
    %c0_1 = arith.constant 0 : index
    %6 = vector.load %arg2[%c0, %5, %c0_1] : memref<1x16x128xf32, #tpu.memory_space<vmem>>, vector<1x8x128xf32>
    %7 = vector.shape_cast %6 : vector<1x8x128xf32> to vector<8x128xf32>
    %cst = arith.constant 11.3137083 : f32
    %8 = vector.broadcast %cst : f32 to vector<8x128xf32>
    %9 = arith.mulf %7, %8 : vector<8x128xf32>
    %10 = arith.mulf %9, %9 : vector<8x128xf32>
    %cst_2 = arith.constant dense<0.000000e+00> : vector<8xf32>
    %11 = vector.multi_reduction <add>, %10, %cst_2 [1] : vector<8x128xf32> to vector<8xf32>
    %12 = vector.shape_cast %11 : vector<8xf32> to vector<8x1xf32>
    %cst_3 = arith.constant 1.280000e+02 : f32
    %13 = vector.broadcast %cst_3 : f32 to vector<8x1xf32>
    %14 = arith.divf %12, %13 : vector<8x1xf32>
    %cst_4 = arith.constant 9.99999997E-7 : f32
    %15 = vector.broadcast %cst_4 : f32 to vector<8x1xf32>
    %16 = arith.addf %14, %15 : vector<8x1xf32>
    %17 = math.rsqrt %16 : vector<8x1xf32>
    %18 = vector.broadcast %17 : vector<8x1xf32> to vector<8x128xf32>
    %19 = arith.mulf %9, %18 : vector<8x128xf32>
    %c0_5 = arith.constant 0 : index
    %c0_6 = arith.constant 0 : index
    %20 = vector.load %arg5[%c0_5, %c0_6] : memref<1x128xf32, #tpu.memory_space<vmem>>, vector<1x128xf32>
    %cst_7 = arith.constant 1.000000e+00 : f32
    %21 = vector.broadcast %cst_7 : f32 to vector<1x128xf32>
    %22 = arith.addf %21, %20 : vector<1x128xf32>
    %23 = vector.broadcast %22 : vector<1x128xf32> to vector<8x128xf32>
    %24 = arith.mulf %19, %23 : vector<8x128xf32>
    %25 = arith.truncf %24 : vector<8x128xf32> to vector<8x128xbf16>
    %c0_8 = arith.constant 0 : index
    %c0_9 = arith.constant 0 : index
    %26 = vector.load %arg6[%c0_8, %c0_9] : memref<128x256xbf16, #tpu.memory_space<vmem>>, vector<128x256xbf16>
    %cst_10 = arith.constant dense<0.000000e+00> : vector<8x256xf32>
    %27 = tpu.matmul %25, %26, %cst_10 {dimension_numbers = #tpu.dot_dimension_numbers<[1], [0], [0], [1], [0, 0, 1, 1], [], []>} : vector<8x128xbf16>, vector<128x256xbf16>, vector<8x256xf32> -> vector<8x256xf32>
    %28 = arith.index_cast %1 : i32 to index
    %c0_11 = arith.constant 0 : index
    %29 = vector.load %arg3[%28, %c0_11] : memref<16x128xf32, #tpu.memory_space<vmem>>, vector<8x128xf32>
    %30 = arith.index_cast %1 : i32 to index
    %c0_12 = arith.constant 0 : index
    %31 = vector.load %arg4[%30, %c0_12] : memref<16x128xf32, #tpu.memory_space<vmem>>, vector<8x128xf32>
    %32 = vector.extract_strided_slice %27 {offsets = [0, 0], sizes = [8, 128], strides = [1, 1]} : vector<8x256xf32> to vector<8x128xf32>
    %33 = arith.mulf %32, %29 : vector<8x128xf32>
    %c64_i32 = arith.constant 64 : i32
    %34 = tpu.dynamic_rotate %32 by %c64_i32 dim 1 : vector<8x128xf32>, i32 -> vector<8x128xf32>
    %35 = arith.mulf %34, %31 : vector<8x128xf32>
    %36 = arith.addf %33, %35 : vector<8x128xf32>
    %37 = vector.extract_strided_slice %27 {offsets = [0, 128], sizes = [8, 128], strides = [1, 1]} : vector<8x256xf32> to vector<8x128xf32>
    %38 = arith.mulf %37, %29 : vector<8x128xf32>
    %c64_i32_13 = arith.constant 64 : i32
    %39 = tpu.dynamic_rotate %37 by %c64_i32_13 dim 1 : vector<8x128xf32>, i32 -> vector<8x128xf32>
    %40 = arith.mulf %39, %31 : vector<8x128xf32>
    %41 = arith.addf %38, %40 : vector<8x128xf32>
    %42 = vector.shape_cast %36 : vector<8x128xf32> to vector<1x8x128xf32>
    %43 = vector.shape_cast %41 : vector<8x128xf32> to vector<1x8x128xf32>
    %44 = tpu.concatenate %42, %43 in 0 : vector<1x8x128xf32>, vector<1x8x128xf32> -> vector<2x8x128xf32>
    %45 = arith.truncf %44 : vector<2x8x128xf32> to vector<2x8x128xbf16>
    %c0_14 = arith.constant 0 : index
    %c0_15 = arith.constant 0 : index
    %46 = vector.load %arg14[%c0_14, %c0_15] : memref<16x128xbf16, #tpu.memory_space<vmem>>, vector<16x128xbf16>
    %c0_16 = arith.constant 0 : index
    %c0_17 = arith.constant 0 : index
    %47 = vector.load %arg15[%c0_16, %c0_17] : memref<16x128xbf16, #tpu.memory_space<vmem>>, vector<16x128xbf16>
    %48 = vector.shape_cast %46 : vector<16x128xbf16> to vector<1x16x128xbf16>
    %49 = vector.shape_cast %46 : vector<16x128xbf16> to vector<1x16x128xbf16>
    %50 = tpu.concatenate %48, %49 in 0 : vector<1x16x128xbf16>, vector<1x16x128xbf16> -> vector<2x16x128xbf16>
    %51 = vector.shape_cast %47 : vector<16x128xbf16> to vector<1x16x128xbf16>
    %52 = vector.shape_cast %47 : vector<16x128xbf16> to vector<1x16x128xbf16>
    %53 = tpu.concatenate %51, %52 in 0 : vector<1x16x128xbf16>, vector<1x16x128xbf16> -> vector<2x16x128xbf16>
    "tpu.trace_start"() <{level = 10 : i32, message = "hqd,hkd->hqk"}> : () -> ()
    %cst_18 = arith.constant dense<0.000000e+00> : vector<2x8x16xf32>
    %54 = tpu.matmul %45, %50, %cst_18 {dimension_numbers = #tpu.dot_dimension_numbers<[2], [2], [1], [1], [0, 0, 0, 1, 1, 1], [0], [0]>} : vector<2x8x128xbf16>, vector<2x16x128xbf16>, vector<2x8x16xf32> -> vector<2x8x16xf32>
    "tpu.trace_stop"() : () -> ()
    %cst_19 = arith.constant 0.0883883461 : f32
    %55 = vector.broadcast %cst_19 : f32 to vector<2x8x16xf32>
    %56 = arith.mulf %54, %55 : vector<2x8x16xf32>
    %57 = tpu.iota {dimensions = array<i32: 0>} : vector<8x16xi32>
    %58 = vector.broadcast %1 : i32 to vector<8x16xi32>
    %59 = arith.addi %58, %57 : vector<8x16xi32>
    %60 = tpu.iota {dimensions = array<i32: 1>} : vector<8x16xi32>
    %61 = arith.cmpi sle, %60, %59 : vector<8x16xi32>
    %62 = vector.shape_cast %61 : vector<8x16xi1> to vector<1x8x16xi1>
    %cst_20 = arith.constant -1.000000e+30 : f32
    %63 = vector.shape_cast %62 : vector<1x8x16xi1> to vector<1x8x16xi1>
    %64 = vector.broadcast %63 : vector<1x8x16xi1> to vector<2x8x16xi1>
    %65 = vector.broadcast %cst_20 : f32 to vector<2x8x16xf32>
    %66 = arith.select %64, %56, %65 : vector<2x8x16xi1>, vector<2x8x16xf32>
    %cst_21 = arith.constant dense<0xFF800000> : vector<2x8xf32>
    %67 = vector.multi_reduction <maximumf>, %66, %cst_21 [2] : vector<2x8x16xf32> to vector<2x8xf32>
    %68 = vector.shape_cast %67 : vector<2x8xf32> to vector<2x8x1xf32>
    %69 = vector.broadcast %68 : vector<2x8x1xf32> to vector<2x8x16xf32>
    %70 = arith.subf %66, %69 : vector<2x8x16xf32>
    %71 = math.exp %70 : vector<2x8x16xf32>
    %cst_22 = arith.constant dense<0.000000e+00> : vector<2x8xf32>
    %72 = vector.multi_reduction <add>, %71, %cst_22 [2] : vector<2x8x16xf32> to vector<2x8xf32>
    %73 = vector.shape_cast %72 : vector<2x8xf32> to vector<2x8x1xf32>
    %74 = tpu.reciprocal %73 {approx = true} : vector<2x8x1xf32> -> vector<2x8x1xf32>
    %75 = vector.broadcast %74 : vector<2x8x1xf32> to vector<2x8x16xf32>
    %76 = arith.mulf %71, %75 : vector<2x8x16xf32>
    %77 = arith.truncf %76 : vector<2x8x16xf32> to vector<2x8x16xbf16>
    "tpu.trace_start"() <{level = 10 : i32, message = "hqk,hkd->hqd"}> : () -> ()
    %cst_23 = arith.constant dense<0.000000e+00> : vector<2x8x128xf32>
    %78 = tpu.matmul %77, %53, %cst_23 {dimension_numbers = #tpu.dot_dimension_numbers<[2], [1], [1], [2], [0, 0, 0, 1, 1, 2], [0], [0]>} : vector<2x8x16xbf16>, vector<2x16x128xbf16>, vector<2x8x128xf32> -> vector<2x8x128xf32>
    "tpu.trace_stop"() : () -> ()
    %79 = arith.truncf %78 : vector<2x8x128xf32> to vector<2x8x128xbf16>
    %cst_24 = arith.constant 0.000000e+00 : f32
    %80 = vector.broadcast %cst_24 : f32 to vector<8x128xf32>
    %81 = vector.extract_strided_slice %79 {offsets = [0, 0, 0], sizes = [1, 8, 128], strides = [1, 1, 1]} : vector<2x8x128xbf16> to vector<1x8x128xbf16>
    %82 = vector.shape_cast %81 : vector<1x8x128xbf16> to vector<8x128xbf16>
    %c0_25 = arith.constant 0 : index
    %c0_26 = arith.constant 0 : index
    %83 = vector.load %arg8[%c0_25, %c0_26] : memref<256x128xbf16, #tpu.memory_space<vmem>>, vector<128x128xbf16>
    %cst_27 = arith.constant dense<0.000000e+00> : vector<8x128xf32>
    %84 = tpu.matmul %82, %83, %cst_27 {dimension_numbers = #tpu.dot_dimension_numbers<[1], [0], [0], [1], [0, 0, 1, 1], [], []>} : vector<8x128xbf16>, vector<128x128xbf16>, vector<8x128xf32> -> vector<8x128xf32>
    %85 = arith.addf %80, %84 : vector<8x128xf32>
    %86 = vector.extract_strided_slice %79 {offsets = [1, 0, 0], sizes = [1, 8, 128], strides = [1, 1, 1]} : vector<2x8x128xbf16> to vector<1x8x128xbf16>
    %87 = vector.shape_cast %86 : vector<1x8x128xbf16> to vector<8x128xbf16>
    %c128 = arith.constant 128 : index
    %c0_28 = arith.constant 0 : index
    %88 = vector.load %arg8[%c128, %c0_28] : memref<256x128xbf16, #tpu.memory_space<vmem>>, vector<128x128xbf16>
    %cst_29 = arith.constant dense<0.000000e+00> : vector<8x128xf32>
    %89 = tpu.matmul %87, %88, %cst_29 {dimension_numbers = #tpu.dot_dimension_numbers<[1], [0], [0], [1], [0, 0, 1, 1], [], []>} : vector<8x128xbf16>, vector<128x128xbf16>, vector<8x128xf32> -> vector<8x128xf32>
    %90 = arith.addf %85, %89 : vector<8x128xf32>
    %91 = arith.addf %9, %90 : vector<8x128xf32>
    %92 = arith.mulf %91, %91 : vector<8x128xf32>
    %cst_30 = arith.constant dense<0.000000e+00> : vector<8xf32>
    %93 = vector.multi_reduction <add>, %92, %cst_30 [1] : vector<8x128xf32> to vector<8xf32>
    %94 = vector.shape_cast %93 : vector<8xf32> to vector<8x1xf32>
    %cst_31 = arith.constant 1.280000e+02 : f32
    %95 = vector.broadcast %cst_31 : f32 to vector<8x1xf32>
    %96 = arith.divf %94, %95 : vector<8x1xf32>
    %cst_32 = arith.constant 9.99999997E-7 : f32
    %97 = vector.broadcast %cst_32 : f32 to vector<8x1xf32>
    %98 = arith.addf %96, %97 : vector<8x1xf32>
    %99 = math.rsqrt %98 : vector<8x1xf32>
    %100 = vector.broadcast %99 : vector<8x1xf32> to vector<8x128xf32>
    %101 = arith.mulf %91, %100 : vector<8x128xf32>
    %c0_33 = arith.constant 0 : index
    %c0_34 = arith.constant 0 : index
    %102 = vector.load %arg9[%c0_33, %c0_34] : memref<1x128xf32, #tpu.memory_space<vmem>>, vector<1x128xf32>
    %cst_35 = arith.constant 1.000000e+00 : f32
    %103 = vector.broadcast %cst_35 : f32 to vector<1x128xf32>
    %104 = arith.addf %103, %102 : vector<1x128xf32>
    %105 = vector.broadcast %104 : vector<1x128xf32> to vector<8x128xf32>
    %106 = arith.mulf %101, %105 : vector<8x128xf32>
    %107 = arith.truncf %106 : vector<8x128xf32> to vector<8x128xbf16>
    %c0_36 = arith.constant 0 : index
    %c0_37 = arith.constant 0 : index
    %108 = vector.load %arg10[%c0_36, %c0_37] : memref<128x1024xbf16, #tpu.memory_space<vmem>>, vector<128x1024xbf16>
    %cst_38 = arith.constant dense<0.000000e+00> : vector<8x1024xf32>
    %109 = tpu.matmul %107, %108, %cst_38 {dimension_numbers = #tpu.dot_dimension_numbers<[1], [0], [0], [1], [0, 0, 1, 1], [], []>} : vector<8x128xbf16>, vector<128x1024xbf16>, vector<8x1024xf32> -> vector<8x1024xf32>
    %110 = vector.extract_strided_slice %109 {offsets = [0, 0], sizes = [8, 512], strides = [1, 1]} : vector<8x1024xf32> to vector<8x512xf32>
    %111 = vector.extract_strided_slice %109 {offsets = [0, 512], sizes = [8, 512], strides = [1, 1]} : vector<8x1024xf32> to vector<8x512xf32>
    %112 = arith.mulf %110, %110 : vector<8x512xf32>
    %113 = arith.mulf %110, %112 : vector<8x512xf32>
    %cst_39 = arith.constant 4.471500e-02 : f32
    %114 = vector.broadcast %cst_39 : f32 to vector<8x512xf32>
    %115 = arith.mulf %114, %113 : vector<8x512xf32>
    %116 = arith.addf %110, %115 : vector<8x512xf32>
    %cst_40 = arith.constant 0.797884583 : f32
    %117 = vector.broadcast %cst_40 : f32 to vector<8x512xf32>
    %118 = arith.mulf %117, %116 : vector<8x512xf32>
    %119 = math.tanh %118 : vector<8x512xf32>
    %cst_41 = arith.constant 1.000000e+00 : f32
    %120 = vector.broadcast %cst_41 : f32 to vector<8x512xf32>
    %121 = arith.addf %120, %119 : vector<8x512xf32>
    %cst_42 = arith.constant 5.000000e-01 : f32
    %122 = vector.broadcast %cst_42 : f32 to vector<8x512xf32>
    %123 = arith.mulf %122, %121 : vector<8x512xf32>
    %124 = arith.mulf %110, %123 : vector<8x512xf32>
    %125 = arith.mulf %124, %111 : vector<8x512xf32>
    %126 = arith.truncf %125 : vector<8x512xf32> to vector<8x512xbf16>
    %c0_43 = arith.constant 0 : index
    %c0_44 = arith.constant 0 : index
    %127 = vector.load %arg11[%c0_43, %c0_44] : memref<512x128xbf16, #tpu.memory_space<vmem>>, vector<512x128xbf16>
    %cst_45 = arith.constant dense<0.000000e+00> : vector<8x128xf32>
    %128 = tpu.matmul %126, %127, %cst_45 {dimension_numbers = #tpu.dot_dimension_numbers<[1], [0], [0], [1], [0, 0, 1, 1], [], []>} : vector<8x512xbf16>, vector<512x128xbf16>, vector<8x128xf32> -> vector<8x128xf32>
    %129 = arith.addf %91, %128 : vector<8x128xf32>
    %c0_46 = arith.constant 0 : index
    %c0_47 = arith.constant 0 : index
    %c0_48 = arith.constant 0 : index
    %130 = vector.load %arg13[%c0_46, %c0_47, %c0_48] : memref<1x8x128xf32, #tpu.memory_space<vmem>>, vector<1x8x128xf32>
    %131 = vector.shape_cast %130 : vector<1x8x128xf32> to vector<8x128xf32>
    %132 = vector.shape_cast %129 : vector<8x128xf32> to vector<1x8x128xf32>
    tpu.vector_store %arg13[%c0_46, %c0_47, %c0_48], %132 {strides = array<i32>} : memref<1x8x128xf32, #tpu.memory_space<vmem>>, vector<1x8x128xf32>,
    return
  }
  func.func @transform_0(%arg0: i32, %arg1: i32) -> (i32, i32, i32) {
    %c0_i32 = arith.constant 0 : i32
    %c0_i32_0 = arith.constant 0 : i32
    %c0_i32_1 = arith.constant 0 : i32
    return %arg0, %c0_i32, %c0_i32_0 : i32, i32, i32
  }
  func.func @transform_1(%arg0: i32, %arg1: i32) -> (i32, i32) {
    %c0_i32 = arith.constant 0 : i32
    %c0_i32_0 = arith.constant 0 : i32
    %c0_i32_1 = arith.constant 0 : i32
    return %c0_i32, %c0_i32_0 : i32, i32
  }
  func.func @transform_2(%arg0: i32, %arg1: i32) -> (i32, i32) {
    %c0_i32 = arith.constant 0 : i32
    %c0_i32_0 = arith.constant 0 : i32
    %c0_i32_1 = arith.constant 0 : i32
    return %c0_i32, %c0_i32_0 : i32, i32
  }
  func.func @transform_3(%arg0: i32, %arg1: i32) -> (i32, i32) {
    %c0_i32 = arith.constant 0 : i32
    %c0_i32_0 = arith.constant 0 : i32
    %c0_i32_1 = arith.constant 0 : i32
    return %c0_i32, %c0_i32_0 : i32, i32
  }
  func.func @transform_4(%arg0: i32, %arg1: i32) -> (i32, i32) {
    %c0_i32 = arith.constant 0 : i32
    %c0_i32_0 = arith.constant 0 : i32
    %c0_i32_1 = arith.constant 0 : i32
    return %c0_i32, %c0_i32_0 : i32, i32
  }
  func.func @transform_5(%arg0: i32, %arg1: i32) -> (i32, i32) {
    %c0_i32 = arith.constant 0 : i32
    %c0_i32_0 = arith.constant 0 : i32
    %c0_i32_1 = arith.constant 0 : i32
    return %c0_i32, %c0_i32_0 : i32, i32
  }
  func.func @transform_6(%arg0: i32, %arg1: i32) -> (i32, i32) {
    %c0_i32 = arith.constant 0 : i32
    %c0_i32_0 = arith.constant 0 : i32
    %c0_i32_1 = arith.constant 0 : i32
    return %c0_i32, %c0_i32_0 : i32, i32
  }
  func.func @transform_7(%arg0: i32, %arg1: i32) -> (i32, i32) {
    %c0_i32 = arith.constant 0 : i32
    %c0_i32_0 = arith.constant 0 : i32
    %c0_i32_1 = arith.constant 0 : i32
    return %c0_i32, %c0_i32_0 : i32, i32
  }
  func.func @transform_8(%arg0: i32, %arg1: i32) -> (i32, i32) {
    %c0_i32 = arith.constant 0 : i32
    %c0_i32_0 = arith.constant 0 : i32
    %c0_i32_1 = arith.constant 0 : i32
    return %c0_i32, %c0_i32_0 : i32, i32
  }
  func.func @transform_9(%arg0: i32, %arg1: i32) -> (i32, i32) {
    %c0_i32 = arith.constant 0 : i32
    %c0_i32_0 = arith.constant 0 : i32
    %c0_i32_1 = arith.constant 0 : i32
    return %c0_i32, %c0_i32_0 : i32, i32
  }
  func.func @transform_10(%arg0: i32, %arg1: i32) -> (i32, i32) {
    %c0_i32 = arith.constant 0 : i32
    %c0_i32_0 = arith.constant 0 : i32
    %c0_i32_1 = arith.constant 0 : i32
    return %c0_i32, %c0_i32_0 : i32, i32
  }
  func.func @transform_11(%arg0: i32, %arg1: i32) -> (i32, i32, i32) {
    %c0_i32 = arith.constant 0 : i32
    %c0_i32_0 = arith.constant 0 : i32
    return %arg0, %arg1, %c0_i32 : i32, i32, i32
  }
}

module attributes {stable_mosaic.version = 11 : i64} {
  func.func @_decoder_layer_kernel(%arg0: i32, %arg1: i32, %arg2: memref<1x16x128xf32, #tpu.memory_space<vmem>>, %arg3: memref<16x128xf32, #tpu.memory_space<vmem>>, %arg4: memref<16x128xf32, #tpu.memory_space<vmem>>, %arg5: memref<1x128xf32, #tpu.memory_space<vmem>>, %arg6: memref<128x256xbf16, #tpu.memory_space<vmem>>, %arg7: memref<128x256xbf16, #tpu.memory_space<vmem>>, %arg8: memref<256x128xbf16, #tpu.memory_space<vmem>>, %arg9: memref<1x128xf32, #tpu.memory_space<vmem>>, %arg10: memref<128x1024xbf16, #tpu.memory_space<vmem>>, %arg11: memref<512x128xbf16, #tpu.memory_space<vmem>>, %arg12: memref<1x128xf32, #tpu.memory_space<vmem>>, %arg13: memref<1x8x128xf32, #tpu.memory_space<vmem>>, %arg14: memref<16x128xbf16, #tpu.memory_space<vmem>>, %arg15: memref<16x128xbf16, #tpu.memory_space<vmem>>) attributes {dimension_semantics = [#tpu.dimension_semantics<parallel>, #tpu.dimension_semantics<arbitrary>], iteration_bounds = array<i64: 2, 2>, scalar_prefetch = 0 : i64, scratch_operands = 2 : i64, tpu.core_type = #tpu.core_type<tc>, window_params = [{transform_indices = @transform_0, window_bounds = array<i64: 1, 16, 128>}, {pipeline_mode = #tpu.pipeline_mode<synchronous>, transform_indices = @transform_1, window_bounds = array<i64: 16, 128>}, {pipeline_mode = #tpu.pipeline_mode<synchronous>, transform_indices = @transform_2, window_bounds = array<i64: 16, 128>}, {pipeline_mode = #tpu.pipeline_mode<synchronous>, transform_indices = @transform_3, window_bounds = array<i64: 1, 128>}, {pipeline_mode = #tpu.pipeline_mode<synchronous>, transform_indices = @transform_4, window_bounds = array<i64: 128, 256>}, {pipeline_mode = #tpu.pipeline_mode<synchronous>, transform_indices = @transform_5, window_bounds = array<i64: 128, 256>}, {pipeline_mode = #tpu.pipeline_mode<synchronous>, transform_indices = @transform_6, window_bounds = array<i64: 256, 128>}, {pipeline_mode = #tpu.pipeline_mode<synchronous>, transform_indices = @transform_7, window_bounds = array<i64: 1, 128>}, {pipeline_mode = #tpu.pipeline_mode<synchronous>, transform_indices = @transform_8, window_bounds = array<i64: 128, 1024>}, {pipeline_mode = #tpu.pipeline_mode<synchronous>, transform_indices = @transform_9, window_bounds = array<i64: 512, 128>}, {pipeline_mode = #tpu.pipeline_mode<synchronous>, transform_indices = @transform_10, window_bounds = array<i64: 1, 128>}, {transform_indices = @transform_11, window_bounds = array<i64: 1, 8, 128>}]} {
    %c8_i32 = arith.constant 8 : i32
    %0 = arith.muli %arg1, %c8_i32 : i32
    %1 = tpu.assume_multiple %0, 8 : i32
    %c0_i32 = arith.constant 0 : i32
    %2 = arith.cmpi eq, %arg1, %c0_i32 : i32
    %3 = arith.extui %2 : i1 to i32
    %c0_i32_0 = arith.constant 0 : i32
    %4 = arith.cmpi ne, %3, %c0_i32_0 : i32
    scf.if %4 {
      %c0_54 = arith.constant 0 : index
      %c0_55 = arith.constant 0 : index
      %c0_56 = arith.constant 0 : index
      %146 = vector.load %arg2[%c0_54, %c0_55, %c0_56] : memref<1x16x128xf32, #tpu.memory_space<vmem>>, vector<1x16x128xf32>
      %147 = vector.shape_cast %146 : vector<1x16x128xf32> to vector<16x128xf32>
      %148 = arith.mulf %147, %147 : vector<16x128xf32>
      %cst_57 = arith.constant dense<0.000000e+00> : vector<16xf32>
      %149 = vector.multi_reduction <add>, %148, %cst_57 [1] : vector<16x128xf32> to vector<16xf32>
      %150 = vector.shape_cast %149 : vector<16xf32> to vector<16x1xf32>
      %cst_58 = arith.constant 1.280000e+02 : f32
      %151 = vector.broadcast %cst_58 : f32 to vector<16x1xf32>
      %152 = arith.divf %150, %151 : vector<16x1xf32>
      %cst_59 = arith.constant 9.99999997E-7 : f32
      %153 = vector.broadcast %cst_59 : f32 to vector<16x1xf32>
      %154 = arith.addf %152, %153 : vector<16x1xf32>
      %155 = math.rsqrt %154 : vector<16x1xf32>
      %156 = vector.broadcast %155 : vector<16x1xf32> to vector<16x128xf32>
      %157 = arith.mulf %147, %156 : vector<16x128xf32>
      %c0_60 = arith.constant 0 : index
      %c0_61 = arith.constant 0 : index
      %158 = vector.load %arg5[%c0_60, %c0_61] : memref<1x128xf32, #tpu.memory_space<vmem>>, vector<1x128xf32>
      %cst_62 = arith.constant 1.000000e+00 : f32
      %159 = vector.broadcast %cst_62 : f32 to vector<1x128xf32>
      %160 = arith.addf %159, %158 : vector<1x128xf32>
      %161 = vector.broadcast %160 : vector<1x128xf32> to vector<16x128xf32>
      %162 = arith.mulf %157, %161 : vector<16x128xf32>
      %163 = arith.truncf %162 : vector<16x128xf32> to vector<16x128xbf16>
      %c0_63 = arith.constant 0 : index
      %c0_64 = arith.constant 0 : index
      %164 = vector.load %arg7[%c0_63, %c0_64] : memref<128x256xbf16, #tpu.memory_space<vmem>>, vector<128x256xbf16>
      %cst_65 = arith.constant dense<0.000000e+00> : vector<16x256xf32>
      %165 = tpu.matmul %163, %164, %cst_65 {dimension_numbers = #tpu.dot_dimension_numbers<[1], [0], [0], [1], [0, 0, 1, 1], [], []>} : vector<16x128xbf16>, vector<128x256xbf16>, vector<16x256xf32> -> vector<16x256xf32>
      %c0_66 = arith.constant 0 : index
      %c0_67 = arith.constant 0 : index
      %166 = vector.load %arg3[%c0_66, %c0_67] : memref<16x128xf32, #tpu.memory_space<vmem>>, vector<16x128xf32>
      %c0_68 = arith.constant 0 : index
      %c0_69 = arith.constant 0 : index
      %167 = vector.load %arg4[%c0_68, %c0_69] : memref<16x128xf32, #tpu.memory_space<vmem>>, vector<16x128xf32>
      %168 = vector.extract_strided_slice %165 {offsets = [0, 0], sizes = [16, 128], strides = [1, 1]} : vector<16x256xf32> to vector<16x128xf32>
      %169 = arith.mulf %168, %166 : vector<16x128xf32>
      %c64_i32_70 = arith.constant 64 : i32
      %170 = tpu.dynamic_rotate %168 by %c64_i32_70 dim 1 : vector<16x128xf32>, i32 -> vector<16x128xf32>
      %171 = arith.mulf %170, %167 : vector<16x128xf32>
      %172 = arith.addf %169, %171 : vector<16x128xf32>
      %173 = arith.truncf %172 : vector<16x128xf32> to vector<16x128xbf16>
      %c0_71 = arith.constant 0 : index
      %c0_72 = arith.constant 0 : index
      %174 = vector.load %arg14[%c0_71, %c0_72] : memref<16x128xbf16, #tpu.memory_space<vmem>>, vector<16x128xbf16>
      tpu.vector_store %arg14[%c0_71, %c0_72], %173 {strides = array<i32>} : memref<16x128xbf16, #tpu.memory_space<vmem>>, vector<16x128xbf16>,
      %175 = vector.extract_strided_slice %165 {offsets = [0, 128], sizes = [16, 128], strides = [1, 1]} : vector<16x256xf32> to vector<16x128xf32>
      %176 = arith.truncf %175 : vector<16x128xf32> to vector<16x128xbf16>
      %c0_73 = arith.constant 0 : index
      %c0_74 = arith.constant 0 : index
      %177 = vector.load %arg15[%c0_73, %c0_74] : memref<16x128xbf16, #tpu.memory_space<vmem>>, vector<16x128xbf16>
      tpu.vector_store %arg15[%c0_73, %c0_74], %176 {strides = array<i32>} : memref<16x128xbf16, #tpu.memory_space<vmem>>, vector<16x128xbf16>,
    } else {
    }
    %c0 = arith.constant 0 : index
    %5 = arith.index_cast %1 : i32 to index
    %c0_1 = arith.constant 0 : index
    %6 = vector.load %arg2[%c0, %5, %c0_1] : memref<1x16x128xf32, #tpu.memory_space<vmem>>, vector<1x8x128xf32>
    %7 = vector.shape_cast %6 : vector<1x8x128xf32> to vector<8x128xf32>
    %8 = arith.mulf %7, %7 : vector<8x128xf32>
    %cst = arith.constant dense<0.000000e+00> : vector<8xf32>
    %9 = vector.multi_reduction <add>, %8, %cst [1] : vector<8x128xf32> to vector<8xf32>
    %10 = vector.shape_cast %9 : vector<8xf32> to vector<8x1xf32>
    %cst_2 = arith.constant 1.280000e+02 : f32
    %11 = vector.broadcast %cst_2 : f32 to vector<8x1xf32>
    %12 = arith.divf %10, %11 : vector<8x1xf32>
    %cst_3 = arith.constant 9.99999997E-7 : f32
    %13 = vector.broadcast %cst_3 : f32 to vector<8x1xf32>
    %14 = arith.addf %12, %13 : vector<8x1xf32>
    %15 = math.rsqrt %14 : vector<8x1xf32>
    %16 = vector.broadcast %15 : vector<8x1xf32> to vector<8x128xf32>
    %17 = arith.mulf %7, %16 : vector<8x128xf32>
    %c0_4 = arith.constant 0 : index
    %c0_5 = arith.constant 0 : index
    %18 = vector.load %arg5[%c0_4, %c0_5] : memref<1x128xf32, #tpu.memory_space<vmem>>, vector<1x128xf32>
    %cst_6 = arith.constant 1.000000e+00 : f32
    %19 = vector.broadcast %cst_6 : f32 to vector<1x128xf32>
    %20 = arith.addf %19, %18 : vector<1x128xf32>
    %21 = vector.broadcast %20 : vector<1x128xf32> to vector<8x128xf32>
    %22 = arith.mulf %17, %21 : vector<8x128xf32>
    %23 = arith.truncf %22 : vector<8x128xf32> to vector<8x128xbf16>
    %c0_7 = arith.constant 0 : index
    %c0_8 = arith.constant 0 : index
    %24 = vector.load %arg6[%c0_7, %c0_8] : memref<128x256xbf16, #tpu.memory_space<vmem>>, vector<128x256xbf16>
    %cst_9 = arith.constant dense<0.000000e+00> : vector<8x256xf32>
    %25 = tpu.matmul %23, %24, %cst_9 {dimension_numbers = #tpu.dot_dimension_numbers<[1], [0], [0], [1], [0, 0, 1, 1], [], []>} : vector<8x128xbf16>, vector<128x256xbf16>, vector<8x256xf32> -> vector<8x256xf32>
    %26 = arith.index_cast %1 : i32 to index
    %c0_10 = arith.constant 0 : index
    %27 = vector.load %arg3[%26, %c0_10] : memref<16x128xf32, #tpu.memory_space<vmem>>, vector<8x128xf32>
    %28 = arith.index_cast %1 : i32 to index
    %c0_11 = arith.constant 0 : index
    %29 = vector.load %arg4[%28, %c0_11] : memref<16x128xf32, #tpu.memory_space<vmem>>, vector<8x128xf32>
    %30 = vector.extract_strided_slice %25 {offsets = [0, 0], sizes = [8, 128], strides = [1, 1]} : vector<8x256xf32> to vector<8x128xf32>
    %31 = arith.mulf %30, %27 : vector<8x128xf32>
    %c64_i32 = arith.constant 64 : i32
    %32 = tpu.dynamic_rotate %30 by %c64_i32 dim 1 : vector<8x128xf32>, i32 -> vector<8x128xf32>
    %33 = arith.mulf %32, %29 : vector<8x128xf32>
    %34 = arith.addf %31, %33 : vector<8x128xf32>
    %35 = vector.extract_strided_slice %25 {offsets = [0, 128], sizes = [8, 128], strides = [1, 1]} : vector<8x256xf32> to vector<8x128xf32>
    %36 = arith.mulf %35, %27 : vector<8x128xf32>
    %c64_i32_12 = arith.constant 64 : i32
    %37 = tpu.dynamic_rotate %35 by %c64_i32_12 dim 1 : vector<8x128xf32>, i32 -> vector<8x128xf32>
    %38 = arith.mulf %37, %29 : vector<8x128xf32>
    %39 = arith.addf %36, %38 : vector<8x128xf32>
    %40 = vector.shape_cast %34 : vector<8x128xf32> to vector<1x8x128xf32>
    %41 = vector.shape_cast %39 : vector<8x128xf32> to vector<1x8x128xf32>
    %42 = tpu.concatenate %40, %41 in 0 : vector<1x8x128xf32>, vector<1x8x128xf32> -> vector<2x8x128xf32>
    %43 = arith.truncf %42 : vector<2x8x128xf32> to vector<2x8x128xbf16>
    %c0_13 = arith.constant 0 : index
    %c0_14 = arith.constant 0 : index
    %44 = vector.load %arg14[%c0_13, %c0_14] : memref<16x128xbf16, #tpu.memory_space<vmem>>, vector<16x128xbf16>
    %c0_15 = arith.constant 0 : index
    %c0_16 = arith.constant 0 : index
    %45 = vector.load %arg15[%c0_15, %c0_16] : memref<16x128xbf16, #tpu.memory_space<vmem>>, vector<16x128xbf16>
    %46 = vector.shape_cast %44 : vector<16x128xbf16> to vector<1x16x128xbf16>
    %47 = vector.shape_cast %44 : vector<16x128xbf16> to vector<1x16x128xbf16>
    %48 = tpu.concatenate %46, %47 in 0 : vector<1x16x128xbf16>, vector<1x16x128xbf16> -> vector<2x16x128xbf16>
    %49 = vector.shape_cast %45 : vector<16x128xbf16> to vector<1x16x128xbf16>
    %50 = vector.shape_cast %45 : vector<16x128xbf16> to vector<1x16x128xbf16>
    %51 = tpu.concatenate %49, %50 in 0 : vector<1x16x128xbf16>, vector<1x16x128xbf16> -> vector<2x16x128xbf16>
    "tpu.trace_start"() <{level = 10 : i32, message = "hqd,hkd->hqk"}> : () -> ()
    %cst_17 = arith.constant dense<0.000000e+00> : vector<2x8x16xf32>
    %52 = tpu.matmul %43, %48, %cst_17 {dimension_numbers = #tpu.dot_dimension_numbers<[2], [2], [1], [1], [0, 0, 0, 1, 1, 1], [0], [0]>} : vector<2x8x128xbf16>, vector<2x16x128xbf16>, vector<2x8x16xf32> -> vector<2x8x16xf32>
    "tpu.trace_stop"() : () -> ()
    %cst_18 = arith.constant 0.0883883461 : f32
    %53 = vector.broadcast %cst_18 : f32 to vector<2x8x16xf32>
    %54 = arith.mulf %52, %53 : vector<2x8x16xf32>
    %55 = tpu.iota {dimensions = array<i32: 0>} : vector<8x16xi32>
    %56 = vector.broadcast %1 : i32 to vector<8x16xi32>
    %57 = arith.addi %56, %55 : vector<8x16xi32>
    %58 = tpu.iota {dimensions = array<i32: 1>} : vector<8x16xi32>
    %59 = arith.cmpi sle, %58, %57 : vector<8x16xi32>
    %60 = vector.shape_cast %59 : vector<8x16xi1> to vector<1x8x16xi1>
    %cst_19 = arith.constant -1.000000e+30 : f32
    %61 = vector.shape_cast %60 : vector<1x8x16xi1> to vector<1x8x16xi1>
    %62 = vector.broadcast %61 : vector<1x8x16xi1> to vector<2x8x16xi1>
    %63 = vector.broadcast %cst_19 : f32 to vector<2x8x16xf32>
    %64 = arith.select %62, %54, %63 : vector<2x8x16xi1>, vector<2x8x16xf32>
    %cst_20 = arith.constant dense<0xFF800000> : vector<2x8xf32>
    %65 = vector.multi_reduction <maximumf>, %64, %cst_20 [2] : vector<2x8x16xf32> to vector<2x8xf32>
    %66 = vector.shape_cast %65 : vector<2x8xf32> to vector<2x8x1xf32>
    %67 = vector.broadcast %66 : vector<2x8x1xf32> to vector<2x8x16xf32>
    %68 = arith.subf %64, %67 : vector<2x8x16xf32>
    %69 = math.exp %68 : vector<2x8x16xf32>
    %cst_21 = arith.constant dense<0.000000e+00> : vector<2x8xf32>
    %70 = vector.multi_reduction <add>, %69, %cst_21 [2] : vector<2x8x16xf32> to vector<2x8xf32>
    %71 = vector.shape_cast %70 : vector<2x8xf32> to vector<2x8x1xf32>
    %72 = tpu.reciprocal %71 {approx = true} : vector<2x8x1xf32> -> vector<2x8x1xf32>
    %73 = vector.broadcast %72 : vector<2x8x1xf32> to vector<2x8x16xf32>
    %74 = arith.mulf %69, %73 : vector<2x8x16xf32>
    %75 = arith.truncf %74 : vector<2x8x16xf32> to vector<2x8x16xbf16>
    "tpu.trace_start"() <{level = 10 : i32, message = "hqk,hkd->hqd"}> : () -> ()
    %cst_22 = arith.constant dense<0.000000e+00> : vector<2x8x128xf32>
    %76 = tpu.matmul %75, %51, %cst_22 {dimension_numbers = #tpu.dot_dimension_numbers<[2], [1], [1], [2], [0, 0, 0, 1, 1, 2], [0], [0]>} : vector<2x8x16xbf16>, vector<2x16x128xbf16>, vector<2x8x128xf32> -> vector<2x8x128xf32>
    "tpu.trace_stop"() : () -> ()
    %77 = arith.truncf %76 : vector<2x8x128xf32> to vector<2x8x128xbf16>
    %cst_23 = arith.constant 0.000000e+00 : f32
    %78 = vector.broadcast %cst_23 : f32 to vector<8x128xf32>
    %79 = vector.extract_strided_slice %77 {offsets = [0, 0, 0], sizes = [1, 8, 128], strides = [1, 1, 1]} : vector<2x8x128xbf16> to vector<1x8x128xbf16>
    %80 = vector.shape_cast %79 : vector<1x8x128xbf16> to vector<8x128xbf16>
    %c0_24 = arith.constant 0 : index
    %c0_25 = arith.constant 0 : index
    %81 = vector.load %arg8[%c0_24, %c0_25] : memref<256x128xbf16, #tpu.memory_space<vmem>>, vector<128x128xbf16>
    %cst_26 = arith.constant dense<0.000000e+00> : vector<8x128xf32>
    %82 = tpu.matmul %80, %81, %cst_26 {dimension_numbers = #tpu.dot_dimension_numbers<[1], [0], [0], [1], [0, 0, 1, 1], [], []>} : vector<8x128xbf16>, vector<128x128xbf16>, vector<8x128xf32> -> vector<8x128xf32>
    %83 = arith.addf %78, %82 : vector<8x128xf32>
    %84 = vector.extract_strided_slice %77 {offsets = [1, 0, 0], sizes = [1, 8, 128], strides = [1, 1, 1]} : vector<2x8x128xbf16> to vector<1x8x128xbf16>
    %85 = vector.shape_cast %84 : vector<1x8x128xbf16> to vector<8x128xbf16>
    %c128 = arith.constant 128 : index
    %c0_27 = arith.constant 0 : index
    %86 = vector.load %arg8[%c128, %c0_27] : memref<256x128xbf16, #tpu.memory_space<vmem>>, vector<128x128xbf16>
    %cst_28 = arith.constant dense<0.000000e+00> : vector<8x128xf32>
    %87 = tpu.matmul %85, %86, %cst_28 {dimension_numbers = #tpu.dot_dimension_numbers<[1], [0], [0], [1], [0, 0, 1, 1], [], []>} : vector<8x128xbf16>, vector<128x128xbf16>, vector<8x128xf32> -> vector<8x128xf32>
    %88 = arith.addf %83, %87 : vector<8x128xf32>
    %89 = arith.addf %7, %88 : vector<8x128xf32>
    %90 = arith.mulf %89, %89 : vector<8x128xf32>
    %cst_29 = arith.constant dense<0.000000e+00> : vector<8xf32>
    %91 = vector.multi_reduction <add>, %90, %cst_29 [1] : vector<8x128xf32> to vector<8xf32>
    %92 = vector.shape_cast %91 : vector<8xf32> to vector<8x1xf32>
    %cst_30 = arith.constant 1.280000e+02 : f32
    %93 = vector.broadcast %cst_30 : f32 to vector<8x1xf32>
    %94 = arith.divf %92, %93 : vector<8x1xf32>
    %cst_31 = arith.constant 9.99999997E-7 : f32
    %95 = vector.broadcast %cst_31 : f32 to vector<8x1xf32>
    %96 = arith.addf %94, %95 : vector<8x1xf32>
    %97 = math.rsqrt %96 : vector<8x1xf32>
    %98 = vector.broadcast %97 : vector<8x1xf32> to vector<8x128xf32>
    %99 = arith.mulf %89, %98 : vector<8x128xf32>
    %c0_32 = arith.constant 0 : index
    %c0_33 = arith.constant 0 : index
    %100 = vector.load %arg9[%c0_32, %c0_33] : memref<1x128xf32, #tpu.memory_space<vmem>>, vector<1x128xf32>
    %cst_34 = arith.constant 1.000000e+00 : f32
    %101 = vector.broadcast %cst_34 : f32 to vector<1x128xf32>
    %102 = arith.addf %101, %100 : vector<1x128xf32>
    %103 = vector.broadcast %102 : vector<1x128xf32> to vector<8x128xf32>
    %104 = arith.mulf %99, %103 : vector<8x128xf32>
    %105 = arith.truncf %104 : vector<8x128xf32> to vector<8x128xbf16>
    %c0_35 = arith.constant 0 : index
    %c0_36 = arith.constant 0 : index
    %106 = vector.load %arg10[%c0_35, %c0_36] : memref<128x1024xbf16, #tpu.memory_space<vmem>>, vector<128x1024xbf16>
    %cst_37 = arith.constant dense<0.000000e+00> : vector<8x1024xf32>
    %107 = tpu.matmul %105, %106, %cst_37 {dimension_numbers = #tpu.dot_dimension_numbers<[1], [0], [0], [1], [0, 0, 1, 1], [], []>} : vector<8x128xbf16>, vector<128x1024xbf16>, vector<8x1024xf32> -> vector<8x1024xf32>
    %108 = vector.extract_strided_slice %107 {offsets = [0, 0], sizes = [8, 512], strides = [1, 1]} : vector<8x1024xf32> to vector<8x512xf32>
    %109 = vector.extract_strided_slice %107 {offsets = [0, 512], sizes = [8, 512], strides = [1, 1]} : vector<8x1024xf32> to vector<8x512xf32>
    %110 = arith.mulf %108, %108 : vector<8x512xf32>
    %111 = arith.mulf %108, %110 : vector<8x512xf32>
    %cst_38 = arith.constant 4.471500e-02 : f32
    %112 = vector.broadcast %cst_38 : f32 to vector<8x512xf32>
    %113 = arith.mulf %112, %111 : vector<8x512xf32>
    %114 = arith.addf %108, %113 : vector<8x512xf32>
    %cst_39 = arith.constant 0.797884583 : f32
    %115 = vector.broadcast %cst_39 : f32 to vector<8x512xf32>
    %116 = arith.mulf %115, %114 : vector<8x512xf32>
    %117 = math.tanh %116 : vector<8x512xf32>
    %cst_40 = arith.constant 1.000000e+00 : f32
    %118 = vector.broadcast %cst_40 : f32 to vector<8x512xf32>
    %119 = arith.addf %118, %117 : vector<8x512xf32>
    %cst_41 = arith.constant 5.000000e-01 : f32
    %120 = vector.broadcast %cst_41 : f32 to vector<8x512xf32>
    %121 = arith.mulf %120, %119 : vector<8x512xf32>
    %122 = arith.mulf %108, %121 : vector<8x512xf32>
    %123 = arith.mulf %122, %109 : vector<8x512xf32>
    %124 = arith.truncf %123 : vector<8x512xf32> to vector<8x512xbf16>
    %c0_42 = arith.constant 0 : index
    %c0_43 = arith.constant 0 : index
    %125 = vector.load %arg11[%c0_42, %c0_43] : memref<512x128xbf16, #tpu.memory_space<vmem>>, vector<512x128xbf16>
    %cst_44 = arith.constant dense<0.000000e+00> : vector<8x128xf32>
    %126 = tpu.matmul %124, %125, %cst_44 {dimension_numbers = #tpu.dot_dimension_numbers<[1], [0], [0], [1], [0, 0, 1, 1], [], []>} : vector<8x512xbf16>, vector<512x128xbf16>, vector<8x128xf32> -> vector<8x128xf32>
    %127 = arith.addf %89, %126 : vector<8x128xf32>
    %128 = arith.mulf %127, %127 : vector<8x128xf32>
    %cst_45 = arith.constant dense<0.000000e+00> : vector<8xf32>
    %129 = vector.multi_reduction <add>, %128, %cst_45 [1] : vector<8x128xf32> to vector<8xf32>
    %130 = vector.shape_cast %129 : vector<8xf32> to vector<8x1xf32>
    %cst_46 = arith.constant 1.280000e+02 : f32
    %131 = vector.broadcast %cst_46 : f32 to vector<8x1xf32>
    %132 = arith.divf %130, %131 : vector<8x1xf32>
    %cst_47 = arith.constant 9.99999997E-7 : f32
    %133 = vector.broadcast %cst_47 : f32 to vector<8x1xf32>
    %134 = arith.addf %132, %133 : vector<8x1xf32>
    %135 = math.rsqrt %134 : vector<8x1xf32>
    %136 = vector.broadcast %135 : vector<8x1xf32> to vector<8x128xf32>
    %137 = arith.mulf %127, %136 : vector<8x128xf32>
    %c0_48 = arith.constant 0 : index
    %c0_49 = arith.constant 0 : index
    %138 = vector.load %arg12[%c0_48, %c0_49] : memref<1x128xf32, #tpu.memory_space<vmem>>, vector<1x128xf32>
    %cst_50 = arith.constant 1.000000e+00 : f32
    %139 = vector.broadcast %cst_50 : f32 to vector<1x128xf32>
    %140 = arith.addf %139, %138 : vector<1x128xf32>
    %141 = vector.broadcast %140 : vector<1x128xf32> to vector<8x128xf32>
    %142 = arith.mulf %137, %141 : vector<8x128xf32>
    %c0_51 = arith.constant 0 : index
    %c0_52 = arith.constant 0 : index
    %c0_53 = arith.constant 0 : index
    %143 = vector.load %arg13[%c0_51, %c0_52, %c0_53] : memref<1x8x128xf32, #tpu.memory_space<vmem>>, vector<1x8x128xf32>
    %144 = vector.shape_cast %143 : vector<1x8x128xf32> to vector<8x128xf32>
    %145 = vector.shape_cast %142 : vector<8x128xf32> to vector<1x8x128xf32>
    tpu.vector_store %arg13[%c0_51, %c0_52, %c0_53], %145 {strides = array<i32>} : memref<1x8x128xf32, #tpu.memory_space<vmem>>, vector<1x8x128xf32>,
    return
  }
  func.func @transform_0(%arg0: i32, %arg1: i32) -> (i32, i32, i32) {
    %c0_i32 = arith.constant 0 : i32
    %c0_i32_0 = arith.constant 0 : i32
    %c0_i32_1 = arith.constant 0 : i32
    return %arg0, %c0_i32, %c0_i32_0 : i32, i32, i32
  }
  func.func @transform_1(%arg0: i32, %arg1: i32) -> (i32, i32) {
    %c0_i32 = arith.constant 0 : i32
    %c0_i32_0 = arith.constant 0 : i32
    %c0_i32_1 = arith.constant 0 : i32
    return %c0_i32, %c0_i32_0 : i32, i32
  }
  func.func @transform_2(%arg0: i32, %arg1: i32) -> (i32, i32) {
    %c0_i32 = arith.constant 0 : i32
    %c0_i32_0 = arith.constant 0 : i32
    %c0_i32_1 = arith.constant 0 : i32
    return %c0_i32, %c0_i32_0 : i32, i32
  }
  func.func @transform_3(%arg0: i32, %arg1: i32) -> (i32, i32) {
    %c0_i32 = arith.constant 0 : i32
    %c0_i32_0 = arith.constant 0 : i32
    %c0_i32_1 = arith.constant 0 : i32
    return %c0_i32, %c0_i32_0 : i32, i32
  }
  func.func @transform_4(%arg0: i32, %arg1: i32) -> (i32, i32) {
    %c0_i32 = arith.constant 0 : i32
    %c0_i32_0 = arith.constant 0 : i32
    %c0_i32_1 = arith.constant 0 : i32
    return %c0_i32, %c0_i32_0 : i32, i32
  }
  func.func @transform_5(%arg0: i32, %arg1: i32) -> (i32, i32) {
    %c0_i32 = arith.constant 0 : i32
    %c0_i32_0 = arith.constant 0 : i32
    %c0_i32_1 = arith.constant 0 : i32
    return %c0_i32, %c0_i32_0 : i32, i32
  }
  func.func @transform_6(%arg0: i32, %arg1: i32) -> (i32, i32) {
    %c0_i32 = arith.constant 0 : i32
    %c0_i32_0 = arith.constant 0 : i32
    %c0_i32_1 = arith.constant 0 : i32
    return %c0_i32, %c0_i32_0 : i32, i32
  }
  func.func @transform_7(%arg0: i32, %arg1: i32) -> (i32, i32) {
    %c0_i32 = arith.constant 0 : i32
    %c0_i32_0 = arith.constant 0 : i32
    %c0_i32_1 = arith.constant 0 : i32
    return %c0_i32, %c0_i32_0 : i32, i32
  }
  func.func @transform_8(%arg0: i32, %arg1: i32) -> (i32, i32) {
    %c0_i32 = arith.constant 0 : i32
    %c0_i32_0 = arith.constant 0 : i32
    %c0_i32_1 = arith.constant 0 : i32
    return %c0_i32, %c0_i32_0 : i32, i32
  }
  func.func @transform_9(%arg0: i32, %arg1: i32) -> (i32, i32) {
    %c0_i32 = arith.constant 0 : i32
    %c0_i32_0 = arith.constant 0 : i32
    %c0_i32_1 = arith.constant 0 : i32
    return %c0_i32, %c0_i32_0 : i32, i32
  }
  func.func @transform_10(%arg0: i32, %arg1: i32) -> (i32, i32) {
    %c0_i32 = arith.constant 0 : i32
    %c0_i32_0 = arith.constant 0 : i32
    %c0_i32_1 = arith.constant 0 : i32
    return %c0_i32, %c0_i32_0 : i32, i32
  }
  func.func @transform_11(%arg0: i32, %arg1: i32) -> (i32, i32, i32) {
    %c0_i32 = arith.constant 0 : i32
    %c0_i32_0 = arith.constant 0 : i32
    return %arg0, %arg1, %c0_i32 : i32, i32, i32
  }
}

</mosaic_0001>

<bundles_post_ra>
// kernel: gemma_model_forward.3
= control target key start
LH: loop header
LB: loop body
LE: loop exit
PB: predicated region body
PF: predicated region fallthrough
CT: control target
= control target key end

     0   :  { %s3972_s0 = inlined_call_operand.vmem [shape: f32[2,16,128], index: 0, kind: input, shape index: {}]   ;;  %s3973_s1 = inlined_call_operand.vmem [shape: f32[16,128], index: 1, kind: input, shape index: {}]   ;;  %s3974_s2 = inlined_call_operand.vmem [shape: f32[16,128], index: 2, kind: input, shape index: {}]   ;;  %s3975_s3 = inlined_call_operand.vmem [shape: f32[1,128], index: 3, kind: input, shape index: {}]   ;;  %s3976_s4 = inlined_call_operand.vmem [shape: bf16[128,256], index: 4, kind: input, shape index: {}]   ;;  %s3977_s5 = inlined_call_operand.vmem [shape: bf16[128,256], index: 5, kind: input, shape index: {}]   ;;  %s3978_s6 = inlined_call_operand.vmem [shape: bf16[256,128], index: 6, kind: input, shape index: {}]   ;;  %s3979_s7 = inlined_call_operand.vmem [shape: f32[1,128], index: 7, kind: input, shape index: {}]   ;;  %s3980_s8 = inlined_call_operand.vmem [shape: bf16[128,1024], index: 8, kind: input, shape index: {}]   ;;  %s3981_s9 = inlined_call_operand.vmem [shape: bf16[512,128], index: 9, kind: input, shape index: {}]   ;;  %s3982_s10 = inlined_call_operand.vmem [shape: f32[1,128], index: 10, kind: input, shape index: {}]   ;;  %s3983_s11 = inlined_call_operand.hbm [shape: f32[2,16,128], index: 11, kind: output, shape index: {}]  }
   0x1   :  { %3991 = sst [smem:[#allocation14_spill]] %s3972_s0 }
   0x2   :  { %16 = vsyncpa [#allocation5], 0 }
   0x3   :  { %18 = vsyncpa [#allocation5 + $0x1], 0  ;;  %s3045_s17 = smov 0   ;;  %s3047_s18 = smov 0  }
   0x4   :  { %s3049_s19 = smov 0   ;;  %s3051_s20 = smov 0  }
   0x5   :  { %s3053_s21 = smov 0   ;;  %s3055_s22 = smov 0  }
   0x6   :  { %s3057_s23 = smov 0   ;;  %s3059_s24 = smov 0  }
   0x7 LB: > { %3992 = sst [smem:[#allocation7_spill]] %s2959_s19  ;;  %s2022_s25 = sadd.s32 4294967295, %s2979_s24   ;;  %s2979_s24 = sphi %s3059_s24, %s24_s24   ;;  %s2975_s23 = sphi %s3057_s23, %s4011_s23   ;;  %s2971_s22 = sphi %s3055_s22, %s4010_s22   ;;  %s2967_s21 = sphi %s3053_s21, %s4009_s21   ;;  %s2963_s20 = sphi %s3051_s20, %s4014_s20   ;;  %s2959_s19 = sphi %s3049_s19, %s4007_s19   ;;  %s2955_s18 = sphi %s3047_s18, %s4013_s18   ;;  %s2951_s17 = sphi %s3045_s17, %s4012_s17  }
   0x8   : > { %3993 = sst [smem:[#allocation8_spill]] %s2971_s22  ;;  %s2023_s26 = sadd.s32 4294967294, %s2979_s24  }
   0x9   : > { %3994 = sst [smem:[#allocation9_spill]] %s2975_s23  ;;  %s33_s27 = sadd.s32 1, %s2971_s22 }
   0xa   : > { %p34_p0 = scmp.ge.s32.totalorder %s33_s27, 2  ;;  %s36_s28 = sadd.s32 1, %s2975_s23 }
   0xb   : > { %p291_p1 = scmp.ne.s32.totalorder %s2959_s19, %s2955_s18  ;;  %p292_p2 = scmp.eq.s32.totalorder %s2022_s25, 3 }
   0xc   : > { %s4016_s27 = smov (%p34_p0, %s33_s27), 0  ;;  %s4018_s28 = smov (!%p34_p0, %s36_s28), %s2975_s23 }
   0xd   : > { %3995 = sst [smem:[#allocation10_spill]] %s4016_s27  ;;  %s277_s29 = ssub.s32 %s2971_s22, %s4016_s27 }
   0xe   : > { %p3096_p3 = por %p292_p2, %p291_p1  ;;  %p38_p4 = scmp.ge.s32.totalorder %s4018_s28, 2 }
   0xf   : > { %p297_p5 = scmp.ne.s32.totalorder %s2955_s18, %s2951_s17  ;;  %p298_p6 = scmp.eq.s32.totalorder %s2023_s26, 3 }
  0x10   : > { %p2026_p7 = scmp.ge.s32.totalorder %s2979_s24, 1  ;;  %s4020_s28 = smov (%p38_p4, %s4018_s28), 0 }
  0x11   : > { %3997 = sst [smem:[#allocation11_spill]] %s4020_s28  ;;  %p3105_p8 = por %p298_p6, %p297_p5 }
  0x12   : > { %p354_p9 = scmp.lt.s32.totalorder %s2979_s24, 5  ;;  %s276_s13 = ssub.s32 %s2975_s23, %s4020_s28 }
  0x13   : > { %s3998_s12 = scalar_select %p3105_p8, 1, 0 }
  0x14   : > { %s281_s14 = sadd.s32 1, %s2959_s19  ;;  %s278_s15 = sor.u32 %s277_s29, %s276_s13 }
  0x15   : > { %3999 = sst [smem:[#allocation12_spill]] %s3998_s12  ;;  %p355_p10 = pnand %p2026_p7, %p354_p9 }
  0x16   : > { %p279_p11 = scmp.eq.s32.totalorder %s278_s15, 0  ;;  %s3987_s25 = sand.u32 (!%p355_p10), 1, %s2955_s18  }
  0x17   : > { %358 = sbr.rel (%p355_p10) target bundleno = 2094 (0x82e), region = 64  ;;  %p394_p12 = scmp.lt.s32.totalorder (!%p355_p10), %s2967_s21, 1 }
  0x18   : > { %s3114_s16 = scalar_select %p279_p11, %s2959_s19, %s281_s14  }
  0x19   : > { %s3120_s26 = sshll.u32 (!%p355_p10), %s3987_s25, 3  ;;  %s3123_s27 = sshll.u32 (!%p355_p10), %s2963_s20, 3 }
  0x1a   : > { %4000 = sst [smem:[#allocation13_spill]] %s3114_s16  ;;  %p2031_p13 = scmp.ne.s32.totalorder (!%p355_p10), %s2963_s20, 0 }
  0x1b   : > { %s4001_s0 = sld [smem:[#allocation14_spill]] (!%p355_p10) }
  0x1c   : > { %s395_s28 = scalar_select %p394_p12, %s2967_s21, 1 }
  0x1d   : > { %404 = sbr.rel (%p2031_p13) target bundleno = 445 (0x1bd), region = 68 }
  0x1e   : > { %s2623_s29 = sshll.u32 %s395_s28, 4  ;;  %s2982_s28 = smov (!%p2031_p13), 64  }
  0x21   : > { %s3129_s14 = scalar_lea.vmem %s4001_s0, %s2623_s29 }
  0x22   : > { %v3134_v0 = vld [vmem:[%s3129_s14] sm:$0xff]  ;;  %v3139_v2 = vld [vmem:[%s3129_s14 + $0x8] sm:$0xff]  ;;  %v2090_v4 = vld [vmem:[%s3977_s5 + $0x70] sm:$0xf]  ;;  %v2981_v9 = vmov 128.0  }
  0x23   : > { %v407_v1 = vmul.f32 %v3134_v0, %v3134_v0  ;;  %v408_v3 = vmul.f32 %v3139_v2, %v3139_v2  ;;  %v2639_v5 = vld [vmem:[%s3977_s5 + $0x74] sm:$0xf0]  ;;  %v2638_v6 = vld [vmem:[%s3977_s5 + $0x74] sm:$0xf]  ;;  %v2092_v8 = vld [vmem:[%s3977_s5 + $0x78] sm:$0xf0]  ;;  %2855 = vrcp.f32 %v2981_v9 }
  0x24   : > { %v2091_v7 = vor.u32 %v2639_v5, %v2090_v4  ;;  %v2095_v10 = vor.u32 %v2638_v6, %v2092_v8  ;;  %v2082_v11 = vld [vmem:[%s3977_s5 + $0x60] sm:$0xf]  ;;  %v2637_v12 = vld [vmem:[%s3977_s5 + $0x64] sm:$0xf0]  ;;  %v2636_v13 = vld [vmem:[%s3977_s5 + $0x64] sm:$0xf] }
  0x25   : > { %409 = vadd.xlane.f32.xlu0 %v407_v1  ;;  %v2083_v14 = vor.u32 %v2637_v12, %v2082_v11  ;;  %v2084_v15 = vld [vmem:[%s3977_s5 + $0x68] sm:$0xf0]  ;;  %v2074_v18 = vld [vmem:[%s3977_s5 + $0x50] sm:$0xf]  ;;  %v2635_v19 = vld [vmem:[%s3977_s5 + $0x54] sm:$0xf0] }
  0x26   : > { %550 = vmatpush.bf16.msra.mxu0 %v2091_v7  ;;  %564 = vmatpush.bf16.msra.mxu1 %v2095_v10  ;;  %v2087_v16 = vor.u32 %v2636_v13, %v2084_v15  ;;  %v2634_v20 = vld [vmem:[%s3977_s5 + $0x54] sm:$0xf]  ;;  %v2075_v21 = vor.u32 %v2635_v19, %v2074_v18  ;;  %v2076_v22 = vld [vmem:[%s3977_s5 + $0x58] sm:$0xf0]  ;;  %v2066_v25 = vld [vmem:[%s3977_s5 + $0x40] sm:$0xf] }
  0x27   : > { %v2079_v23 = vor.u32 %v2634_v20, %v2076_v22  ;;  %v2633_v26 = vld [vmem:[%s3977_s5 + $0x44] sm:$0xf0]  ;;  %v2632_v27 = vld [vmem:[%s3977_s5 + $0x44] sm:$0xf]  ;;  %v2068_v29 = vld [vmem:[%s3977_s5 + $0x48] sm:$0xf0] }
  0x28   : > { %v2067_v28 = vor.u32 %v2633_v26, %v2066_v25  ;;  %v2071_v30 = vor.u32 %v2632_v27, %v2068_v29  ;;  %v2058_v32 = vld [vmem:[%s3977_s5 + $0x30] sm:$0xf]  ;;  %v2631_v33 = vld [vmem:[%s3977_s5 + $0x34] sm:$0xf0]  ;;  %v2630_v34 = vld [vmem:[%s3977_s5 + $0x34] sm:$0xf] }
  0x29   : > { %v2856_v17 = vpop.eup %2855  ;;  %v2059_v35 = vor.u32 %v2631_v33, %v2058_v32  ;;  %v2060_v36 = vld [vmem:[%s3977_s5 + $0x38] sm:$0xf0]  ;;  %v2050_v39 = vld [vmem:[%s3977_s5 + $0x20] sm:$0xf]  ;;  %v2629_v40 = vld [vmem:[%s3977_s5 + $0x24] sm:$0xf0] }
  0x2a   : > { %551 = vmatpush.bf16.msra.mxu0 %v2083_v14  ;;  %565 = vmatpush.bf16.msra.mxu1 %v2087_v16  ;;  %v414_v24 = vmul.f32 128.0, %v2856_v17  ;;  %v2063_v37 = vor.u32 %v2630_v34, %v2060_v36  ;;  %v2628_v41 = vld [vmem:[%s3977_s5 + $0x24] sm:$0xf]  ;;  %v2051_v42 = vor.u32 %v2629_v40, %v2050_v39  ;;  %v2052_v43 = vld [vmem:[%s3977_s5 + $0x28] sm:$0xf0]  ;;  %vm418_vm0 = vweird.f32 %v2856_v17 }
  0x2b   : > { %v2055_v44 = vor.u32 %v2628_v41, %v2052_v43  ;;  %v2042_v46 = vld [vmem:[%s3977_s5 + $0x10] sm:$0xf]  ;;  %v2627_v47 = vld [vmem:[%s3977_s5 + $0x14] sm:$0xf0]  ;;  %v2626_v48 = vld [vmem:[%s3977_s5 + $0x14] sm:$0xf] }
  0x2c   : > { %v415_v31 = vsub.f32 1.0, %v414_v24  ;;  %v2043_v49 = vor.u32 %v2627_v47, %v2042_v46  ;;  %v2044_v50 = vld [vmem:[%s3977_s5 + $0x18] sm:$0xf0]  ;;  %v2034_v51 = vld [vmem:[%s3977_s5] sm:$0xf]  ;;  %v581_v32 = vld [vmem:[%s3974_s2 + $0x8] sm:$0xff] }
  0x2d   : > { %411 = vadd.xlane.f32.xlu0 %v408_v3  ;;  %v2625_v52 = vld [vmem:[%s3977_s5 + $0x4] sm:$0xf0]  ;;  %v2047_v53 = vor.u32 %v2626_v48, %v2044_v50  ;;  %v2624_v54 = vld [vmem:[%s3977_s5 + $0x4] sm:$0xf]  ;;  %v2036_v55 = vld [vmem:[%s3977_s5 + $0x8] sm:$0xf0] }
  0x2e   : > { %552 = vmatpush.bf16.msra.mxu0 %v2075_v21  ;;  %566 = vmatpush.bf16.msra.mxu1 %v2079_v23  ;;  %v416_v38 = vmul.f32 %v2856_v17, %v415_v31  ;;  %v2035_v57 = vor.u32 %v2625_v52, %v2034_v51  ;;  %v2039_v58 = vor.u32 %v2624_v54, %v2036_v55  ;;  %v446_v12 = vld [vmem:[%s3975_s3] sm:$0x1]  ;;  %v579_v31 = vld [vmem:[%s3973_s1 + $0x8] sm:$0xff] }
  0x2f   : > { %v447_v14 = vadd.f32 1.0, %v446_v12 }
  0x30   : > { %v417_v45 = vadd.f32 %v2856_v17, %v416_v38 }
  0x31   : > { %v449_v19 = vperm.slane %v447_v14, 0 }
  0x32   : > { %553 = vmatpush.bf16.msra.mxu0 %v2067_v28  ;;  %567 = vmatpush.bf16.msra.mxu1 %v2071_v30  ;;  %v419_v56 = vsel %vm418_vm0, %v2856_v17, %v417_v45 }
  0x36   : > { %554 = vmatpush.bf16.msra.mxu0 %v2059_v35  ;;  %568 = vmatpush.bf16.msra.mxu1 %v2063_v37 }
  0x3a   : > { %555 = vmatpush.bf16.msra.mxu0 %v2051_v42  ;;  %569 = vmatpush.bf16.msra.mxu1 %v2055_v44 }
  0x3e   : > { %556 = vmatpush.bf16.msra.mxu0 %v2043_v49  ;;  %570 = vmatpush.bf16.msra.mxu1 %v2047_v53 }
  0x42   : > { %557 = vmatpush.bf16.msra.mxu0 %v2035_v57  ;;  %571 = vmatpush.bf16.msra.mxu1 %v2039_v58 }
  0x98   : > { %v410_v59 = vpop.xlane.xlu0 %409 }
  0x99   : > { %v420_v60 = vmul.f32 %v419_v56, %v410_v59 }
  0x9b   : > { %v422_v61 = vadd.f32 1e-06, %v420_v60 }
  0x9d   : > { %2857 = vrsqrt.f32 %v422_v61  ;;  %vm430_vm2 = vweird.f32 %v422_v61 }
  0xa0   : > { %v412_v62 = vpop.xlane.xlu0 %411 }
  0xa1   : > { %v421_v63 = vmul.f32 %v419_v56, %v412_v62 }
  0xa3   : > { %v2858_v1 = vpop.eup %2857  ;;  %v423_v3 = vadd.f32 1e-06, %v421_v63 }
  0xa4   : > { %v425_v4 = vmul.f32 %v2858_v1, %v422_v61  ;;  %vm431_vm1 = vweird.f32 %v2858_v1 }
  0xa5   : > { %2859 = vrsqrt.f32 %v423_v3  ;;  %vm432_vm3 = vmor %vm430_vm2, %vm431_vm1  ;;  %vm440_vm5 = vweird.f32 %v423_v3 }
  0xa6   : > { %v426_v5 = vmul.f32 %v2858_v1, %v425_v4 }
  0xa8   : > { %v427_v6 = vmul.f32 0.5, %v426_v5 }
  0xaa   : > { %v428_v7 = vsub.f32 1.5, %v427_v6 }
  0xab   : > { %v2860_v8 = vpop.eup %2859 }
  0xac   : > { %v435_v9 = vmul.f32 %v2860_v8, %v423_v3  ;;  %v429_v10 = vmul.f32 %v2858_v1, %v428_v7  ;;  %vm441_vm4 = vweird.f32 %v2860_v8 }
  0xad   : > { %vm442_vm6 = vmor %vm440_vm5, %vm441_vm4 }
  0xae   : > { %v436_v11 = vmul.f32 %v2860_v8, %v435_v9  ;;  %v433_v16 = vsel %vm432_vm3, %v2858_v1, %v429_v10 }
  0xaf   : > { %v444_v18 = vmul.f32 %v433_v16, %v3134_v0  ;;  %v580_v0 = vld [vmem:[%s3974_s2] sm:$0xff] }
  0xb0   : > { %v437_v13 = vmul.f32 0.5, %v436_v11 }
  0xb1   : > { %v451_v22 = vmul.f32 %v449_v19, %v444_v18 }
  0xb2   : > { %v438_v15 = vsub.f32 1.5, %v437_v13 }
  0xb4   : > { %v439_v17 = vmul.f32 %v2860_v8, %v438_v15 }
  0xb6   : > { %v443_v20 = vsel %vm442_vm6, %v2860_v8, %v439_v17 }
  0xb7   : > { %v445_v21 = vmul.f32 %v443_v20, %v3139_v2  ;;  %v578_v2 = vld [vmem:[%s3973_s1] sm:$0xff] }
  0xb9   : > { %v452_v23 = vmul.f32 %v449_v19, %v445_v21 }
  0xbb   : > { %v453_v24 = vpack.c.bf16 %v452_v23, %v451_v22 }
  0xbd   : > { %558 = vmatmul.bf16.vlgmr.msra.gmra.mxu0 %v453_v24  ;;  %572 = vmatmul.bf16.vlgmr.msra.gmra.mxu1 %v453_v24 }
 0x13a   : > { %v559_v25 = vpop.f32.mrf.mxu0  ;;  %v573_v26 = vpop.f32.mrf.mxu1 }
 0x13b   : > { %584 = vrot.lane.b32.xlu1 %v559_v25, %s2982_s28  ;;  %v582_v35 = vmul.f32 %v578_v2, %v559_v25 }
 0x142   : > { %v561_v27 = vpop.f32.mrf.mxu0  ;;  %v575_v28 = vpop.f32.mrf.mxu1 }
 0x143   : > { %v2778_v29 = vpack.c.bf16 %v575_v28, %v573_v26  ;;  %586 = vrot.lane.b32.xlu1 %v561_v27, %s2982_s28  ;;  %v583_v36 = vmul.f32 %v579_v31, %v561_v27 }
 0x145   : > { %2779 = vst [vmem:[#allocation3] sm:$0xff] %v2778_v29  }
 0x1ad   : > { %v585_v30 = vpop.permute.xlu1 %584 }
 0x1ae   : > { %v588_v33 = vmul.f32 %v585_v30, %v580_v0 }
 0x1b0   : > { %v590_v38 = vadd.f32 %v588_v33, %v582_v35 }
 0x1b5   : > { %v587_v34 = vpop.permute.xlu1 %586 }
 0x1b6   : > { %v589_v37 = vmul.f32 %v587_v34, %v581_v32 }
 0x1b8   : > { %v591_v39 = vadd.f32 %v589_v37, %v583_v36 }
 0x1ba   : > { %v2773_v40 = vpack.c.bf16 %v591_v39, %v590_v38 }
 0x1bc   : > { %2774 = vst [vmem:[#allocation2] sm:$0xff] %v2773_v40  }
 0x1bd PF: > { %s600_s19 = scalar_lea.vmem %s3129_s14, %s3123_s27  ;;  %v2154_v41 = vld [vmem:[%s3976_s4 + $0x70] sm:$0xf]  ;;  %v2655_v42 = vld [vmem:[%s3976_s4 + $0x74] sm:$0xf0]  ;;  %v2654_v43 = vld [vmem:[%s3976_s4 + $0x74] sm:$0xf]  ;;  %s754_s22 = scalar_lea.vmem %s3973_s1, %s3123_s27 }
 0x1be   : > { %v3267_v44 = vld [vmem:[%s600_s19] sm:$0xff]  ;;  %v2155_v45 = vor.u32 %v2655_v42, %v2154_v41  ;;  %v2156_v46 = vld [vmem:[%s3976_s4 + $0x78] sm:$0xf0]  ;;  %v2653_v50 = vld [vmem:[%s3976_s4 + $0x64] sm:$0xf0]  ;;  %v2983_v58 = vmov 128.0   ;;  %s756_s19 = scalar_lea.vmem %s3974_s2, %s3123_s27 }
 0x1bf   : > { %v602_v47 = vmul.f32 %v3267_v44, %v3267_v44  ;;  %v2159_v48 = vor.u32 %v2654_v43, %v2156_v46  ;;  %v2146_v49 = vld [vmem:[%s3976_s4 + $0x60] sm:$0xf]  ;;  %v2652_v51 = vld [vmem:[%s3976_s4 + $0x64] sm:$0xf]  ;;  %v2148_v53 = vld [vmem:[%s3976_s4 + $0x68] sm:$0xf0]  ;;  %2861 = vrcp.f32 %v2983_v58 }
 0x1c0   : > { %728 = vmatpush.bf16.msra.mxu0 %v2155_v45  ;;  %v2147_v52 = vor.u32 %v2653_v50, %v2146_v49  ;;  %v2151_v54 = vor.u32 %v2652_v51, %v2148_v53  ;;  %v2138_v55 = vld [vmem:[%s3976_s4 + $0x50] sm:$0xf]  ;;  %v2651_v56 = vld [vmem:[%s3976_s4 + $0x54] sm:$0xf0]  ;;  %v2650_v57 = vld [vmem:[%s3976_s4 + $0x54] sm:$0xf] }
 0x1c1   : > { %603 = vadd.xlane.f32.xlu0 %v602_v47  ;;  %741 = vmatpush.bf16.msra.mxu1 %v2159_v48  ;;  %v2139_v59 = vor.u32 %v2651_v56, %v2138_v55  ;;  %v2140_v60 = vld [vmem:[%s3976_s4 + $0x58] sm:$0xf0]  ;;  %v2130_v62 = vld [vmem:[%s3976_s4 + $0x40] sm:$0xf]  ;;  %v2649_v63 = vld [vmem:[%s3976_s4 + $0x44] sm:$0xf0] }
 0x1c2   : > { %v2143_v61 = vor.u32 %v2650_v57, %v2140_v60  ;;  %v2648_v1 = vld [vmem:[%s3976_s4 + $0x44] sm:$0xf]  ;;  %v2131_v3 = vor.u32 %v2649_v63, %v2130_v62  ;;  %v2132_v4 = vld [vmem:[%s3976_s4 + $0x48] sm:$0xf0]  ;;  %v2122_v7 = vld [vmem:[%s3976_s4 + $0x30] sm:$0xf] }
 0x1c3   : > { %v2135_v5 = vor.u32 %v2648_v1, %v2132_v4  ;;  %v2647_v8 = vld [vmem:[%s3976_s4 + $0x34] sm:$0xf0]  ;;  %v2646_v9 = vld [vmem:[%s3976_s4 + $0x34] sm:$0xf]  ;;  %v2124_v11 = vld [vmem:[%s3976_s4 + $0x38] sm:$0xf0] }
 0x1c4   : > { %729 = vmatpush.bf16.msra.mxu0 %v2147_v52  ;;  %v2123_v10 = vor.u32 %v2647_v8, %v2122_v7  ;;  %v2127_v13 = vor.u32 %v2646_v9, %v2124_v11  ;;  %v2114_v14 = vld [vmem:[%s3976_s4 + $0x20] sm:$0xf]  ;;  %v2645_v15 = vld [vmem:[%s3976_s4 + $0x24] sm:$0xf0]  ;;  %v2644_v16 = vld [vmem:[%s3976_s4 + $0x24] sm:$0xf]  ;;  %v810_v8 = vstv %s3123_s27 }
 0x1c5   : > { %742 = vmatpush.bf16.msra.mxu1 %v2151_v54  ;;  %v2862_v6 = vpop.eup %2861  ;;  %v2115_v17 = vor.u32 %v2645_v15, %v2114_v14  ;;  %v2116_v18 = vld [vmem:[%s3976_s4 + $0x28] sm:$0xf0]  ;;  %v2106_v21 = vld [vmem:[%s3976_s4 + $0x10] sm:$0xf]  ;;  %v2643_v22 = vld [vmem:[%s3976_s4 + $0x14] sm:$0xf0] }
 0x1c6   : > { %v606_v12 = vmul.f32 128.0, %v2862_v6  ;;  %v2119_v20 = vor.u32 %v2644_v16, %v2116_v18  ;;  %v2642_v23 = vld [vmem:[%s3976_s4 + $0x14] sm:$0xf]  ;;  %v2107_v24 = vor.u32 %v2643_v22, %v2106_v21  ;;  %v2108_v25 = vld [vmem:[%s3976_s4 + $0x18] sm:$0xf0]  ;;  %vm610_vm7 = vweird.f32 %v2862_v6  ;;  %v2656_v51 = vld [vmem:[#allocation2] sm:$0xff] }
 0x1c7   : > { %v2098_v26 = vld [vmem:[%s3976_s4] sm:$0xf]  ;;  %v2641_v27 = vld [vmem:[%s3976_s4 + $0x4] sm:$0xf0]  ;;  %v2111_v28 = vor.u32 %v2642_v23, %v2108_v25  ;;  %v2640_v29 = vld [vmem:[%s3976_s4 + $0x4] sm:$0xf] }
 0x1c8   : > { %730 = vmatpush.bf16.msra.mxu0 %v2139_v59  ;;  %v607_v19 = vsub.f32 1.0, %v606_v12  ;;  %v2100_v30 = vld [vmem:[%s3976_s4 + $0x8] sm:$0xf0]  ;;  %v2099_v2 = vor.u32 %v2641_v27, %v2098_v26  ;;  %v625_v40 = vld [vmem:[%s3975_s3] sm:$0x1]  ;;  %s2984_s25 = smov 64  }
 0x1c9   : > { %743 = vmatpush.bf16.msra.mxu1 %v2143_v61  ;;  %v2103_v31 = vor.u32 %v2640_v29, %v2100_v30  ;;  %v626_v42 = vadd.f32 1.0, %v625_v40  ;;  %v755_v56 = vld [vmem:[%s754_s22] sm:$0xff]  ;;  %vm819_vm12 = vcmask 130048   ;;  %v2661_v40 = vld [vmem:[%s3978_s6 + $0x18] sm:$0xff]  ;;  %s2619_s13 = sshll.u32 %s2967_s21, 1  ;;  %s4004_s27 = sand.u32 1, %s2955_s18  }
 0x1ca   : > { %v608_v0 = vmul.f32 %v2862_v6, %v607_v19  ;;  %v757_v57 = vld [vmem:[%s756_s19] sm:$0xff]  ;;  %s1937_s15 = sadd.s32 %s2963_s20, %s2619_s13  ;;  %s4002_s20 = scalar_lea.vmem [#allocation4], %s3120_s26 }
 0x1cb   : > { %v628_v46 = vperm.slane %v626_v42, 0  ;;  %v2660_v42 = vld [vmem:[%s3978_s6 + $0x10] sm:$0xff]  ;;  %s2620_s0 = sshll.u32 %s1937_s15, 3  ;;  %s1941_s16 = sshll.u32 %s4002_s20, 4  ;;  %s1942_s16 = int_to_ptr.vmem [resolvable:$true] %s1941_s16 }
 0x1cc   : > { %731 = vmatpush.bf16.msra.mxu0 %v2131_v3  ;;  %v609_v32 = vadd.f32 %v2862_v6, %v608_v0  ;;  %v2657_v0 = vld [vmem:[#allocation3] sm:$0xff]  ;;  %s1939_s21 = scalar_lea.hbm %s3983_s11, %s2620_s0  ;;  %s4003_s19 = smov %s4002_s20 }
 0x1cd   : > { %744 = vmatpush.bf16.msra.mxu1 %v2135_v5  ;;  %860 = vmatpush.bf16.msra.mxu2 %v2657_v0  ;;  %s1943_s12 = sshll.u32 %s1939_s21, 4  ;;  %s1927_s28 = scalar_lea.sflag [#allocation5], %s4004_s27  ;;  %s1944_s12 = int_to_ptr.hbm [resolvable:$true] %s1943_s12 }
 0x1ce   : > { %v3358_v33 = vsel %vm610_vm7, %v2862_v6, %v609_v32  ;;  %v808_v6 = vlaneseq  ;;  %876 = vmatpush.bf16.msra.mxu3 %v2657_v0  ;;  %v2664_v32 = vld [vmem:[%s3978_s6 + $0x30] sm:$0xff]  ;;  %v2715_v0 = vld [vmem:[%s3980_s8 + $0x14c] sm:$0xf]  ;;  %s2899_s29 = sshra.s32 %s1944_s12, 4  ;;  %s2900_s29 = int_to_ptr.hbm [resolvable:$true] %s2899_s29 }
 0x1cf   : > { %s2901_s13 = scalar_lea.hbm %s2900_s29, 8  ;;  %p2906_p4 = scmp.lt.s32.totalorder %s2900_s29, %s3983_s11 }
 0x1d0   : > { %732 = vmatpush.bf16.msra.mxu0 %v2123_v10  ;;  %v809_v7 = vshrl.u32 %v808_v6, 7  ;;  %v813_v10 = vand.u32 127, %v808_v6  ;;  %v2735_v6 = vld [vmem:[%s3980_s8 + $0x1e4] sm:$0xf0]  ;;  %p2902_p0 = scmp.ne.s32.totalorder %s2900_s29, %s2901_s13 }
 0x1d1   : > { %745 = vmatpush.bf16.msra.mxu1 %v2127_v13 }
 0x1d2   : > { %v811_v9 = vadd.s32 %v810_v8, %v809_v7  ;;  %p2903_p1 = pnand %p2902_p0, %p3096_p3 }
 0x1d4   : > { %733 = vmatpush.bf16.msra.mxu0 %v2115_v17  ;;  %vm814_vm11 = vcmp.le.s32.totalorder %v813_v10, %v811_v9  ;;  %v2731_v9 = vld [vmem:[%s3980_s8 + $0x1cc] sm:$0xf]  ;;  %p2904_p2 = pneg %p2903_p1 }
 0x1d5   : > { %746 = vmatpush.bf16.msra.mxu1 %v2119_v20  ;;  %v2470_v10 = vld [vmem:[%s3980_s8 + $0x1e8] sm:$0xf0] }
 0x1d8   : > { %734 = vmatpush.bf16.msra.mxu0 %v2107_v24 }
 0x1d9   : > { %747 = vmatpush.bf16.msra.mxu1 %v2111_v28 }
 0x1dc   : > { %735 = vmatpush.bf16.msra.mxu0 %v2099_v2  ;;  %v2665_v2 = vld [vmem:[%s3978_s6 + $0x38] sm:$0xff] }
 0x1dd   : > { %748 = vmatpush.bf16.msra.mxu1 %v2103_v31  ;;  %v2673_v31 = vld [vmem:[%s3978_s6 + $0x78] sm:$0xff]  ;;  %1025 = vmatpush.bf16.msrb.mxu3 %v2665_v2  ;;  %v2406_v2 = vld [vmem:[%s3980_s8 + $0x168] sm:$0xf0] }
 0x1de   : > { %964 = vmatpush.bf16.msrb.mxu2 %v2673_v31 }
 0x1e0   : > { %787 = vmatpush.bf16.xpose.msrb.mxu0 %v2656_v51 }
 0x1e1   : > { %800 = vmatpush.bf16.xpose.msrb.mxu1 %v2656_v51  ;;  %1026 = vmatpush.bf16.msrb.mxu3 %v2664_v32 }
 0x234   : > { %v604_v34 = vpop.xlane.xlu0 %603 }
 0x235   : > { %v612_v35 = vmul.f32 %v3358_v33, %v604_v34  ;;  %v2672_v34 = vld [vmem:[%s3978_s6 + $0x70] sm:$0xff] }
 0x236   : > { %965 = vmatpush.bf16.msrb.mxu2 %v2672_v34  ;;  %v2364_v34 = vld [vmem:[%s3980_s8 + $0x100] sm:$0xf] }
 0x237   : > { %v613_v36 = vadd.f32 1e-06, %v612_v35  ;;  %v2663_v35 = vld [vmem:[%s3978_s6 + $0x28] sm:$0xff] }
 0x238   : > { %1027 = vmatpush.bf16.msrb.mxu3 %v2663_v35  ;;  %v2710_v35 = vld [vmem:[%s3980_s8 + $0x11c] sm:$0xf0] }
 0x239   : > { %2863 = vrsqrt.f32 %v613_v36  ;;  %vm620_vm9 = vweird.f32 %v613_v36 }
 0x23f   : > { %v2864_v37 = vpop.eup %2863 }
 0x240   : > { %v615_v38 = vmul.f32 %v2864_v37, %v613_v36  ;;  %vm621_vm8 = vweird.f32 %v2864_v37  ;;  %v2671_v36 = vld [vmem:[%s3978_s6 + $0x68] sm:$0xff] }
 0x241   : > { %vm622_vm10 = vmor %vm620_vm9, %vm621_vm8  ;;  %966 = vmatpush.bf16.msrb.mxu2 %v2671_v36  ;;  %v2706_v36 = vld [vmem:[%s3980_s8 + $0x104] sm:$0xf] }
 0x242   : > { %v616_v39 = vmul.f32 %v2864_v37, %v615_v38  ;;  %v2670_v38 = vld [vmem:[%s3978_s6 + $0x60] sm:$0xff] }
 0x244   : > { %v617_v41 = vmul.f32 0.5, %v616_v39 }
 0x245   : > { %967 = vmatpush.bf16.msrb.mxu2 %v2670_v38  ;;  %v2366_v38 = vld [vmem:[%s3980_s8 + $0x120] sm:$0xf0] }
 0x246   : > { %v618_v43 = vsub.f32 1.5, %v617_v41  ;;  %v2669_v41 = vld [vmem:[%s3978_s6 + $0x58] sm:$0xff] }
 0x248   : > { %v619_v45 = vmul.f32 %v2864_v37, %v618_v43 }
 0x249   : > { %968 = vmatpush.bf16.msrb.mxu2 %v2669_v41  ;;  %v2707_v41 = vld [vmem:[%s3980_s8 + $0x10c] sm:$0xf] }
 0x24a   : > { %v623_v47 = vsel %vm622_vm10, %v2864_v37, %v619_v45  ;;  %v2662_v37 = vld [vmem:[%s3978_s6 + $0x20] sm:$0xff] }
 0x24b   : > { %v624_v48 = vmul.f32 %v623_v47, %v3267_v44  ;;  %1028 = vmatpush.bf16.msrb.mxu3 %v2662_v37  ;;  %v2409_v37 = vor.u32 %v2715_v0, %v2406_v2  ;;  %v2238_v2 = vld [vmem:[%s3980_s8 + $0x20] sm:$0xf0] }
 0x24d   : > { %v630_v49 = vmul.f32 %v628_v46, %v624_v48  ;;  %v2659_v48 = vld [vmem:[%s3978_s6 + $0x8] sm:$0xff] }
 0x24f   : > { %v631_v50 = vpack.c.bf16 %v630_v49, %v630_v49  ;;  %1029 = vmatpush.bf16.msrb.mxu3 %v2661_v40  ;;  %v2711_v40 = vld [vmem:[%s3980_s8 + $0x124] sm:$0xf0] }
 0x251   : > { %736 = vmatmul.bf16.vlgmr.msra.gmra.mxu0 %v631_v50  ;;  %749 = vmatmul.bf16.vlgmr.msra.gmra.mxu1 %v631_v50 }
 0x253   : > { %1030 = vmatpush.bf16.msrb.mxu3 %v2660_v42  ;;  %v2374_v42 = vld [vmem:[%s3980_s8 + $0x128] sm:$0xf0] }
 0x257   : > { %1031 = vmatpush.bf16.msrb.mxu3 %v2659_v48 }
 0x2ce   : > { %v737_v52 = vpop.f32.mrf.mxu0  ;;  %v750_v53 = vpop.f32.mrf.mxu1 }
 0x2cf   : > { %764 = vrot.lane.b32.xlu1 %v750_v53, %s2984_s25  ;;  %759 = vrot.lane.b32.xlu0 %v737_v52, %s2984_s25  ;;  %v758_v60 = vmul.f32 %v755_v56, %v737_v52  ;;  %v763_v61 = vmul.f32 %v755_v56, %v750_v53  ;;  %v2668_v52 = vld [vmem:[%s3978_s6 + $0x50] sm:$0xff]  ;;  %v2658_v53 = vld [vmem:[%s3978_s6] sm:$0xff]  ;;  %s2905_s25 = scalar_lea.hbm %s3983_s11, 32 }
 0x2d0   : > { %969 = vmatpush.bf16.msrb.mxu2 %v2668_v52  ;;  %1032 = vmatpush.bf16.msrb.mxu3 %v2658_v53  ;;  %p2907_p5 = scmp.lt.s32.totalorder %s2905_s25, %s2901_s13 }
 0x2d2   : > { %p2908_p6 = por %p2907_p5, %p2906_p4 }
 0x2d4   : > { %p2909_p7 = pnand %p2908_p6, %p2904_p2 }
 0x2d6   : > { %v739_v54 = vpop.f32.mrf.mxu0  ;;  %v752_v55 = vpop.f32.mrf.mxu1 }
 0x2d7   : > { %v2667_v54 = vld [vmem:[%s3978_s6 + $0x48] sm:$0xff]  ;;  %v2666_v55 = vld [vmem:[%s3978_s6 + $0x40] sm:$0xff] }
 0x2d8   : > { %970 = vmatpush.bf16.msrb.mxu2 %v2667_v54 }
 0x2dc   : > { %971 = vmatpush.bf16.msrb.mxu2 %v2666_v55  ;;  %v2332_v55 = vld [vmem:[%s3980_s8 + $0xc0] sm:$0xf] }
 0x341   : > { %v765_v58 = vpop.permute.xlu1 %764  ;;  %v760_v59 = vpop.permute.xlu0 %759 }
 0x342   : > { %v766_v62 = vmul.f32 %v765_v58, %v757_v57  ;;  %v761_v63 = vmul.f32 %v760_v59, %v757_v57 }
 0x344   : > { %v767_v1 = vadd.f32 %v766_v62, %v763_v61  ;;  %v762_v3 = vadd.f32 %v761_v63, %v758_v60  ;;  %v2460_v62 = vld [vmem:[%s3980_s8 + $0x1c0] sm:$0xf] }
 0x345   : > { %v2734_v63 = vld [vmem:[%s3980_s8 + $0x1dc] sm:$0xf0] }
 0x346   : > { %v769_v4 = vpack.c.bf16 %v767_v1, %v767_v1  ;;  %v768_v5 = vpack.c.bf16 %v762_v3, %v762_v3  ;;  %v2730_v1 = vld [vmem:[%s3980_s8 + $0x1c4] sm:$0xf]  ;;  %v2461_v3 = vor.u32 %v2734_v63, %v2460_v62  ;;  %v2699_v63 = vld [vmem:[%s3980_s8 + $0xcc] sm:$0xf] }
 0x348   : > { %788 = vmatmul.bf16.vlgmr.msrb.gmra.mxu0 %v768_v5  ;;  %801 = vmatmul.bf16.vlgmr.msrb.gmra.mxu1 %v769_v4  ;;  %v2462_v4 = vld [vmem:[%s3980_s8 + $0x1e0] sm:$0xf0]  ;;  %v2468_v5 = vld [vmem:[%s3980_s8 + $0x1c8] sm:$0xf] }
 0x349   : > { %v2465_v7 = vor.u32 %v2730_v1, %v2462_v4  ;;  %v2469_v8 = vor.u32 %v2735_v6, %v2468_v5  ;;  %1446 = vmatpush.bf16.msra.mxu0 %v2461_v3  ;;  %v2342_v1 = vld [vmem:[%s3980_s8 + $0xe8] sm:$0xf0]  ;;  %v2300_v4 = vld [vmem:[%s3980_s8 + $0x80] sm:$0xf]  ;;  %v2690_v6 = vld [vmem:[%s3980_s8 + $0x84] sm:$0xf] }
 0x34a   : > { %v2345_v3 = vor.u32 %v2699_v63, %v2342_v1  ;;  %v2694_v5 = vld [vmem:[%s3980_s8 + $0x9c] sm:$0xf0]  ;;  %v2412_v1 = vld [vmem:[%s3980_s8 + $0x150] sm:$0xf] }
 0x34b   : > { %1459 = vmatpush.bf16.msra.mxu1 %v2465_v7  ;;  %v2301_v7 = vor.u32 %v2694_v5, %v2300_v4  ;;  %v2716_v4 = vld [vmem:[%s3980_s8 + $0x154] sm:$0xf] }
 0x3c5   : > { %v789_v11 = vpop.f32.mrf.mxu0  ;;  %v802_v12 = vpop.f32.mrf.mxu1 }
 0x3c6   : > { %v806_v13 = vmul.f32 0.088388346, %v789_v11  ;;  %v807_v14 = vmul.f32 0.088388346, %v802_v12  ;;  %v2428_v11 = vld [vmem:[%s3980_s8 + $0x180] sm:$0xf]  ;;  %v2473_v12 = vor.u32 %v2731_v9, %v2470_v10 }
 0x3c7   : > { %v2308_v9 = vld [vmem:[%s3980_s8 + $0x88] sm:$0xf] }
 0x3c8   : > { %v818_v15 = vsel %vm814_vm11, %v807_v14, -1e+30  ;;  %v817_v16 = vsel %vm814_vm11, %v806_v13, -1e+30  ;;  %v2726_v13 = vld [vmem:[%s3980_s8 + $0x19c] sm:$0xf0] }
 0x3c9   : > { %v823_v17 = vsel %vm819_vm12, %v818_v15, -inf  ;;  %v820_v18 = vsel %vm819_vm12, %v817_v16, -inf  ;;  %v2722_v14 = vld [vmem:[%s3980_s8 + $0x184] sm:$0xf]  ;;  %v2695_v10 = vld [vmem:[%s3980_s8 + $0xa4] sm:$0xf0] }
 0x3ca   : > { %824 = vmax.xlane.f32.xlu2 %v823_v17  ;;  %821 = vmax.xlane.f32.xlu1 %v820_v18  ;;  %v2436_v18 = vld [vmem:[%s3980_s8 + $0x188] sm:$0xf] }
 0x3cd   : > { %v791_v19 = vpop.f32.mrf.mxu0  ;;  %v804_v20 = vpop.f32.mrf.mxu1 }
 0x3ce   : > { %v2727_v19 = vld [vmem:[%s3980_s8 + $0x1a4] sm:$0xf0]  ;;  %v2723_v20 = vld [vmem:[%s3980_s8 + $0x18c] sm:$0xf] }
 0x43d   : > { %v822_v21 = vpop.xlane.xlu1 %821  ;;  %v825_v22 = vpop.xlane.xlu2 %824 }
 0x43e   : > { %v826_v23 = vsub.f32 %v817_v16, %v822_v21  ;;  %v827_v25 = vsub.f32 %v818_v15, %v825_v22  ;;  %v2430_v15 = vld [vmem:[%s3980_s8 + $0x1a0] sm:$0xf0]  ;;  %v2429_v16 = vor.u32 %v2726_v13, %v2428_v11  ;;  %v2437_v21 = vor.u32 %v2727_v19, %v2436_v18  ;;  %v2438_v22 = vld [vmem:[%s3980_s8 + $0x1a8] sm:$0xf0] }
 0x43f   : > { %v2433_v17 = vor.u32 %v2722_v14, %v2430_v15  ;;  %v2691_v13 = vld [vmem:[%s3980_s8 + $0x8c] sm:$0xf]  ;;  %v2682_v18 = vld [vmem:[%s3980_s8 + $0x44] sm:$0xf] }
 0x440   : > { %v828_v24 = vmul.f32 1.442695, %v826_v23  ;;  %v830_v26 = vmul.f32 1.442695, %v827_v25  ;;  %v2396_v23 = vld [vmem:[%s3980_s8 + $0x140] sm:$0xf]  ;;  %v2441_v25 = vor.u32 %v2723_v20, %v2438_v22  ;;  %1447 = vmatpush.bf16.msra.mxu0 %v2429_v16 }
 0x441   : > { %1460 = vmatpush.bf16.msra.mxu1 %v2433_v17  ;;  %v2310_v14 = vld [vmem:[%s3980_s8 + $0xa8] sm:$0xf0]  ;;  %v2268_v16 = vld [vmem:[%s3980_s8 + $0x40] sm:$0xf]  ;;  %v2270_v20 = vld [vmem:[%s3980_s8 + $0x60] sm:$0xf0] }
 0x442   : > { %2865 = vpow2.f32 %v828_v24  ;;  %v2718_v24 = vld [vmem:[%s3980_s8 + $0x15c] sm:$0xf0]  ;;  %v2313_v15 = vor.u32 %v2691_v13, %v2310_v14  ;;  %v2687_v22 = vld [vmem:[%s3980_s8 + $0x64] sm:$0xf0]  ;;  %v2380_v14 = vld [vmem:[%s3980_s8 + $0x110] sm:$0xf] }
 0x443   : > { %2867 = vpow2.f32 %v830_v26  ;;  %v2714_v26 = vld [vmem:[%s3980_s8 + $0x144] sm:$0xf]  ;;  %v2686_v17 = vld [vmem:[%s3980_s8 + $0x5c] sm:$0xf0] }
 0x444   : > { %v2269_v19 = vor.u32 %v2686_v17, %v2268_v16  ;;  %v2708_v16 = vld [vmem:[%s3980_s8 + $0x114] sm:$0xf] }
 0x448   : > { %v2866_v27 = vpop.eup %2865 }
 0x449   : > { %v832_v28 = vsel %vm819_vm12, %v2866_v27, 0.0  ;;  %v2868_v29 = vpop.eup %2867 }
 0x44a   : > { %833 = vadd.xlane.f32.xlu2 %v832_v28  ;;  %v835_v30 = vsel %vm819_vm12, %v2868_v29, 0.0  ;;  %v2404_v28 = vld [vmem:[%s3980_s8 + $0x148] sm:$0xf] }
 0x452   : > { %836 = vadd.xlane.f32.xlu2 %v835_v30  ;;  %v2719_v30 = vld [vmem:[%s3980_s8 + $0x164] sm:$0xf0] }
 0x453   : > { %v2405_v32 = vor.u32 %v2719_v30, %v2404_v28  ;;  %v2236_v28 = vld [vmem:[%s3980_s8] sm:$0xf]  ;;  %v2674_v30 = vld [vmem:[%s3980_s8 + $0x4] sm:$0xf] }
 0x4bd   : > { %v834_v39 = vpop.xlane.xlu2 %833 }
 0x4be   : > { %2869 = vrcp.f32 %v834_v39  ;;  %v2372_v39 = vld [vmem:[%s3980_s8 + $0x108] sm:$0xf] }
 0x4c4   : > { %v2870_v43 = vpop.eup %2869 }
 0x4c5   : > { %v837_v45 = vpop.xlane.xlu2 %836  ;;  %v840_v46 = vmul.f32 %v2870_v43, %v2866_v27  ;;  %v2398_v27 = vld [vmem:[%s3980_s8 + $0x160] sm:$0xf0]  ;;  %v2365_v43 = vor.u32 %v2710_v35, %v2364_v34  ;;  %v2241_v34 = vor.u32 %v2674_v30, %v2238_v2  ;;  %v2350_v30 = vld [vmem:[%s3980_s8 + $0xf0] sm:$0xf0]  ;;  %v2705_v2 = vld [vmem:[%s3980_s8 + $0xf4] sm:$0xf0] }
 0x4c6   : > { %2871 = vrcp.f32 %v837_v45  ;;  %v2401_v31 = vor.u32 %v2714_v26, %v2398_v27  ;;  %v2369_v45 = vor.u32 %v2706_v36, %v2366_v38  ;;  %v2278_v26 = vld [vmem:[%s3980_s8 + $0x68] sm:$0xf0]  ;;  %v2476_v38 = vld [vmem:[%s3980_s8 + $0x1d0] sm:$0xf] }
 0x4c7   : > { %v842_v47 = vpack.c.bf16 %v840_v46, %v840_v46  ;;  %v2373_v46 = vor.u32 %v2711_v40, %v2372_v39  ;;  %v2675_v36 = vld [vmem:[%s3980_s8 + $0xc] sm:$0xf]  ;;  %v2736_v40 = vld [vmem:[%s3980_s8 + $0x1ec] sm:$0xf0] }
 0x4c8   : > { %1461 = vmatpush.bf16.msra.mxu1 %v2401_v31  ;;  %v2244_v31 = vld [vmem:[%s3980_s8 + $0x8] sm:$0xf] }
 0x4c9   : > { %2168 = vmatmul.msk.bf16.vlgmr.msra.gmra.mxu2 %vm819_vm12, %v842_v47  ;;  %v2377_v47 = vor.u32 %v2707_v41, %v2374_v42  ;;  %v2732_v41 = vld [vmem:[%s3980_s8 + $0x1d4] sm:$0xf] }
 0x4ca   : > { %1472 = vmatpush.bf16.msra.mxu2 %v2469_v8  ;;  %v2302_v8 = vld [vmem:[%s3980_s8 + $0xa0] sm:$0xf0]  ;;  %v2478_v42 = vld [vmem:[%s3980_s8 + $0x1f0] sm:$0xf0] }
 0x4cb   : > { %v2305_v11 = vor.u32 %v2690_v6, %v2302_v8  ;;  %v2414_v6 = vld [vmem:[%s3980_s8 + $0x170] sm:$0xf0]  ;;  %v2721_v8 = vld [vmem:[%s3980_s8 + $0x174] sm:$0xf0] }
 0x4cc   : > { %v2872_v49 = vpop.eup %2871  ;;  %1462 = vmatpush.bf16.msra.mxu1 %v2369_v45  ;;  %v2481_v45 = vor.u32 %v2732_v41, %v2478_v42 }
 0x4cd   : > { %v841_v50 = vmul.f32 %v2872_v49, %v2868_v29  ;;  %v2397_v29 = vor.u32 %v2718_v24, %v2396_v23  ;;  %v2273_v23 = vor.u32 %v2682_v18, %v2270_v20  ;;  %v2382_v18 = vld [vmem:[%s3980_s8 + $0x130] sm:$0xf0]  ;;  %v2713_v20 = vld [vmem:[%s3980_s8 + $0x134] sm:$0xf0] }
 0x4ce   : > { %1473 = vmatpush.bf16.msra.mxu2 %v2437_v21  ;;  %v2276_v21 = vld [vmem:[%s3980_s8 + $0x48] sm:$0xf] }
 0x4cf   : > { %v843_v51 = vpack.c.bf16 %v841_v50, %v841_v50  ;;  %1448 = vmatpush.bf16.msra.mxu0 %v2397_v29  ;;  %v2277_v24 = vor.u32 %v2687_v22, %v2276_v21  ;;  %v2678_v29 = vld [vmem:[%s3980_s8 + $0x1c] sm:$0xf0]  ;;  %v2385_v21 = vor.u32 %v2708_v16, %v2382_v18 }
 0x4d0   : > { %v2237_v0 = vor.u32 %v2678_v29, %v2236_v28  ;;  %v2700_v28 = vld [vmem:[%s3980_s8 + $0xd4] sm:$0xf] }
 0x4d1   : > { %2169 = vmatmul.msk.bf16.vlgmr.msra.gmra.mxu3 %vm819_vm12, %v843_v51 }
 0x4d2   : > { %1485 = vmatpush.bf16.msra.mxu3 %v2473_v12  ;;  %1474 = vmatpush.bf16.msra.mxu2 %v2405_v32  ;;  %v2309_v12 = vor.u32 %v2695_v10, %v2308_v9  ;;  %v2679_v32 = vld [vmem:[%s3980_s8 + $0x24] sm:$0xf0]  ;;  %v2417_v9 = vor.u32 %v2716_v4, %v2414_v6  ;;  %v2676_v4 = vld [vmem:[%s3980_s8 + $0x14] sm:$0xf] }
 0x4d3   : > { %1449 = vmatpush.bf16.msra.mxu0 %v2365_v43  ;;  %v2245_v35 = vor.u32 %v2679_v32, %v2244_v31  ;;  %v2477_v43 = vor.u32 %v2736_v40, %v2476_v38  ;;  %v2353_v31 = vor.u32 %v2700_v28, %v2350_v30  ;;  %v2696_v38 = vld [vmem:[%s3980_s8 + $0xac] sm:$0xf0]  ;;  %v2318_v40 = vld [vmem:[%s3980_s8 + $0xb0] sm:$0xf0]  ;;  %v2745_v28 = vld [vmem:[%s3981_s9 + $0x38] sm:$0xff] }
 0x4d4   : > { %v2744_v30 = vld [vmem:[%s3981_s9 + $0x30] sm:$0xff] }
 0x4d6   : > { %1486 = vmatpush.bf16.msra.mxu3 %v2441_v25  ;;  %1475 = vmatpush.bf16.msra.mxu2 %v2373_v46  ;;  %v2683_v25 = vld [vmem:[%s3980_s8 + $0x4c] sm:$0xf]  ;;  %v2484_v46 = vld [vmem:[%s3980_s8 + $0x1d8] sm:$0xf] }
 0x4d7   : > { %v2281_v27 = vor.u32 %v2683_v25, %v2278_v26  ;;  %v2348_v26 = vld [vmem:[%s3980_s8 + $0xd0] sm:$0xf] }
 0x4da   : > { %1487 = vmatpush.bf16.msra.mxu3 %v2409_v37  ;;  %v2246_v37 = vld [vmem:[%s3980_s8 + $0x28] sm:$0xf0] }
 0x4db   : > { %v2249_v39 = vor.u32 %v2675_v36, %v2246_v37  ;;  %v2316_v36 = vld [vmem:[%s3980_s8 + $0x90] sm:$0xf] }
 0x4dc   : > { %v2317_v42 = vor.u32 %v2696_v38, %v2316_v36  ;;  %v2768_v36 = vld [vmem:[%s3981_s9 + $0xf0] sm:$0xff]  ;;  %v2750_v38 = vld [vmem:[%s3981_s9 + $0x60] sm:$0xff] }
 0x4de   : > { %1488 = vmatpush.bf16.msra.mxu3 %v2377_v47  ;;  %v2737_v47 = vld [vmem:[%s3980_s8 + $0x1f4] sm:$0xf0] }
 0x4e2   : > { %1489 = vmatpush.bf16.msra.mxu3 %v2345_v3  ;;  %v2720_v3 = vld [vmem:[%s3980_s8 + $0x16c] sm:$0xf0] }
 0x4e3   : > { %v2413_v5 = vor.u32 %v2720_v3, %v2412_v1  ;;  %v2680_v3 = vld [vmem:[%s3980_s8 + $0x2c] sm:$0xf0] }
 0x4e6   : > { %1490 = vmatpush.bf16.msra.mxu3 %v2313_v15  ;;  %v2712_v15 = vld [vmem:[%s3980_s8 + $0x12c] sm:$0xf0] }
 0x4e7   : > { %v2381_v17 = vor.u32 %v2712_v15, %v2380_v14 }
 0x4ea   : > { %1491 = vmatpush.bf16.msra.mxu3 %v2281_v27  ;;  %v2704_v27 = vld [vmem:[%s3980_s8 + $0xec] sm:$0xf0] }
 0x4eb   : > { %v2349_v29 = vor.u32 %v2704_v27, %v2348_v26 }
 0x4ee   : > { %1492 = vmatpush.bf16.msra.mxu3 %v2249_v39  ;;  %v2692_v39 = vld [vmem:[%s3980_s8 + $0x94] sm:$0xf] }
 0x54c   : > { %v862_v56 = vpop.f32.mrf.mxu2 }
 0x54d   : > { %v882_v57 = vpack.c.bf16 %v862_v56, %v862_v56  ;;  %v2702_v56 = vld [vmem:[%s3980_s8 + $0xdc] sm:$0xf0] }
 0x54f   : > { %1033 = vmatmul.bf16.vlgmr.msrb.gmra.mxu3 %v882_v57  ;;  %v2698_v57 = vld [vmem:[%s3980_s8 + $0xc4] sm:$0xf] }
 0x554   : > { %v864_v58 = vpop.f32.mrf.mxu2  ;;  %v878_v59 = vpop.f32.mrf.mxu3 }
 0x555   : > { %v883_v60 = vpack.c.bf16 %v878_v59, %v878_v59  ;;  %v2333_v58 = vor.u32 %v2702_v56, %v2332_v55  ;;  %v2340_v59 = vld [vmem:[%s3980_s8 + $0xc8] sm:$0xf]  ;;  %v2724_v56 = vld [vmem:[%s3980_s8 + $0x194] sm:$0xf] }
 0x557   : > { %972 = vmatmul.bf16.vlgmr.msrb.gmra.mxu2 %v883_v60  ;;  %v2703_v60 = vld [vmem:[%s3980_s8 + $0xe4] sm:$0xf0]  ;;  %1450 = vmatpush.bf16.msra.mxu0 %v2333_v58  ;;  %v2452_v58 = vld [vmem:[%s3980_s8 + $0x198] sm:$0xf] }
 0x558   : > { %v2341_v62 = vor.u32 %v2703_v60, %v2340_v59  ;;  %v2729_v59 = vld [vmem:[%s3980_s8 + $0x1b4] sm:$0xf0]  ;;  %v2725_v60 = vld [vmem:[%s3980_s8 + $0x19c] sm:$0xf] }
 0x55a   : > { %1476 = vmatpush.bf16.msra.mxu2 %v2341_v62  ;;  %v2453_v62 = vor.u32 %v2729_v59, %v2452_v58  ;;  %v2685_v59 = vld [vmem:[%s3980_s8 + $0x5c] sm:$0xf] }
 0x55b   : > { %1451 = vmatpush.bf16.msra.mxu0 %v2301_v7  ;;  %v2420_v7 = vld [vmem:[%s3980_s8 + $0x158] sm:$0xf] }
 0x55c   : > { %v880_v61 = vpop.f32.mrf.mxu3  ;;  %v2421_v10 = vor.u32 %v2721_v8, %v2420_v7  ;;  %v2260_v7 = vld [vmem:[%s3980_s8 + $0x18] sm:$0xf] }
 0x55d   : > { %v2681_v8 = vld [vmem:[%s3980_s8 + $0x34] sm:$0xf0] }
 0x55e   : > { %1477 = vmatpush.bf16.msra.mxu2 %v2309_v12  ;;  %v2422_v12 = vld [vmem:[%s3980_s8 + $0x178] sm:$0xf0] }
 0x55f   : > { %1452 = vmatpush.bf16.msra.mxu0 %v2269_v19  ;;  %v2388_v19 = vld [vmem:[%s3980_s8 + $0x118] sm:$0xf] }
 0x560   : > { %v2389_v22 = vor.u32 %v2713_v20, %v2388_v19 }
 0x562   : > { %1478 = vmatpush.bf16.msra.mxu2 %v2277_v24  ;;  %v2390_v24 = vld [vmem:[%s3980_s8 + $0x138] sm:$0xf0] }
 0x563   : > { %1453 = vmatpush.bf16.msra.mxu0 %v2237_v0  ;;  %v2356_v0 = vld [vmem:[%s3980_s8 + $0xd8] sm:$0xf] }
 0x564   : > { %v2357_v32 = vor.u32 %v2705_v2, %v2356_v0  ;;  %v2752_v0 = vld [vmem:[%s3981_s9 + $0x70] sm:$0xff]  ;;  %v2761_v2 = vld [vmem:[%s3981_s9 + $0xb8] sm:$0xff] }
 0x566   : > { %1479 = vmatpush.bf16.msra.mxu2 %v2245_v35  ;;  %v2358_v35 = vld [vmem:[%s3980_s8 + $0xf8] sm:$0xf0] }
 0x567   : > { %1498 = vmatpush.bf16.msrb.mxu0 %v2477_v43  ;;  %v2321_v43 = vor.u32 %v2692_v39, %v2318_v40  ;;  %v2759_v39 = vld [vmem:[%s3981_s9 + $0xa8] sm:$0xff] }
 0x568   : > { %v2767_v40 = vld [vmem:[%s3981_s9 + $0xe8] sm:$0xff] }
 0x5d2   : > { %v1034_v48 = vpop.f32.mrf.mxu3 }
 0x5da   : > { %v973_v49 = vpop.f32.mrf.mxu2  ;;  %v1036_v50 = vpop.f32.mrf.mxu3 }
 0x5db   : > { %v1035_v51 = vadd.f32 %v1034_v48, %v973_v49  ;;  %v2733_v48 = vld [vmem:[%s3980_s8 + $0x1dc] sm:$0xf]  ;;  %v2485_v49 = vor.u32 %v2737_v47, %v2484_v46  ;;  %v2697_v46 = vld [vmem:[%s3980_s8 + $0xb4] sm:$0xf0] }
 0x5dc   : > { %v2486_v50 = vld [vmem:[%s3980_s8 + $0x1f8] sm:$0xf0] }
 0x5dd   : > { %v3525_v52 = vadd.f32 %v1035_v51, %v3267_v44  ;;  %v2334_v44 = vld [vmem:[%s3980_s8 + $0xe0] sm:$0xf0]  ;;  %v2444_v51 = vld [vmem:[%s3980_s8 + $0x190] sm:$0xf]  ;;  %1524 = vmatpush.bf16.msrb.mxu2 %v2485_v49  ;;  %v2693_v47 = vld [vmem:[%s3980_s8 + $0x9c] sm:$0xf] }
 0x5de   : > { %v2337_v61 = vor.u32 %v2698_v57, %v2334_v44  ;;  %v2446_v57 = vld [vmem:[%s3980_s8 + $0x1b0] sm:$0xf0] }
 0x5df   : > { %v1039_v53 = vmul.f32 %v3525_v52, %v3525_v52  ;;  %v2449_v44 = vor.u32 %v2724_v56, %v2446_v57  ;;  %v2286_v56 = vld [vmem:[%s3980_s8 + $0x70] sm:$0xf0]  ;;  %v2292_v57 = vld [vmem:[%s3980_s8 + $0x58] sm:$0xf] }
 0x5e0   : > { %1463 = vmatpush.bf16.msra.mxu1 %v2337_v61  ;;  %v2454_v61 = vld [vmem:[%s3980_s8 + $0x1b8] sm:$0xf0] }
 0x5e1   : > { %1040 = vadd.xlane.f32.xlu2 %v1039_v53  ;;  %v2728_v53 = vld [vmem:[%s3980_s8 + $0x1ac] sm:$0xf0]  ;;  %v2457_v63 = vor.u32 %v2725_v60, %v2454_v61  ;;  %1525 = vmatpush.bf16.msrb.mxu2 %v2453_v62  ;;  %v2294_v62 = vld [vmem:[%s3980_s8 + $0x78] sm:$0xf0] }
 0x5e2   : > { %v975_v54 = vpop.f32.mrf.mxu2  ;;  %v2445_v55 = vor.u32 %v2728_v53, %v2444_v51  ;;  %v2284_v51 = vld [vmem:[%s3980_s8 + $0x50] sm:$0xf]  ;;  %v2297_v6 = vor.u32 %v2685_v59, %v2294_v62  ;;  %v2762_v59 = vld [vmem:[%s3981_s9 + $0xc0] sm:$0xff] }
 0x5e3   : > { %v2489_v54 = vor.u32 %v2733_v48, %v2486_v50  ;;  %v2326_v50 = vld [vmem:[%s3980_s8 + $0xb8] sm:$0xf0]  ;;  %v2688_v53 = vld [vmem:[%s3980_s8 + $0x6c] sm:$0xf0] }
 0x5e4   : > { %1464 = vmatpush.bf16.msra.mxu1 %v2305_v11  ;;  %1499 = vmatpush.bf16.msrb.mxu0 %v2445_v55  ;;  %v2717_v11 = vld [vmem:[%s3980_s8 + $0x15c] sm:$0xf]  ;;  %v2684_v55 = vld [vmem:[%s3980_s8 + $0x54] sm:$0xf]  ;;  %v2285_v60 = vor.u32 %v2688_v53, %v2284_v51  ;;  %v2747_v51 = vld [vmem:[%s3981_s9 + $0x48] sm:$0xff] }
 0x5e5   : > { %1537 = vmatpush.bf16.msrb.mxu3 %v2489_v54  ;;  %v2425_v13 = vor.u32 %v2717_v11, %v2422_v12  ;;  %1526 = vmatpush.bf16.msrb.mxu2 %v2421_v10  ;;  %v2329_v54 = vor.u32 %v2693_v47, %v2326_v50  ;;  %v2289_v61 = vor.u32 %v2684_v55, %v2286_v56  ;;  %v2262_v10 = vld [vmem:[%s3980_s8 + $0x38] sm:$0xf0]  ;;  %v2748_v47 = vld [vmem:[%s3981_s9 + $0x50] sm:$0xff]  ;;  %v2739_v50 = vld [vmem:[%s3981_s9 + $0x8] sm:$0xff] }
 0x5e6   : > { %v2756_v53 = vld [vmem:[%s3981_s9 + $0x90] sm:$0xff]  ;;  %v2738_v55 = vld [vmem:[%s3981_s9] sm:$0xff] }
 0x5e7   : > { %v2746_v56 = vld [vmem:[%s3981_s9 + $0x40] sm:$0xff] }
 0x5e8   : > { %1465 = vmatpush.bf16.msra.mxu1 %v2273_v23  ;;  %1500 = vmatpush.bf16.msrb.mxu0 %v2413_v5  ;;  %v2709_v23 = vld [vmem:[%s3980_s8 + $0x11c] sm:$0xf]  ;;  %v2254_v5 = vld [vmem:[%s3980_s8 + $0x30] sm:$0xf0] }
 0x5e9   : > { %1538 = vmatpush.bf16.msrb.mxu3 %v2457_v63  ;;  %v2393_v25 = vor.u32 %v2709_v23, %v2390_v24  ;;  %1527 = vmatpush.bf16.msrb.mxu2 %v2389_v22  ;;  %v2252_v63 = vld [vmem:[%s3980_s8 + $0x10] sm:$0xf]  ;;  %v2257_v12 = vor.u32 %v2676_v4, %v2254_v5 }
 0x5ea   : > { %v2253_v11 = vor.u32 %v2680_v3, %v2252_v63 }
 0x5ec   : > { %1466 = vmatpush.bf16.msra.mxu1 %v2241_v34  ;;  %1501 = vmatpush.bf16.msrb.mxu0 %v2381_v17  ;;  %v2701_v34 = vld [vmem:[%s3980_s8 + $0xdc] sm:$0xf]  ;;  %v1055_v17 = vld [vmem:[%s3979_s7] sm:$0x1] }
 0x5ed   : > { %1539 = vmatpush.bf16.msrb.mxu3 %v2425_v13  ;;  %v2361_v37 = vor.u32 %v2701_v34, %v2358_v35  ;;  %1528 = vmatpush.bf16.msrb.mxu2 %v2357_v32  ;;  %v2261_v13 = vor.u32 %v2681_v8, %v2260_v7  ;;  %v1056_v20 = vadd.f32 1.0, %v1055_v17  ;;  %v2743_v32 = vld [vmem:[%s3981_s9 + $0x28] sm:$0xff]  ;;  %v2760_v35 = vld [vmem:[%s3981_s9 + $0xb0] sm:$0xff] }
 0x5ee   : > { %v2751_v34 = vld [vmem:[%s3981_s9 + $0x68] sm:$0xff] }
 0x5ef   : > { %v1058_v23 = vperm.slane %v1056_v20, 0 }
 0x5f0   : > { %1511 = vmatpush.bf16.msrb.mxu1 %v2481_v45  ;;  %1502 = vmatpush.bf16.msrb.mxu0 %v2349_v29  ;;  %v2324_v45 = vld [vmem:[%s3980_s8 + $0x98] sm:$0xf] }
 0x5f1   : > { %1540 = vmatpush.bf16.msrb.mxu3 %v2393_v25  ;;  %v2325_v49 = vor.u32 %v2697_v46, %v2324_v45  ;;  %v2753_v29 = vld [vmem:[%s3981_s9 + $0x78] sm:$0xff]  ;;  %v2766_v45 = vld [vmem:[%s3981_s9 + $0xe0] sm:$0xff]  ;;  %v2740_v46 = vld [vmem:[%s3981_s9 + $0x10] sm:$0xff] }
 0x5f3   : > { %1529 = vmatpush.bf16.msrb.mxu2 %v2325_v49  ;;  %v2765_v49 = vld [vmem:[%s3981_s9 + $0xd8] sm:$0xff] }
 0x5f4   : > { %1512 = vmatpush.bf16.msrb.mxu1 %v2449_v44  ;;  %v2689_v44 = vld [vmem:[%s3980_s8 + $0x74] sm:$0xf0]  ;;  %1503 = vmatpush.bf16.msrb.mxu0 %v2317_v42 }
 0x5f5   : > { %1541 = vmatpush.bf16.msrb.mxu3 %v2361_v37  ;;  %v2293_v1 = vor.u32 %v2689_v44, %v2292_v57  ;;  %v2742_v37 = vld [vmem:[%s3981_s9 + $0x20] sm:$0xff]  ;;  %v2749_v42 = vld [vmem:[%s3981_s9 + $0x58] sm:$0xff]  ;;  %v2755_v57 = vld [vmem:[%s3981_s9 + $0x88] sm:$0xff] }
 0x5f6   : > { %v2754_v44 = vld [vmem:[%s3981_s9 + $0x80] sm:$0xff] }
 0x5f7   : > { %1530 = vmatpush.bf16.msrb.mxu2 %v2293_v1 }
 0x5f8   : > { %1513 = vmatpush.bf16.msrb.mxu1 %v2417_v9  ;;  %v2677_v9 = vld [vmem:[%s3980_s8 + $0x1c] sm:$0xf]  ;;  %1504 = vmatpush.bf16.msrb.mxu0 %v2285_v60 }
 0x5f9   : > { %1542 = vmatpush.bf16.msrb.mxu3 %v2329_v54  ;;  %v2265_v14 = vor.u32 %v2677_v9, %v2262_v10  ;;  %v2764_v54 = vld [vmem:[%s3981_s9 + $0xd0] sm:$0xff] }
 0x5fb   : > { %1531 = vmatpush.bf16.msrb.mxu2 %v2261_v13 }
 0x5fc   : > { %1514 = vmatpush.bf16.msrb.mxu1 %v2385_v21  ;;  %1505 = vmatpush.bf16.msrb.mxu0 %v2253_v11 }
 0x5fd   : > { %1543 = vmatpush.bf16.msrb.mxu3 %v2297_v6 }
 0x600   : > { %1515 = vmatpush.bf16.msrb.mxu1 %v2353_v31  ;;  %v2769_v31 = vld [vmem:[%s3981_s9 + $0xf8] sm:$0xff] }
 0x601   : > { %1544 = vmatpush.bf16.msrb.mxu3 %v2265_v14 }
 0x604   : > { %1516 = vmatpush.bf16.msrb.mxu1 %v2321_v43  ;;  %v2758_v43 = vld [vmem:[%s3981_s9 + $0xa0] sm:$0xff] }
 0x608   : > { %1517 = vmatpush.bf16.msrb.mxu1 %v2289_v61 }
 0x60c   : > { %1518 = vmatpush.bf16.msrb.mxu1 %v2257_v12 }
 0x654   : > { %v1041_v41 = vpop.xlane.xlu2 %1040 }
 0x655   : > { %v1042_v48 = vmul.f32 %v1041_v41, %v3358_v33  ;;  %v2741_v41 = vld [vmem:[%s3981_s9 + $0x18] sm:$0xff] }
 0x657   : > { %v1043_v58 = vadd.f32 1e-06, %v1042_v48  ;;  %v2757_v48 = vld [vmem:[%s3981_s9 + $0x98] sm:$0xff] }
 0x659   : > { %2873 = vrsqrt.f32 %v1043_v58  ;;  %vm1050_vm14 = vweird.f32 %v1043_v58 }
 0x65f   : > { %v2874_v15 = vpop.eup %2873 }
 0x660   : > { %v1045_v16 = vmul.f32 %v2874_v15, %v1043_v58  ;;  %vm1051_vm13 = vweird.f32 %v2874_v15  ;;  %v2763_v58 = vld [vmem:[%s3981_s9 + $0xc8] sm:$0xff] }
 0x661   : > { %vm1052_vm15 = vmor %vm1050_vm14, %vm1051_vm13 }
 0x662   : > { %v1046_v18 = vmul.f32 %v2874_v15, %v1045_v16 }
 0x664   : > { %v1047_v19 = vmul.f32 0.5, %v1046_v18 }
 0x666   : > { %v1048_v21 = vsub.f32 1.5, %v1047_v19 }
 0x668   : > { %v1049_v22 = vmul.f32 %v2874_v15, %v1048_v21 }
 0x66a   : > { %v1053_v24 = vsel %vm1052_vm15, %v2874_v15, %v1049_v22 }
 0x66b   : > { %v1054_v25 = vmul.f32 %v1053_v24, %v3525_v52 }
 0x66d   : > { %v1060_v26 = vmul.f32 %v1058_v23, %v1054_v25 }
 0x66f   : > { %v1061_v27 = vpack.c.bf16 %v1060_v26, %v1060_v26 }
 0x671   : > { %1454 = vmatmul.bf16.vlgmr.msra.gmra.mxu0 %v1061_v27  ;;  %1467 = vmatmul.bf16.vlgmr.msra.gmra.mxu1 %v1061_v27 }
 0x672   : > { %1480 = vmatmul.bf16.vlgmr.msra.gmra.mxu2 %v1061_v27  ;;  %1493 = vmatmul.bf16.vlgmr.msra.gmra.mxu3 %v1061_v27 }
 0x673   : > { %1850 = vmatpush.bf16.msra.mxu0 %v2745_v28  ;;  %1863 = vmatpush.bf16.msra.mxu1 %v2753_v29 }
 0x674   : > { %1876 = vmatpush.bf16.msra.mxu2 %v2761_v2  ;;  %1889 = vmatpush.bf16.msra.mxu3 %v2769_v31 }
 0x677   : > { %1851 = vmatpush.bf16.msra.mxu0 %v2744_v30  ;;  %1864 = vmatpush.bf16.msra.mxu1 %v2752_v0 }
 0x678   : > { %1877 = vmatpush.bf16.msra.mxu2 %v2760_v35  ;;  %1890 = vmatpush.bf16.msra.mxu3 %v2768_v36 }
 0x67b   : > { %1852 = vmatpush.bf16.msra.mxu0 %v2743_v32  ;;  %1865 = vmatpush.bf16.msra.mxu1 %v2751_v34 }
 0x67c   : > { %1878 = vmatpush.bf16.msra.mxu2 %v2759_v39  ;;  %1891 = vmatpush.bf16.msra.mxu3 %v2767_v40 }
 0x67f   : > { %1853 = vmatpush.bf16.msra.mxu0 %v2742_v37  ;;  %1866 = vmatpush.bf16.msra.mxu1 %v2750_v38 }
 0x680   : > { %1879 = vmatpush.bf16.msra.mxu2 %v2758_v43  ;;  %1892 = vmatpush.bf16.msra.mxu3 %v2766_v45 }
 0x681   : > { %1506 = vmatmul.bf16.vlgmr.msrb.gmra.mxu0 %v1061_v27  ;;  %1519 = vmatmul.bf16.vlgmr.msrb.gmra.mxu1 %v1061_v27 }
 0x682   : > { %1532 = vmatmul.bf16.vlgmr.msrb.gmra.mxu2 %v1061_v27  ;;  %1545 = vmatmul.bf16.vlgmr.msrb.gmra.mxu3 %v1061_v27 }
 0x683   : > { %1854 = vmatpush.bf16.msra.mxu0 %v2741_v41  ;;  %1867 = vmatpush.bf16.msra.mxu1 %v2749_v42 }
 0x684   : > { %1880 = vmatpush.bf16.msra.mxu2 %v2757_v48  ;;  %1893 = vmatpush.bf16.msra.mxu3 %v2765_v49 }
 0x687   : > { %1855 = vmatpush.bf16.msra.mxu0 %v2740_v46  ;;  %1868 = vmatpush.bf16.msra.mxu1 %v2748_v47 }
 0x688   : > { %1881 = vmatpush.bf16.msra.mxu2 %v2756_v53  ;;  %1894 = vmatpush.bf16.msra.mxu3 %v2764_v54 }
 0x68b   : > { %1856 = vmatpush.bf16.msra.mxu0 %v2739_v50  ;;  %1869 = vmatpush.bf16.msra.mxu1 %v2747_v51 }
 0x68c   : > { %1882 = vmatpush.bf16.msra.mxu2 %v2755_v57  ;;  %1895 = vmatpush.bf16.msra.mxu3 %v2763_v58 }
 0x68f   : > { %1857 = vmatpush.bf16.msra.mxu0 %v2738_v55  ;;  %1870 = vmatpush.bf16.msra.mxu1 %v2746_v56 }
 0x690   : > { %1883 = vmatpush.bf16.msra.mxu2 %v2754_v44  ;;  %1896 = vmatpush.bf16.msra.mxu3 %v2762_v59 }
 0x6ee   : > { %v1455_v60 = vpop.f32.mrf.mxu0  ;;  %v1468_v61 = vpop.f32.mrf.mxu1 }
 0x6ef   : > { %v1550_v62 = vmul.f32 %v1455_v60, %v1455_v60  ;;  %v1551_v63 = vmul.f32 %v1468_v61, %v1468_v61 }
 0x6f1   : > { %v1554_v1 = vmul.f32 %v1550_v62, %v1455_v60  ;;  %v1555_v3 = vmul.f32 %v1551_v63, %v1468_v61 }
 0x6f3   : > { %v1558_v4 = vmul.f32 0.044715, %v1554_v1  ;;  %v1559_v5 = vmul.f32 0.044715, %v1555_v3 }
 0x6f5   : > { %v1562_v6 = vadd.f32 %v1558_v4, %v1455_v60  ;;  %v1563_v7 = vadd.f32 %v1559_v5, %v1468_v61  ;;  %v1481_v8 = vpop.f32.mrf.mxu2  ;;  %v1494_v9 = vpop.f32.mrf.mxu3 }
 0x6f6   : > { %v1552_v10 = vmul.f32 %v1481_v8, %v1481_v8  ;;  %v1553_v11 = vmul.f32 %v1494_v9, %v1494_v9  ;;  %v1457_v12 = vpop.f32.mrf.mxu0  ;;  %v1470_v13 = vpop.f32.mrf.mxu1 }
 0x6f7   : > { %v1566_v14 = vmul.f32 0.7978846, %v1562_v6  ;;  %v1567_v15 = vmul.f32 0.7978846, %v1563_v7 }
 0x6f8   : > { %v1556_v16 = vmul.f32 %v1552_v10, %v1481_v8  ;;  %v1557_v17 = vmul.f32 %v1553_v11, %v1494_v9 }
 0x6f9   : > { %2875 = vtanh.f32 %v1566_v14 }
 0x6fa   : > { %v1560_v18 = vmul.f32 0.044715, %v1556_v16  ;;  %v1561_v19 = vmul.f32 0.044715, %v1557_v17  ;;  %2877 = vtanh.f32 %v1567_v15  ;;  %v1919_v15 = vld [vmem:[%s3982_s10] sm:$0x1] }
 0x6fb   : > { %v1920_v16 = vadd.f32 1.0, %v1919_v15 }
 0x6fc   : > { %v1564_v20 = vadd.f32 %v1560_v18, %v1481_v8  ;;  %v1565_v21 = vadd.f32 %v1561_v19, %v1494_v9 }
 0x6fd   : > { %v1483_v22 = vpop.f32.mrf.mxu2  ;;  %v1496_v23 = vpop.f32.mrf.mxu3  ;;  %v1922_v18 = vperm.slane %v1920_v16, 0 }
 0x6fe   : > { %v1568_v24 = vmul.f32 0.7978846, %v1564_v20  ;;  %v1569_v25 = vmul.f32 0.7978846, %v1565_v21  ;;  %v1507_v26 = vpop.f32.mrf.mxu0  ;;  %v1520_v27 = vpop.f32.mrf.mxu1 }
 0x6ff   : > { %v2876_v28 = vpop.eup %2875 }
 0x700   : > { %v2878_v29 = vpop.eup %2877  ;;  %v1574_v30 = vadd.f32 1.0, %v2876_v28  ;;  %2879 = vtanh.f32 %v1568_v24 }
 0x701   : > { %v1575_v0 = vadd.f32 1.0, %v2878_v29  ;;  %2881 = vtanh.f32 %v1569_v25 }
 0x702   : > { %v1578_v2 = vmul.f32 0.5, %v1574_v30 }
 0x703   : > { %v1579_v31 = vmul.f32 0.5, %v1575_v0 }
 0x704   : > { %v1582_v32 = vmul.f32 %v1578_v2, %v1455_v60 }
 0x705   : > { %v1583_v34 = vmul.f32 %v1579_v31, %v1468_v61  ;;  %v1533_v35 = vpop.f32.mrf.mxu2  ;;  %v1546_v36 = vpop.f32.mrf.mxu3 }
 0x706   : > { %v2880_v37 = vpop.eup %2879  ;;  %v1586_v38 = vmul.f32 %v1582_v32, %v1507_v26  ;;  %v1509_v39 = vpop.f32.mrf.mxu0 }
 0x707   : > { %v1522_v40 = vpop.f32.mrf.mxu1  ;;  %v2882_v41 = vpop.eup %2881  ;;  %v1587_v42 = vmul.f32 %v1583_v34, %v1520_v27  ;;  %v1576_v43 = vadd.f32 1.0, %v2880_v37 }
 0x708   : > { %v1590_v45 = vpack.c.bf16 %v1586_v38, %v1586_v38  ;;  %v1577_v46 = vadd.f32 1.0, %v2882_v41 }
 0x709   : > { %v1591_v47 = vpack.c.bf16 %v1587_v42, %v1587_v42  ;;  %v1580_v48 = vmul.f32 0.5, %v1576_v43 }
 0x70a   : > { %v1581_v49 = vmul.f32 0.5, %v1577_v46  ;;  %1858 = vmatmul.bf16.vlgmr.msra.gmra.mxu0 %v1590_v45 }
 0x70b   : > { %v1584_v50 = vmul.f32 %v1580_v48, %v1481_v8  ;;  %1871 = vmatmul.bf16.vlgmr.msra.gmra.mxu1 %v1591_v47 }
 0x70c   : > { %v1585_v51 = vmul.f32 %v1581_v49, %v1494_v9 }
 0x70d   : > { %v1588_v53 = vmul.f32 %v1584_v50, %v1533_v35  ;;  %v1535_v54 = vpop.f32.mrf.mxu2  ;;  %v1548_v55 = vpop.f32.mrf.mxu3 }
 0x70e   : > { %v1589_v56 = vmul.f32 %v1585_v51, %v1546_v36 }
 0x70f   : > { %v1592_v57 = vpack.c.bf16 %v1588_v53, %v1588_v53 }
 0x710   : > { %v1593_v58 = vpack.c.bf16 %v1589_v56, %v1589_v56 }
 0x711   : > { %1884 = vmatmul.bf16.vlgmr.msra.gmra.mxu2 %v1592_v57 }
 0x712   : > { %1897 = vmatmul.bf16.vlgmr.msra.gmra.mxu3 %v1593_v58 }
 0x787   : > { %v1859_v44 = vpop.f32.mrf.mxu0 }
 0x788   : > { %v1872_v59 = vpop.f32.mrf.mxu1 }
 0x789   : > { %v1873_v62 = vadd.f32 %v1872_v59, %v1859_v44 }
 0x78f   : > { %v1861_v60 = vpop.f32.mrf.mxu0 }
 0x790   : > { %v1874_v61 = vpop.f32.mrf.mxu1 }
 0x794   : > { %v1885_v63 = vpop.f32.mrf.mxu2 }
 0x795   : > { %v1886_v1 = vadd.f32 %v1885_v63, %v1873_v62  ;;  %v1898_v3 = vpop.f32.mrf.mxu3 }
 0x797   : > { %v1899_v4 = vadd.f32 %v1898_v3, %v1886_v1 }
 0x799   : > { %v1902_v5 = vadd.f32 %v1899_v4, %v3525_v52 }
 0x79b   : > { %v1903_v6 = vmul.f32 %v1902_v5, %v1902_v5 }
 0x79c   : > { %v1887_v7 = vpop.f32.mrf.mxu2 }
 0x79d   : > { %v1900_v8 = vpop.f32.mrf.mxu3  ;;  %1904 = vadd.xlane.f32.xlu0 %v1903_v6 }
 0x810   : > { %v1905_v9 = vpop.xlane.xlu0 %1904 }
 0x811   : > { %v1906_v10 = vmul.f32 %v1905_v9, %v3358_v33 }
 0x813   : > { %v1907_v11 = vadd.f32 1e-06, %v1906_v10 }
 0x815   : > { %2883 = vrsqrt.f32 %v1907_v11  ;;  %vm1914_vm1 = vweird.f32 %v1907_v11 }
 0x81b   : > { %v2884_v12 = vpop.eup %2883 }
 0x81c   : > { %v1909_v13 = vmul.f32 %v2884_v12, %v1907_v11  ;;  %vm1915_vm0 = vweird.f32 %v2884_v12 }
 0x81d   : > { %vm1916_vm2 = vmor %vm1914_vm1, %vm1915_vm0 }
 0x81e   : > { %v1910_v14 = vmul.f32 %v2884_v12, %v1909_v13 }
 0x820   : > { %v1911_v52 = vmul.f32 0.5, %v1910_v14 }
 0x822   : > { %v1912_v17 = vsub.f32 1.5, %v1911_v52 }
 0x824   : > { %v1913_v33 = vmul.f32 %v2884_v12, %v1912_v17 }
 0x826   : > { %v1917_v19 = vsel %vm1916_vm2, %v2884_v12, %v1913_v33 }
 0x827   : > { %v1918_v20 = vmul.f32 %v1917_v19, %v1902_v5 }
 0x829   : > { %v1924_v21 = vmul.f32 %v1922_v18, %v1918_v20 }
 0x82b   : > { %1925 = vst [vmem:[%s4003_s19] sm:$0xff] %v1924_v21 }
 0x82c   : > { %2912 = shalt.err (!%p2909_p7)
}
 0x82d   : > { %2780 = dma.vmem_to_hbm [thread:$0]  (%p3096_p3), %s1942_s16, 128, %s1944_s12, %s1927_s28  }
 0x82e PF: > { %p2786_p9 = scmp.ge.s32.totalorder %s2979_s24, 2  ;;  %s1955_s22 = sand.u32 1, %s2951_s17  }
 0x82f   : > { %s1956_s21 = scalar_lea.sflag [#allocation5], %s1955_s22 }
 0x830   : > { %p2783_p10 = pnand %p2786_p9, %p3105_p8 }
 0x832   : > { %p2784_p11 = pneg %p2783_p10 }
 0x834   : > { %2946 = dma.done.wait (%p2784_p11), %s1956_s21, 128  }
 0x835   : > { %2948 = vsyncadd (%p2784_p11), %s1956_s21, 4294967168  ;;  %s24_s24 = sadd.s32 1, %s2979_s24   ;;  %s4006_s20 = sld [smem:[#allocation7_spill]] }
 0x836   : > { %p21_p12 = scmp.ge.s32.totalorder %s24_s24, 6   ;;  %s4007_s19 = sld [smem:[#allocation13_spill]] }
 0x837   : > { %s4008_s30 = sld [smem:[#allocation8_spill]]  ;;  %s4012_s17 = smov %s2955_s18 }
 0x838   : > { %s4009_s21 = sld [smem:[#allocation9_spill]] }
 0x839   : > { %s4010_s22 = sld [smem:[#allocation10_spill]]  ;;  %23 = sbr.rel (!%p21_p12) target bundleno = 7 (0x7), region = 106 }
 0x83a   : > { %s4011_s23 = sld [smem:[#allocation11_spill]] }
 0x83b   : > { %s4013_s18 = smov %s4006_s20 }
 0x83d   : > { %s4014_s20 = smov %s4008_s30 }
 0x83e   :  { %1962 = vsyncpa [#allocation5], 1 }
 0x83f   :  { %1964 = vsyncpa [#allocation5 + $0x1], 1 }

// kernel: gemma_model_forward.2
= control target key start
LH: loop header
LB: loop body
LE: loop exit
PB: predicated region body
PF: predicated region fallthrough
CT: control target
= control target key end

     0   :  { %s2933_s17 = smov 0   ;;  %s2935_s18 = smov 0   ;;  %s3777_s0 = inlined_call_operand.vmem [shape: f32[2,16,128], index: 0, kind: input, shape index: {}]   ;;  %s3778_s1 = inlined_call_operand.vmem [shape: f32[16,128], index: 1, kind: input, shape index: {}]   ;;  %s3779_s2 = inlined_call_operand.vmem [shape: f32[16,128], index: 2, kind: input, shape index: {}]   ;;  %s3780_s3 = inlined_call_operand.vmem [shape: f32[1,128], index: 3, kind: input, shape index: {}]   ;;  %s3781_s4 = inlined_call_operand.vmem [shape: bf16[128,256], index: 4, kind: input, shape index: {}]   ;;  %s3782_s5 = inlined_call_operand.vmem [shape: bf16[128,256], index: 5, kind: input, shape index: {}]   ;;  %s3783_s6 = inlined_call_operand.vmem [shape: bf16[256,128], index: 6, kind: input, shape index: {}]   ;;  %s3784_s7 = inlined_call_operand.vmem [shape: f32[1,128], index: 7, kind: input, shape index: {}]   ;;  %s3785_s8 = inlined_call_operand.vmem [shape: bf16[128,1024], index: 8, kind: input, shape index: {}]   ;;  %s3786_s9 = inlined_call_operand.vmem [shape: bf16[512,128], index: 9, kind: input, shape index: {}]   ;;  %s3787_s10 = inlined_call_operand.vmem [shape: f32[1,128], index: 10, kind: input, shape index: {}]   ;;  %s3788_s11 = inlined_call_operand.vmem [shape: f32[2,16,128], index: 11, kind: output, shape index: {}]  }
   0x1   :  { %s2937_s19 = smov 0   ;;  %s2939_s20 = smov 0  }
   0x2   :  { %s2941_s21 = smov 0  }
   0x3 LB: > { %s30_s10 = sadd.s32 1, %s2859_s19  ;;  %s33_s22 = sadd.s32 1, %s2863_s20  ;;  %s2867_s21 = sphi %s2941_s21, %s21_s21   ;;  %s2863_s20 = sphi %s2939_s20, %s3792_s20   ;;  %s2859_s19 = sphi %s2937_s19, %s3791_s19   ;;  %s2855_s18 = sphi %s2935_s18, %s3790_s18   ;;  %s2851_s17 = sphi %s2933_s17, %s3789_s17  }
   0x4   : > { %p31_p0 = scmp.ge.s32.totalorder %s30_s10, 2  ;;  %p2005_p1 = scmp.ge.s32.totalorder %s2867_s21, 1 }
   0x5   : > { %p351_p2 = scmp.lt.s32.totalorder %s2867_s21, 5 }
   0x6   : > { %s3794_s10 = smov (%p31_p0, %s30_s10), 0  ;;  %s3796_s22 = smov (!%p31_p0, %s33_s22), %s2863_s20 }
   0x7   : > { %p352_p3 = pnand %p2005_p1, %p351_p2  ;;  %p35_p4 = scmp.ge.s32.totalorder %s3796_s22, 2 }
   0x8   : > { %p394_p5 = scmp.lt.s32.totalorder (!%p352_p3), %s2855_s18, 1  ;;  %p401_p6 = scmp.lt.s32.totalorder (!%p352_p3), %s2851_s17, 1 }
   0x9   : > { %s3798_s22 = smov (%p35_p4, %s3796_s22), 0  ;;  %355 = sbr.rel (%p352_p3) target bundleno = 1943 (0x797), region = 64 }
   0xa   : > { %s2963_s23 = sshll.u32 (!%p352_p3), %s2851_s17, 3  ;;  %p2011_p7 = scmp.ne.s32.totalorder (!%p352_p3), %s2851_s17, 0 }
   0xe   : > { %s3800_s18 = smov (!%p394_p5, %s2855_s18), 1  ;;  %s2870_s27 = smov (!%p2011_p7), 64  }
   0xf   : > { %s402_s24 = scalar_select %p401_p6, %s2851_s17, 1 }
  0x10   : > { %s2600_s25 = sshll.u32 %s3800_s18, 4  ;;  %s2008_s26 = sshll.u32 %s3800_s18, 1 }
  0x11   : > { %s2968_s29 = scalar_lea.vmem %s3777_s0, %s2600_s25  ;;  %s404_s30 = sadd.s32 %s2008_s26, %s402_s24 }
  0x12   : > { %s2009_s12 = sshll.u32 %s404_s30, 3  ;;  %412 = sbr.rel (%p2011_p7) target bundleno = 436 (0x1b4), region = 68 }
  0x13   : > { %s2973_s15 = scalar_lea.vmem %s3788_s11, %s2009_s12 }
  0x17   : > { %v413_v0 = vld [vmem:[%s2968_s29] sm:$0xff]  ;;  %v414_v2 = vld [vmem:[%s2968_s29 + $0x8] sm:$0xff]  ;;  %v2070_v6 = vld [vmem:[%s3782_s5 + $0x70] sm:$0xf]  ;;  %v2869_v11 = vmov 128.0  }
  0x18   : > { %v2976_v1 = vmul.f32 11.313708, %v413_v0  ;;  %v2981_v4 = vmul.f32 11.313708, %v414_v2  ;;  %v2616_v7 = vld [vmem:[%s3782_s5 + $0x74] sm:$0xf0]  ;;  %2801 = vrcp.f32 %v2869_v11 }
  0x19   : > { %v2615_v8 = vld [vmem:[%s3782_s5 + $0x74] sm:$0xf]  ;;  %v2071_v9 = vor.u32 %v2616_v7, %v2070_v6  ;;  %v2072_v10 = vld [vmem:[%s3782_s5 + $0x78] sm:$0xf0]  ;;  %v2062_v13 = vld [vmem:[%s3782_s5 + $0x60] sm:$0xf] }
  0x1a   : > { %v417_v3 = vmul.f32 %v2976_v1, %v2976_v1  ;;  %v418_v5 = vmul.f32 %v2981_v4, %v2981_v4  ;;  %v2075_v12 = vor.u32 %v2615_v8, %v2072_v10  ;;  %v2614_v14 = vld [vmem:[%s3782_s5 + $0x64] sm:$0xf0]  ;;  %v2613_v15 = vld [vmem:[%s3782_s5 + $0x64] sm:$0xf]  ;;  %v2064_v17 = vld [vmem:[%s3782_s5 + $0x68] sm:$0xf0] }
  0x1b   : > { %560 = vmatpush.bf16.msra.mxu0 %v2071_v9  ;;  %v2063_v16 = vor.u32 %v2614_v14, %v2062_v13  ;;  %v2067_v18 = vor.u32 %v2613_v15, %v2064_v17  ;;  %v2054_v20 = vld [vmem:[%s3782_s5 + $0x50] sm:$0xf]  ;;  %v2612_v21 = vld [vmem:[%s3782_s5 + $0x54] sm:$0xf0]  ;;  %v2611_v22 = vld [vmem:[%s3782_s5 + $0x54] sm:$0xf] }
  0x1c   : > { %419 = vadd.xlane.f32.xlu0 %v417_v3  ;;  %574 = vmatpush.bf16.msra.mxu1 %v2075_v12  ;;  %v2055_v23 = vor.u32 %v2612_v21, %v2054_v20  ;;  %v2056_v24 = vld [vmem:[%s3782_s5 + $0x58] sm:$0xf0]  ;;  %v2046_v27 = vld [vmem:[%s3782_s5 + $0x40] sm:$0xf]  ;;  %v2610_v28 = vld [vmem:[%s3782_s5 + $0x44] sm:$0xf0] }
  0x1d   : > { %v2059_v25 = vor.u32 %v2611_v22, %v2056_v24  ;;  %v2609_v29 = vld [vmem:[%s3782_s5 + $0x44] sm:$0xf]  ;;  %v2047_v30 = vor.u32 %v2610_v28, %v2046_v27  ;;  %v2048_v31 = vld [vmem:[%s3782_s5 + $0x48] sm:$0xf0]  ;;  %v2038_v34 = vld [vmem:[%s3782_s5 + $0x30] sm:$0xf] }
  0x1e   : > { %v2802_v19 = vpop.eup %2801  ;;  %v2051_v32 = vor.u32 %v2609_v29, %v2048_v31  ;;  %v2608_v35 = vld [vmem:[%s3782_s5 + $0x34] sm:$0xf0]  ;;  %v2607_v36 = vld [vmem:[%s3782_s5 + $0x34] sm:$0xf]  ;;  %v2040_v38 = vld [vmem:[%s3782_s5 + $0x38] sm:$0xf0] }
  0x1f   : > { %561 = vmatpush.bf16.msra.mxu0 %v2063_v16  ;;  %v424_v26 = vmul.f32 128.0, %v2802_v19  ;;  %v2039_v37 = vor.u32 %v2608_v35, %v2038_v34  ;;  %v2043_v39 = vor.u32 %v2607_v36, %v2040_v38  ;;  %v2030_v41 = vld [vmem:[%s3782_s5 + $0x20] sm:$0xf]  ;;  %v2606_v42 = vld [vmem:[%s3782_s5 + $0x24] sm:$0xf0]  ;;  %vm428_vm0 = vweird.f32 %v2802_v19 }
  0x20   : > { %575 = vmatpush.bf16.msra.mxu1 %v2067_v18  ;;  %v2605_v43 = vld [vmem:[%s3782_s5 + $0x24] sm:$0xf]  ;;  %v2031_v44 = vor.u32 %v2606_v42, %v2030_v41  ;;  %v2032_v45 = vld [vmem:[%s3782_s5 + $0x28] sm:$0xf0]  ;;  %v2022_v48 = vld [vmem:[%s3782_s5 + $0x10] sm:$0xf] }
  0x21   : > { %v425_v33 = vsub.f32 1.0, %v424_v26  ;;  %v2035_v46 = vor.u32 %v2605_v43, %v2032_v45  ;;  %v2604_v49 = vld [vmem:[%s3782_s5 + $0x14] sm:$0xf0]  ;;  %v2603_v50 = vld [vmem:[%s3782_s5 + $0x14] sm:$0xf]  ;;  %v591_v34 = vld [vmem:[%s3779_s2 + $0x8] sm:$0xff] }
  0x22   : > { %v2023_v51 = vor.u32 %v2604_v49, %v2022_v48  ;;  %v2024_v52 = vld [vmem:[%s3782_s5 + $0x18] sm:$0xf0]  ;;  %v2014_v53 = vld [vmem:[%s3782_s5] sm:$0xf]  ;;  %v2602_v54 = vld [vmem:[%s3782_s5 + $0x4] sm:$0xf0] }
  0x23   : > { %562 = vmatpush.bf16.msra.mxu0 %v2055_v23  ;;  %v426_v40 = vmul.f32 %v2802_v19, %v425_v33  ;;  %v2027_v55 = vor.u32 %v2603_v50, %v2024_v52  ;;  %v2601_v56 = vld [vmem:[%s3782_s5 + $0x4] sm:$0xf]  ;;  %v2016_v57 = vld [vmem:[%s3782_s5 + $0x8] sm:$0xf0]  ;;  %v2015_v59 = vor.u32 %v2602_v54, %v2014_v53  ;;  %v456_v14 = vld [vmem:[%s3780_s3] sm:$0x1] }
  0x24   : > { %421 = vadd.xlane.f32.xlu0 %v418_v5  ;;  %576 = vmatpush.bf16.msra.mxu1 %v2059_v25  ;;  %v2019_v60 = vor.u32 %v2601_v56, %v2016_v57  ;;  %v457_v16 = vadd.f32 1.0, %v456_v14  ;;  %v589_v33 = vld [vmem:[%s3778_s1 + $0x8] sm:$0xff] }
  0x25   : > { %v427_v47 = vadd.f32 %v2802_v19, %v426_v40 }
  0x26   : > { %v459_v21 = vperm.slane %v457_v16, 0 }
  0x27   : > { %563 = vmatpush.bf16.msra.mxu0 %v2047_v30  ;;  %v429_v58 = vsel %vm428_vm0, %v2802_v19, %v427_v47 }
  0x28   : > { %577 = vmatpush.bf16.msra.mxu1 %v2051_v32 }
  0x2b   : > { %564 = vmatpush.bf16.msra.mxu0 %v2039_v37 }
  0x2c   : > { %578 = vmatpush.bf16.msra.mxu1 %v2043_v39 }
  0x2f   : > { %565 = vmatpush.bf16.msra.mxu0 %v2031_v44 }
  0x30   : > { %579 = vmatpush.bf16.msra.mxu1 %v2035_v46 }
  0x33   : > { %566 = vmatpush.bf16.msra.mxu0 %v2023_v51 }
  0x34   : > { %580 = vmatpush.bf16.msra.mxu1 %v2027_v55 }
  0x37   : > { %567 = vmatpush.bf16.msra.mxu0 %v2015_v59 }
  0x38   : > { %581 = vmatpush.bf16.msra.mxu1 %v2019_v60 }
  0x8f   : > { %v420_v61 = vpop.xlane.xlu0 %419 }
  0x90   : > { %v430_v62 = vmul.f32 %v429_v58, %v420_v61 }
  0x92   : > { %v432_v63 = vadd.f32 1e-06, %v430_v62 }
  0x94   : > { %2803 = vrsqrt.f32 %v432_v63  ;;  %vm440_vm2 = vweird.f32 %v432_v63 }
  0x97   : > { %v422_v0 = vpop.xlane.xlu0 %421 }
  0x98   : > { %v431_v2 = vmul.f32 %v429_v58, %v422_v0 }
  0x9a   : > { %v2804_v3 = vpop.eup %2803  ;;  %v433_v5 = vadd.f32 1e-06, %v431_v2 }
  0x9b   : > { %v435_v6 = vmul.f32 %v2804_v3, %v432_v63  ;;  %vm441_vm1 = vweird.f32 %v2804_v3 }
  0x9c   : > { %2805 = vrsqrt.f32 %v433_v5  ;;  %vm442_vm3 = vmor %vm440_vm2, %vm441_vm1  ;;  %vm450_vm5 = vweird.f32 %v433_v5 }
  0x9d   : > { %v436_v7 = vmul.f32 %v2804_v3, %v435_v6 }
  0x9f   : > { %v437_v8 = vmul.f32 0.5, %v436_v7 }
  0xa1   : > { %v438_v9 = vsub.f32 1.5, %v437_v8 }
  0xa2   : > { %v2806_v10 = vpop.eup %2805 }
  0xa3   : > { %v445_v11 = vmul.f32 %v2806_v10, %v433_v5  ;;  %v439_v12 = vmul.f32 %v2804_v3, %v438_v9  ;;  %vm451_vm4 = vweird.f32 %v2806_v10 }
  0xa4   : > { %vm452_vm6 = vmor %vm450_vm5, %vm451_vm4 }
  0xa5   : > { %v446_v13 = vmul.f32 %v2806_v10, %v445_v11  ;;  %v443_v18 = vsel %vm442_vm3, %v2804_v3, %v439_v12 }
  0xa6   : > { %v454_v20 = vmul.f32 %v443_v18, %v2976_v1  ;;  %v590_v1 = vld [vmem:[%s3779_s2] sm:$0xff] }
  0xa7   : > { %v447_v15 = vmul.f32 0.5, %v446_v13 }
  0xa8   : > { %v461_v24 = vmul.f32 %v459_v21, %v454_v20 }
  0xa9   : > { %v448_v17 = vsub.f32 1.5, %v447_v15 }
  0xab   : > { %v449_v19 = vmul.f32 %v2806_v10, %v448_v17 }
  0xad   : > { %v453_v22 = vsel %vm452_vm6, %v2806_v10, %v449_v19 }
  0xae   : > { %v455_v23 = vmul.f32 %v453_v22, %v2981_v4  ;;  %v588_v4 = vld [vmem:[%s3778_s1] sm:$0xff] }
  0xb0   : > { %v462_v25 = vmul.f32 %v459_v21, %v455_v23 }
  0xb2   : > { %v463_v26 = vpack.c.bf16 %v462_v25, %v461_v24 }
  0xb4   : > { %568 = vmatmul.bf16.vlgmr.msra.gmra.mxu0 %v463_v26  ;;  %582 = vmatmul.bf16.vlgmr.msra.gmra.mxu1 %v463_v26 }
 0x131   : > { %v569_v27 = vpop.f32.mrf.mxu0  ;;  %v583_v28 = vpop.f32.mrf.mxu1 }
 0x132   : > { %594 = vrot.lane.b32.xlu1 %v569_v27, %s2870_s27  ;;  %v592_v37 = vmul.f32 %v588_v4, %v569_v27 }
 0x139   : > { %v571_v29 = vpop.f32.mrf.mxu0  ;;  %v585_v30 = vpop.f32.mrf.mxu1 }
 0x13a   : > { %v2755_v31 = vpack.c.bf16 %v585_v30, %v583_v28  ;;  %596 = vrot.lane.b32.xlu1 %v571_v29, %s2870_s27  ;;  %v593_v38 = vmul.f32 %v589_v33, %v571_v29 }
 0x13c   : > { %2756 = vst [vmem:[#allocation3] sm:$0xff] %v2755_v31  }
 0x1a4   : > { %v595_v32 = vpop.permute.xlu1 %594 }
 0x1a5   : > { %v598_v35 = vmul.f32 %v595_v32, %v590_v1 }
 0x1a7   : > { %v600_v40 = vadd.f32 %v598_v35, %v592_v37 }
 0x1ac   : > { %v597_v36 = vpop.permute.xlu1 %596 }
 0x1ad   : > { %v599_v39 = vmul.f32 %v597_v36, %v591_v34 }
 0x1af   : > { %v601_v41 = vadd.f32 %v599_v39, %v593_v38 }
 0x1b1   : > { %v2750_v42 = vpack.c.bf16 %v601_v41, %v600_v40 }
 0x1b3   : > { %2751 = vst [vmem:[#allocation2] sm:$0xff] %v2750_v42  }
 0x1b4 PF: > { %s610_s24 = scalar_lea.vmem %s2968_s29, %s2963_s23  ;;  %v2134_v43 = vld [vmem:[%s3781_s4 + $0x70] sm:$0xf]  ;;  %v2632_v44 = vld [vmem:[%s3781_s4 + $0x74] sm:$0xf0]  ;;  %v2631_v45 = vld [vmem:[%s3781_s4 + $0x74] sm:$0xf]  ;;  %s765_s30 = scalar_lea.vmem %s3778_s1, %s2963_s23 }
 0x1b5   : > { %v611_v46 = vld [vmem:[%s610_s24] sm:$0xff]  ;;  %v2135_v47 = vor.u32 %v2632_v44, %v2134_v43  ;;  %v2136_v48 = vld [vmem:[%s3781_s4 + $0x78] sm:$0xf0]  ;;  %v2630_v53 = vld [vmem:[%s3781_s4 + $0x64] sm:$0xf0]  ;;  %v2871_v61 = vmov 128.0   ;;  %s767_s14 = scalar_lea.vmem %s3779_s2, %s2963_s23 }
 0x1b6   : > { %v3112_v49 = vmul.f32 11.313708, %v611_v46  ;;  %v2139_v50 = vor.u32 %v2631_v45, %v2136_v48  ;;  %v2126_v52 = vld [vmem:[%s3781_s4 + $0x60] sm:$0xf]  ;;  %v2629_v54 = vld [vmem:[%s3781_s4 + $0x64] sm:$0xf]  ;;  %2807 = vrcp.f32 %v2871_v61 }
 0x1b7   : > { %739 = vmatpush.bf16.msra.mxu0 %v2135_v47  ;;  %v2127_v55 = vor.u32 %v2630_v53, %v2126_v52  ;;  %v2128_v56 = vld [vmem:[%s3781_s4 + $0x68] sm:$0xf0]  ;;  %v2118_v58 = vld [vmem:[%s3781_s4 + $0x50] sm:$0xf]  ;;  %v2628_v59 = vld [vmem:[%s3781_s4 + $0x54] sm:$0xf0] }
 0x1b8   : > { %v613_v51 = vmul.f32 %v3112_v49, %v3112_v49  ;;  %752 = vmatpush.bf16.msra.mxu1 %v2139_v50  ;;  %v2131_v57 = vor.u32 %v2629_v54, %v2128_v56  ;;  %v2627_v60 = vld [vmem:[%s3781_s4 + $0x54] sm:$0xf]  ;;  %v2119_v62 = vor.u32 %v2628_v59, %v2118_v58  ;;  %v2120_v63 = vld [vmem:[%s3781_s4 + $0x58] sm:$0xf0]  ;;  %v2110_v2 = vld [vmem:[%s3781_s4 + $0x40] sm:$0xf] }
 0x1b9   : > { %v2123_v0 = vor.u32 %v2627_v60, %v2120_v63  ;;  %v2626_v3 = vld [vmem:[%s3781_s4 + $0x44] sm:$0xf0]  ;;  %v2625_v5 = vld [vmem:[%s3781_s4 + $0x44] sm:$0xf]  ;;  %v2112_v7 = vld [vmem:[%s3781_s4 + $0x48] sm:$0xf0] }
 0x1ba   : > { %614 = vadd.xlane.f32.xlu0 %v613_v51  ;;  %v2111_v6 = vor.u32 %v2626_v3, %v2110_v2  ;;  %v2115_v8 = vor.u32 %v2625_v5, %v2112_v7  ;;  %v2102_v10 = vld [vmem:[%s3781_s4 + $0x30] sm:$0xf]  ;;  %v2624_v11 = vld [vmem:[%s3781_s4 + $0x34] sm:$0xf0]  ;;  %v2623_v12 = vld [vmem:[%s3781_s4 + $0x34] sm:$0xf] }
 0x1bb   : > { %740 = vmatpush.bf16.msra.mxu0 %v2127_v55  ;;  %v2103_v13 = vor.u32 %v2624_v11, %v2102_v10  ;;  %v2104_v14 = vld [vmem:[%s3781_s4 + $0x38] sm:$0xf0]  ;;  %v2094_v17 = vld [vmem:[%s3781_s4 + $0x20] sm:$0xf]  ;;  %v2622_v18 = vld [vmem:[%s3781_s4 + $0x24] sm:$0xf0]  ;;  %v821_v11 = vstv %s2963_s23 }
 0x1bc   : > { %753 = vmatpush.bf16.msra.mxu1 %v2131_v57  ;;  %v2808_v9 = vpop.eup %2807  ;;  %v2107_v16 = vor.u32 %v2623_v12, %v2104_v14  ;;  %v2621_v19 = vld [vmem:[%s3781_s4 + $0x24] sm:$0xf]  ;;  %v2095_v20 = vor.u32 %v2622_v18, %v2094_v17  ;;  %v2096_v21 = vld [vmem:[%s3781_s4 + $0x28] sm:$0xf0]  ;;  %v2086_v24 = vld [vmem:[%s3781_s4 + $0x10] sm:$0xf] }
 0x1bd   : > { %v617_v15 = vmul.f32 128.0, %v2808_v9  ;;  %v2099_v23 = vor.u32 %v2621_v19, %v2096_v21  ;;  %v2620_v25 = vld [vmem:[%s3781_s4 + $0x14] sm:$0xf0]  ;;  %v2619_v26 = vld [vmem:[%s3781_s4 + $0x14] sm:$0xf]  ;;  %vm621_vm7 = vweird.f32 %v2808_v9  ;;  %v2633_v54 = vld [vmem:[#allocation2] sm:$0xff] }
 0x1be   : > { %v2087_v27 = vor.u32 %v2620_v25, %v2086_v24  ;;  %v2088_v28 = vld [vmem:[%s3781_s4 + $0x18] sm:$0xf0]  ;;  %v2078_v29 = vld [vmem:[%s3781_s4] sm:$0xf]  ;;  %v2618_v30 = vld [vmem:[%s3781_s4 + $0x4] sm:$0xf0] }
 0x1bf   : > { %741 = vmatpush.bf16.msra.mxu0 %v2119_v62  ;;  %v618_v22 = vsub.f32 1.0, %v617_v15  ;;  %v2091_v31 = vor.u32 %v2619_v26, %v2088_v28  ;;  %v2617_v32 = vld [vmem:[%s3781_s4 + $0x4] sm:$0xf]  ;;  %v2080_v1 = vld [vmem:[%s3781_s4 + $0x8] sm:$0xf0]  ;;  %v2079_v33 = vor.u32 %v2618_v30, %v2078_v29  ;;  %s2872_s26 = smov 64  }
 0x1c0   : > { %754 = vmatpush.bf16.msra.mxu1 %v2123_v0  ;;  %v2083_v34 = vor.u32 %v2617_v32, %v2080_v1  ;;  %v636_v43 = vld [vmem:[%s3780_s3] sm:$0x1]  ;;  %vm830_vm12 = vcmask 130048  }
 0x1c1   : > { %v619_v4 = vmul.f32 %v2808_v9, %v618_v22  ;;  %v637_v45 = vadd.f32 1.0, %v636_v43  ;;  %v766_v59 = vld [vmem:[%s765_s30] sm:$0xff]  ;;  %v2638_v43 = vld [vmem:[%s3783_s6 + $0x18] sm:$0xff] }
 0x1c2   : > { %v768_v60 = vld [vmem:[%s767_s14] sm:$0xff] }
 0x1c3   : > { %742 = vmatpush.bf16.msra.mxu0 %v2111_v6  ;;  %v620_v35 = vadd.f32 %v2808_v9, %v619_v4  ;;  %v639_v48 = vperm.slane %v637_v45, 0  ;;  %v2634_v4 = vld [vmem:[#allocation3] sm:$0xff]  ;;  %v2637_v45 = vld [vmem:[%s3783_s6 + $0x10] sm:$0xff] }
 0x1c4   : > { %755 = vmatpush.bf16.msra.mxu1 %v2115_v8  ;;  %871 = vmatpush.bf16.msra.mxu2 %v2634_v4 }
 0x1c5   : > { %v3200_v36 = vsel %vm621_vm7, %v2808_v9, %v620_v35  ;;  %v819_v9 = vlaneseq  ;;  %887 = vmatpush.bf16.msra.mxu3 %v2634_v4  ;;  %v2641_v35 = vld [vmem:[%s3783_s6 + $0x30] sm:$0xff]  ;;  %v2692_v4 = vld [vmem:[%s3785_s8 + $0x14c] sm:$0xf] }
 0x1c7   : > { %743 = vmatpush.bf16.msra.mxu0 %v2103_v13  ;;  %v820_v10 = vshrl.u32 %v819_v9, 7  ;;  %v824_v13 = vand.u32 127, %v819_v9  ;;  %v2712_v9 = vld [vmem:[%s3785_s8 + $0x1e4] sm:$0xf0] }
 0x1c8   : > { %756 = vmatpush.bf16.msra.mxu1 %v2107_v16 }
 0x1c9   : > { %v822_v12 = vadd.s32 %v821_v11, %v820_v10 }
 0x1cb   : > { %744 = vmatpush.bf16.msra.mxu0 %v2095_v20  ;;  %vm825_vm11 = vcmp.le.s32.totalorder %v824_v13, %v822_v12  ;;  %v2708_v12 = vld [vmem:[%s3785_s8 + $0x1cc] sm:$0xf] }
 0x1cc   : > { %757 = vmatpush.bf16.msra.mxu1 %v2099_v23  ;;  %v2450_v13 = vld [vmem:[%s3785_s8 + $0x1e8] sm:$0xf0] }
 0x1cf   : > { %745 = vmatpush.bf16.msra.mxu0 %v2087_v27 }
 0x1d0   : > { %758 = vmatpush.bf16.msra.mxu1 %v2091_v31 }
 0x1d3   : > { %746 = vmatpush.bf16.msra.mxu0 %v2079_v33  ;;  %v2642_v33 = vld [vmem:[%s3783_s6 + $0x38] sm:$0xff] }
 0x1d4   : > { %759 = vmatpush.bf16.msra.mxu1 %v2083_v34  ;;  %v2650_v34 = vld [vmem:[%s3783_s6 + $0x78] sm:$0xff]  ;;  %1036 = vmatpush.bf16.msrb.mxu3 %v2642_v33  ;;  %v2386_v33 = vld [vmem:[%s3785_s8 + $0x168] sm:$0xf0] }
 0x1d5   : > { %975 = vmatpush.bf16.msrb.mxu2 %v2650_v34 }
 0x1d7   : > { %798 = vmatpush.bf16.xpose.msrb.mxu0 %v2633_v54 }
 0x1d8   : > { %811 = vmatpush.bf16.xpose.msrb.mxu1 %v2633_v54  ;;  %1037 = vmatpush.bf16.msrb.mxu3 %v2641_v35 }
 0x22d   : > { %v615_v37 = vpop.xlane.xlu0 %614 }
 0x22e   : > { %v623_v38 = vmul.f32 %v3200_v36, %v615_v37  ;;  %v2649_v37 = vld [vmem:[%s3783_s6 + $0x70] sm:$0xff] }
 0x22f   : > { %976 = vmatpush.bf16.msrb.mxu2 %v2649_v37  ;;  %v2344_v37 = vld [vmem:[%s3785_s8 + $0x100] sm:$0xf] }
 0x230   : > { %v624_v39 = vadd.f32 1e-06, %v623_v38  ;;  %v2640_v38 = vld [vmem:[%s3783_s6 + $0x28] sm:$0xff] }
 0x231   : > { %1038 = vmatpush.bf16.msrb.mxu3 %v2640_v38  ;;  %v2687_v38 = vld [vmem:[%s3785_s8 + $0x11c] sm:$0xf0] }
 0x232   : > { %2809 = vrsqrt.f32 %v624_v39  ;;  %vm631_vm9 = vweird.f32 %v624_v39 }
 0x238   : > { %v2810_v40 = vpop.eup %2809 }
 0x239   : > { %v626_v41 = vmul.f32 %v2810_v40, %v624_v39  ;;  %vm632_vm8 = vweird.f32 %v2810_v40  ;;  %v2648_v39 = vld [vmem:[%s3783_s6 + $0x68] sm:$0xff] }
 0x23a   : > { %vm633_vm10 = vmor %vm631_vm9, %vm632_vm8  ;;  %977 = vmatpush.bf16.msrb.mxu2 %v2648_v39  ;;  %v2683_v39 = vld [vmem:[%s3785_s8 + $0x104] sm:$0xf] }
 0x23b   : > { %v627_v42 = vmul.f32 %v2810_v40, %v626_v41  ;;  %v2647_v41 = vld [vmem:[%s3783_s6 + $0x60] sm:$0xff] }
 0x23d   : > { %v628_v44 = vmul.f32 0.5, %v627_v42 }
 0x23e   : > { %978 = vmatpush.bf16.msrb.mxu2 %v2647_v41  ;;  %v2346_v41 = vld [vmem:[%s3785_s8 + $0x120] sm:$0xf0] }
 0x23f   : > { %v629_v46 = vsub.f32 1.5, %v628_v44  ;;  %v2646_v44 = vld [vmem:[%s3783_s6 + $0x58] sm:$0xff] }
 0x241   : > { %v630_v47 = vmul.f32 %v2810_v40, %v629_v46 }
 0x242   : > { %979 = vmatpush.bf16.msrb.mxu2 %v2646_v44  ;;  %v2684_v44 = vld [vmem:[%s3785_s8 + $0x10c] sm:$0xf] }
 0x243   : > { %v634_v50 = vsel %vm633_vm10, %v2810_v40, %v630_v47  ;;  %v2639_v40 = vld [vmem:[%s3783_s6 + $0x20] sm:$0xff] }
 0x244   : > { %v635_v51 = vmul.f32 %v634_v50, %v3112_v49  ;;  %1039 = vmatpush.bf16.msrb.mxu3 %v2639_v40  ;;  %v2389_v40 = vor.u32 %v2692_v4, %v2386_v33  ;;  %v2218_v33 = vld [vmem:[%s3785_s8 + $0x20] sm:$0xf0] }
 0x246   : > { %v641_v52 = vmul.f32 %v639_v48, %v635_v51  ;;  %v2636_v51 = vld [vmem:[%s3783_s6 + $0x8] sm:$0xff] }
 0x248   : > { %v642_v53 = vpack.c.bf16 %v641_v52, %v641_v52  ;;  %1040 = vmatpush.bf16.msrb.mxu3 %v2638_v43  ;;  %v2688_v43 = vld [vmem:[%s3785_s8 + $0x124] sm:$0xf0] }
 0x24a   : > { %747 = vmatmul.bf16.vlgmr.msra.gmra.mxu0 %v642_v53  ;;  %760 = vmatmul.bf16.vlgmr.msra.gmra.mxu1 %v642_v53 }
 0x24c   : > { %1041 = vmatpush.bf16.msrb.mxu3 %v2637_v45  ;;  %v2354_v45 = vld [vmem:[%s3785_s8 + $0x128] sm:$0xf0] }
 0x250   : > { %1042 = vmatpush.bf16.msrb.mxu3 %v2636_v51 }
 0x2c7   : > { %v748_v55 = vpop.f32.mrf.mxu0  ;;  %v761_v56 = vpop.f32.mrf.mxu1 }
 0x2c8   : > { %775 = vrot.lane.b32.xlu1 %v761_v56, %s2872_s26  ;;  %770 = vrot.lane.b32.xlu0 %v748_v55, %s2872_s26  ;;  %v769_v63 = vmul.f32 %v766_v59, %v748_v55  ;;  %v774_v0 = vmul.f32 %v766_v59, %v761_v56  ;;  %v2645_v55 = vld [vmem:[%s3783_s6 + $0x50] sm:$0xff]  ;;  %v2635_v56 = vld [vmem:[%s3783_s6] sm:$0xff] }
 0x2c9   : > { %980 = vmatpush.bf16.msrb.mxu2 %v2645_v55  ;;  %1043 = vmatpush.bf16.msrb.mxu3 %v2635_v56 }
 0x2cf   : > { %v750_v57 = vpop.f32.mrf.mxu0  ;;  %v763_v58 = vpop.f32.mrf.mxu1 }
 0x2d0   : > { %v2644_v57 = vld [vmem:[%s3783_s6 + $0x48] sm:$0xff]  ;;  %v2643_v58 = vld [vmem:[%s3783_s6 + $0x40] sm:$0xff] }
 0x2d1   : > { %981 = vmatpush.bf16.msrb.mxu2 %v2644_v57 }
 0x2d5   : > { %982 = vmatpush.bf16.msrb.mxu2 %v2643_v58  ;;  %v2312_v58 = vld [vmem:[%s3785_s8 + $0xc0] sm:$0xf] }
 0x33a   : > { %v776_v61 = vpop.permute.xlu1 %775  ;;  %v771_v62 = vpop.permute.xlu0 %770 }
 0x33b   : > { %v777_v2 = vmul.f32 %v776_v61, %v768_v60  ;;  %v772_v3 = vmul.f32 %v771_v62, %v768_v60 }
 0x33d   : > { %v778_v5 = vadd.f32 %v777_v2, %v774_v0  ;;  %v773_v6 = vadd.f32 %v772_v3, %v769_v63  ;;  %v2440_v2 = vld [vmem:[%s3785_s8 + $0x1c0] sm:$0xf] }
 0x33e   : > { %v2711_v3 = vld [vmem:[%s3785_s8 + $0x1dc] sm:$0xf0] }
 0x33f   : > { %v780_v7 = vpack.c.bf16 %v778_v5, %v778_v5  ;;  %v779_v8 = vpack.c.bf16 %v773_v6, %v773_v6  ;;  %v2707_v5 = vld [vmem:[%s3785_s8 + $0x1c4] sm:$0xf]  ;;  %v2441_v6 = vor.u32 %v2711_v3, %v2440_v2  ;;  %v2676_v3 = vld [vmem:[%s3785_s8 + $0xcc] sm:$0xf] }
 0x341   : > { %799 = vmatmul.bf16.vlgmr.msrb.gmra.mxu0 %v779_v8  ;;  %812 = vmatmul.bf16.vlgmr.msrb.gmra.mxu1 %v780_v7  ;;  %v2442_v7 = vld [vmem:[%s3785_s8 + $0x1e0] sm:$0xf0]  ;;  %v2448_v8 = vld [vmem:[%s3785_s8 + $0x1c8] sm:$0xf] }
 0x342   : > { %v2445_v10 = vor.u32 %v2707_v5, %v2442_v7  ;;  %v2449_v11 = vor.u32 %v2712_v9, %v2448_v8  ;;  %1457 = vmatpush.bf16.msra.mxu0 %v2441_v6  ;;  %v2322_v5 = vld [vmem:[%s3785_s8 + $0xe8] sm:$0xf0]  ;;  %v2280_v7 = vld [vmem:[%s3785_s8 + $0x80] sm:$0xf]  ;;  %v2667_v9 = vld [vmem:[%s3785_s8 + $0x84] sm:$0xf] }
 0x343   : > { %v2325_v6 = vor.u32 %v2676_v3, %v2322_v5  ;;  %v2671_v8 = vld [vmem:[%s3785_s8 + $0x9c] sm:$0xf0]  ;;  %v2392_v5 = vld [vmem:[%s3785_s8 + $0x150] sm:$0xf] }
 0x344   : > { %1470 = vmatpush.bf16.msra.mxu1 %v2445_v10  ;;  %v2281_v10 = vor.u32 %v2671_v8, %v2280_v7  ;;  %v2693_v7 = vld [vmem:[%s3785_s8 + $0x154] sm:$0xf] }
 0x3be   : > { %v800_v14 = vpop.f32.mrf.mxu0  ;;  %v813_v15 = vpop.f32.mrf.mxu1 }
 0x3bf   : > { %v817_v16 = vmul.f32 0.088388346, %v800_v14  ;;  %v818_v17 = vmul.f32 0.088388346, %v813_v15  ;;  %v2408_v14 = vld [vmem:[%s3785_s8 + $0x180] sm:$0xf]  ;;  %v2453_v15 = vor.u32 %v2708_v12, %v2450_v13 }
 0x3c0   : > { %v2288_v12 = vld [vmem:[%s3785_s8 + $0x88] sm:$0xf] }
 0x3c1   : > { %v829_v18 = vsel %vm825_vm11, %v818_v17, -1e+30  ;;  %v828_v19 = vsel %vm825_vm11, %v817_v16, -1e+30  ;;  %v2703_v16 = vld [vmem:[%s3785_s8 + $0x19c] sm:$0xf0] }
 0x3c2   : > { %v834_v20 = vsel %vm830_vm12, %v829_v18, -inf  ;;  %v831_v21 = vsel %vm830_vm12, %v828_v19, -inf  ;;  %v2699_v17 = vld [vmem:[%s3785_s8 + $0x184] sm:$0xf]  ;;  %v2672_v13 = vld [vmem:[%s3785_s8 + $0xa4] sm:$0xf0] }
 0x3c3   : > { %835 = vmax.xlane.f32.xlu2 %v834_v20  ;;  %832 = vmax.xlane.f32.xlu1 %v831_v21  ;;  %v2416_v21 = vld [vmem:[%s3785_s8 + $0x188] sm:$0xf] }
 0x3c6   : > { %v802_v22 = vpop.f32.mrf.mxu0  ;;  %v815_v23 = vpop.f32.mrf.mxu1 }
 0x3c7   : > { %v2704_v22 = vld [vmem:[%s3785_s8 + $0x1a4] sm:$0xf0]  ;;  %v2700_v23 = vld [vmem:[%s3785_s8 + $0x18c] sm:$0xf] }
 0x436   : > { %v833_v24 = vpop.xlane.xlu1 %832  ;;  %v836_v25 = vpop.xlane.xlu2 %835 }
 0x437   : > { %v837_v26 = vsub.f32 %v828_v19, %v833_v24  ;;  %v838_v28 = vsub.f32 %v829_v18, %v836_v25  ;;  %v2410_v18 = vld [vmem:[%s3785_s8 + $0x1a0] sm:$0xf0]  ;;  %v2409_v19 = vor.u32 %v2703_v16, %v2408_v14  ;;  %v2417_v24 = vor.u32 %v2704_v22, %v2416_v21  ;;  %v2418_v25 = vld [vmem:[%s3785_s8 + $0x1a8] sm:$0xf0] }
 0x438   : > { %v2413_v20 = vor.u32 %v2699_v17, %v2410_v18  ;;  %v2668_v16 = vld [vmem:[%s3785_s8 + $0x8c] sm:$0xf]  ;;  %v2659_v21 = vld [vmem:[%s3785_s8 + $0x44] sm:$0xf] }
 0x439   : > { %v839_v27 = vmul.f32 1.442695, %v837_v26  ;;  %v841_v29 = vmul.f32 1.442695, %v838_v28  ;;  %v2376_v26 = vld [vmem:[%s3785_s8 + $0x140] sm:$0xf]  ;;  %v2421_v28 = vor.u32 %v2700_v23, %v2418_v25  ;;  %1458 = vmatpush.bf16.msra.mxu0 %v2409_v19 }
 0x43a   : > { %1471 = vmatpush.bf16.msra.mxu1 %v2413_v20  ;;  %v2290_v17 = vld [vmem:[%s3785_s8 + $0xa8] sm:$0xf0]  ;;  %v2248_v19 = vld [vmem:[%s3785_s8 + $0x40] sm:$0xf]  ;;  %v2250_v23 = vld [vmem:[%s3785_s8 + $0x60] sm:$0xf0] }
 0x43b   : > { %2811 = vpow2.f32 %v839_v27  ;;  %v2695_v27 = vld [vmem:[%s3785_s8 + $0x15c] sm:$0xf0]  ;;  %v2293_v18 = vor.u32 %v2668_v16, %v2290_v17  ;;  %v2664_v25 = vld [vmem:[%s3785_s8 + $0x64] sm:$0xf0]  ;;  %v2360_v17 = vld [vmem:[%s3785_s8 + $0x110] sm:$0xf] }
 0x43c   : > { %2813 = vpow2.f32 %v841_v29  ;;  %v2691_v29 = vld [vmem:[%s3785_s8 + $0x144] sm:$0xf]  ;;  %v2663_v20 = vld [vmem:[%s3785_s8 + $0x5c] sm:$0xf0] }
 0x43d   : > { %v2249_v22 = vor.u32 %v2663_v20, %v2248_v19  ;;  %v2685_v19 = vld [vmem:[%s3785_s8 + $0x114] sm:$0xf] }
 0x441   : > { %v2812_v30 = vpop.eup %2811 }
 0x442   : > { %v843_v31 = vsel %vm830_vm12, %v2812_v30, 0.0  ;;  %v2814_v32 = vpop.eup %2813 }
 0x443   : > { %844 = vadd.xlane.f32.xlu2 %v843_v31  ;;  %v846_v1 = vsel %vm830_vm12, %v2814_v32, 0.0  ;;  %v2384_v31 = vld [vmem:[%s3785_s8 + $0x148] sm:$0xf] }
 0x44b   : > { %847 = vadd.xlane.f32.xlu2 %v846_v1  ;;  %v2696_v1 = vld [vmem:[%s3785_s8 + $0x164] sm:$0xf0] }
 0x44c   : > { %v2385_v35 = vor.u32 %v2696_v1, %v2384_v31  ;;  %v2216_v31 = vld [vmem:[%s3785_s8] sm:$0xf]  ;;  %v2651_v1 = vld [vmem:[%s3785_s8 + $0x4] sm:$0xf] }
 0x4b6   : > { %v845_v42 = vpop.xlane.xlu2 %844 }
 0x4b7   : > { %2815 = vrcp.f32 %v845_v42  ;;  %v2352_v42 = vld [vmem:[%s3785_s8 + $0x108] sm:$0xf] }
 0x4bd   : > { %v2816_v46 = vpop.eup %2815 }
 0x4be   : > { %v848_v47 = vpop.xlane.xlu2 %847  ;;  %v851_v48 = vmul.f32 %v2816_v46, %v2812_v30  ;;  %v2378_v30 = vld [vmem:[%s3785_s8 + $0x160] sm:$0xf0]  ;;  %v2345_v46 = vor.u32 %v2687_v38, %v2344_v37  ;;  %v2221_v37 = vor.u32 %v2651_v1, %v2218_v33  ;;  %v2330_v1 = vld [vmem:[%s3785_s8 + $0xf0] sm:$0xf0]  ;;  %v2682_v33 = vld [vmem:[%s3785_s8 + $0xf4] sm:$0xf0] }
 0x4bf   : > { %2817 = vrcp.f32 %v848_v47  ;;  %v2381_v34 = vor.u32 %v2691_v29, %v2378_v30  ;;  %v2349_v47 = vor.u32 %v2683_v39, %v2346_v41  ;;  %v2258_v29 = vld [vmem:[%s3785_s8 + $0x68] sm:$0xf0]  ;;  %v2456_v41 = vld [vmem:[%s3785_s8 + $0x1d0] sm:$0xf] }
 0x4c0   : > { %v853_v50 = vpack.c.bf16 %v851_v48, %v851_v48  ;;  %v2353_v48 = vor.u32 %v2688_v43, %v2352_v42  ;;  %v2652_v39 = vld [vmem:[%s3785_s8 + $0xc] sm:$0xf]  ;;  %v2713_v43 = vld [vmem:[%s3785_s8 + $0x1ec] sm:$0xf0] }
 0x4c1   : > { %1472 = vmatpush.bf16.msra.mxu1 %v2381_v34  ;;  %v2224_v34 = vld [vmem:[%s3785_s8 + $0x8] sm:$0xf] }
 0x4c2   : > { %2148 = vmatmul.msk.bf16.vlgmr.msra.gmra.mxu2 %vm830_vm12, %v853_v50  ;;  %v2357_v50 = vor.u32 %v2684_v44, %v2354_v45  ;;  %v2709_v44 = vld [vmem:[%s3785_s8 + $0x1d4] sm:$0xf] }
 0x4c3   : > { %1483 = vmatpush.bf16.msra.mxu2 %v2449_v11  ;;  %v2282_v11 = vld [vmem:[%s3785_s8 + $0xa0] sm:$0xf0]  ;;  %v2458_v45 = vld [vmem:[%s3785_s8 + $0x1f0] sm:$0xf0] }
 0x4c4   : > { %v2285_v14 = vor.u32 %v2667_v9, %v2282_v11  ;;  %v2394_v9 = vld [vmem:[%s3785_s8 + $0x170] sm:$0xf0]  ;;  %v2698_v11 = vld [vmem:[%s3785_s8 + $0x174] sm:$0xf0] }
 0x4c5   : > { %v2818_v52 = vpop.eup %2817  ;;  %1473 = vmatpush.bf16.msra.mxu1 %v2349_v47  ;;  %v2461_v47 = vor.u32 %v2709_v44, %v2458_v45 }
 0x4c6   : > { %v852_v53 = vmul.f32 %v2818_v52, %v2814_v32  ;;  %v2377_v32 = vor.u32 %v2695_v27, %v2376_v26  ;;  %v2253_v26 = vor.u32 %v2659_v21, %v2250_v23  ;;  %v2362_v21 = vld [vmem:[%s3785_s8 + $0x130] sm:$0xf0]  ;;  %v2690_v23 = vld [vmem:[%s3785_s8 + $0x134] sm:$0xf0] }
 0x4c7   : > { %1484 = vmatpush.bf16.msra.mxu2 %v2417_v24  ;;  %v2256_v24 = vld [vmem:[%s3785_s8 + $0x48] sm:$0xf] }
 0x4c8   : > { %v854_v54 = vpack.c.bf16 %v852_v53, %v852_v53  ;;  %1459 = vmatpush.bf16.msra.mxu0 %v2377_v32  ;;  %v2257_v27 = vor.u32 %v2664_v25, %v2256_v24  ;;  %v2655_v32 = vld [vmem:[%s3785_s8 + $0x1c] sm:$0xf0]  ;;  %v2365_v24 = vor.u32 %v2685_v19, %v2362_v21 }
 0x4c9   : > { %v2217_v4 = vor.u32 %v2655_v32, %v2216_v31  ;;  %v2677_v31 = vld [vmem:[%s3785_s8 + $0xd4] sm:$0xf]  ;;  %v1066_v19 = vld [vmem:[%s3784_s7] sm:$0x1] }
 0x4ca   : > { %2149 = vmatmul.msk.bf16.vlgmr.msra.gmra.mxu3 %vm830_vm12, %v854_v54 }
 0x4cb   : > { %1496 = vmatpush.bf16.msra.mxu3 %v2453_v15  ;;  %1485 = vmatpush.bf16.msra.mxu2 %v2385_v35  ;;  %v2289_v15 = vor.u32 %v2672_v13, %v2288_v12  ;;  %v2656_v35 = vld [vmem:[%s3785_s8 + $0x24] sm:$0xf0]  ;;  %v2397_v12 = vor.u32 %v2693_v7, %v2394_v9  ;;  %v2234_v7 = vld [vmem:[%s3785_s8 + $0x30] sm:$0xf0]  ;;  %v2240_v9 = vld [vmem:[%s3785_s8 + $0x18] sm:$0xf] }
 0x4cc   : > { %1460 = vmatpush.bf16.msra.mxu0 %v2345_v46  ;;  %v2225_v38 = vor.u32 %v2656_v35, %v2224_v34  ;;  %v2457_v46 = vor.u32 %v2713_v43, %v2456_v41  ;;  %v2333_v34 = vor.u32 %v2677_v31, %v2330_v1  ;;  %v2673_v41 = vld [vmem:[%s3785_s8 + $0xac] sm:$0xf0]  ;;  %v2298_v43 = vld [vmem:[%s3785_s8 + $0xb0] sm:$0xf0]  ;;  %v2730_v31 = vld [vmem:[%s3786_s9 + $0x78] sm:$0xff] }
 0x4cd   : > { %v2729_v1 = vld [vmem:[%s3786_s9 + $0x70] sm:$0xff] }
 0x4cf   : > { %1497 = vmatpush.bf16.msra.mxu3 %v2421_v28  ;;  %1486 = vmatpush.bf16.msra.mxu2 %v2353_v48  ;;  %v2660_v28 = vld [vmem:[%s3785_s8 + $0x4c] sm:$0xf]  ;;  %v2464_v48 = vld [vmem:[%s3785_s8 + $0x1d8] sm:$0xf] }
 0x4d0   : > { %v2261_v30 = vor.u32 %v2660_v28, %v2258_v29  ;;  %v2328_v29 = vld [vmem:[%s3785_s8 + $0xd0] sm:$0xf] }
 0x4d3   : > { %1498 = vmatpush.bf16.msra.mxu3 %v2389_v40  ;;  %v2226_v40 = vld [vmem:[%s3785_s8 + $0x28] sm:$0xf0] }
 0x4d4   : > { %v2229_v42 = vor.u32 %v2652_v39, %v2226_v40  ;;  %v2296_v39 = vld [vmem:[%s3785_s8 + $0x90] sm:$0xf] }
 0x4d5   : > { %v2297_v45 = vor.u32 %v2673_v41, %v2296_v39  ;;  %v2719_v39 = vld [vmem:[%s3786_s9 + $0x20] sm:$0xff]  ;;  %v2736_v41 = vld [vmem:[%s3786_s9 + $0xa8] sm:$0xff] }
 0x4d7   : > { %1499 = vmatpush.bf16.msra.mxu3 %v2357_v50  ;;  %v2714_v50 = vld [vmem:[%s3785_s8 + $0x1f4] sm:$0xf0] }
 0x4db   : > { %1500 = vmatpush.bf16.msra.mxu3 %v2325_v6  ;;  %v2697_v6 = vld [vmem:[%s3785_s8 + $0x16c] sm:$0xf0] }
 0x4dc   : > { %v2393_v8 = vor.u32 %v2697_v6, %v2392_v5  ;;  %v2657_v5 = vld [vmem:[%s3785_s8 + $0x2c] sm:$0xf0]  ;;  %v2653_v6 = vld [vmem:[%s3785_s8 + $0x14] sm:$0xf] }
 0x4df   : > { %1501 = vmatpush.bf16.msra.mxu3 %v2293_v18  ;;  %v2689_v18 = vld [vmem:[%s3785_s8 + $0x12c] sm:$0xf0] }
 0x4e0   : > { %v2361_v20 = vor.u32 %v2689_v18, %v2360_v17 }
 0x4e3   : > { %1502 = vmatpush.bf16.msra.mxu3 %v2261_v30  ;;  %v2681_v30 = vld [vmem:[%s3785_s8 + $0xec] sm:$0xf0] }
 0x4e4   : > { %v2329_v32 = vor.u32 %v2681_v30, %v2328_v29  ;;  %v2722_v30 = vld [vmem:[%s3786_s9 + $0x38] sm:$0xff] }
 0x4e7   : > { %1503 = vmatpush.bf16.msra.mxu3 %v2229_v42  ;;  %v2669_v42 = vld [vmem:[%s3785_s8 + $0x94] sm:$0xf] }
 0x545   : > { %v873_v59 = vpop.f32.mrf.mxu2 }
 0x546   : > { %v893_v60 = vpack.c.bf16 %v873_v59, %v873_v59  ;;  %v2679_v59 = vld [vmem:[%s3785_s8 + $0xdc] sm:$0xf0] }
 0x548   : > { %1044 = vmatmul.bf16.vlgmr.msrb.gmra.mxu3 %v893_v60  ;;  %v2675_v60 = vld [vmem:[%s3785_s8 + $0xc4] sm:$0xf] }
 0x54d   : > { %v875_v61 = vpop.f32.mrf.mxu2  ;;  %v889_v62 = vpop.f32.mrf.mxu3 }
 0x54e   : > { %v894_v63 = vpack.c.bf16 %v889_v62, %v889_v62  ;;  %v2313_v61 = vor.u32 %v2679_v59, %v2312_v58  ;;  %v2320_v62 = vld [vmem:[%s3785_s8 + $0xc8] sm:$0xf]  ;;  %v2701_v59 = vld [vmem:[%s3785_s8 + $0x194] sm:$0xf] }
 0x550   : > { %983 = vmatmul.bf16.vlgmr.msrb.gmra.mxu2 %v894_v63  ;;  %v2680_v63 = vld [vmem:[%s3785_s8 + $0xe4] sm:$0xf0]  ;;  %1461 = vmatpush.bf16.msra.mxu0 %v2313_v61  ;;  %v2432_v61 = vld [vmem:[%s3785_s8 + $0x198] sm:$0xf] }
 0x551   : > { %v2321_v2 = vor.u32 %v2680_v63, %v2320_v62  ;;  %v2706_v62 = vld [vmem:[%s3785_s8 + $0x1b4] sm:$0xf0]  ;;  %v2702_v63 = vld [vmem:[%s3785_s8 + $0x19c] sm:$0xf] }
 0x553   : > { %1487 = vmatpush.bf16.msra.mxu2 %v2321_v2  ;;  %v2433_v2 = vor.u32 %v2706_v62, %v2432_v61  ;;  %v2666_v61 = vld [vmem:[%s3785_s8 + $0x74] sm:$0xf0] }
 0x554   : > { %1462 = vmatpush.bf16.msra.mxu0 %v2281_v10  ;;  %v2400_v10 = vld [vmem:[%s3785_s8 + $0x158] sm:$0xf] }
 0x555   : > { %v891_v0 = vpop.f32.mrf.mxu3  ;;  %v2401_v13 = vor.u32 %v2698_v11, %v2400_v10  ;;  %v2658_v10 = vld [vmem:[%s3785_s8 + $0x34] sm:$0xf0]  ;;  %v2654_v11 = vld [vmem:[%s3785_s8 + $0x1c] sm:$0xf] }
 0x557   : > { %1488 = vmatpush.bf16.msra.mxu2 %v2289_v15  ;;  %v2402_v15 = vld [vmem:[%s3785_s8 + $0x178] sm:$0xf0] }
 0x558   : > { %1463 = vmatpush.bf16.msra.mxu0 %v2249_v22  ;;  %v2368_v22 = vld [vmem:[%s3785_s8 + $0x118] sm:$0xf] }
 0x559   : > { %v2369_v25 = vor.u32 %v2690_v23, %v2368_v22  ;;  %v1067_v22 = vadd.f32 1.0, %v1066_v19 }
 0x55b   : > { %1489 = vmatpush.bf16.msra.mxu2 %v2257_v27  ;;  %v2370_v27 = vld [vmem:[%s3785_s8 + $0x138] sm:$0xf0] }
 0x55c   : > { %1464 = vmatpush.bf16.msra.mxu0 %v2217_v4  ;;  %v2336_v4 = vld [vmem:[%s3785_s8 + $0xd8] sm:$0xf] }
 0x55d   : > { %v2337_v35 = vor.u32 %v2682_v33, %v2336_v4  ;;  %v2738_v4 = vld [vmem:[%s3786_s9 + $0xb8] sm:$0xff] }
 0x55e   : > { %v2746_v33 = vld [vmem:[%s3786_s9 + $0xf8] sm:$0xff] }
 0x55f   : > { %1490 = vmatpush.bf16.msra.mxu2 %v2225_v38  ;;  %v2338_v38 = vld [vmem:[%s3785_s8 + $0xf8] sm:$0xf0] }
 0x560   : > { %1509 = vmatpush.bf16.msrb.mxu0 %v2457_v46  ;;  %v2301_v46 = vor.u32 %v2669_v42, %v2298_v43  ;;  %v2744_v42 = vld [vmem:[%s3786_s9 + $0xe8] sm:$0xff]  ;;  %v2718_v43 = vld [vmem:[%s3786_s9 + $0x18] sm:$0xff] }
 0x5cb   : > { %v1045_v51 = vpop.f32.mrf.mxu3 }
 0x5d3   : > { %v984_v52 = vpop.f32.mrf.mxu2  ;;  %v1047_v53 = vpop.f32.mrf.mxu3 }
 0x5d4   : > { %v1046_v54 = vadd.f32 %v1045_v51, %v984_v52  ;;  %v2710_v51 = vld [vmem:[%s3785_s8 + $0x1dc] sm:$0xf]  ;;  %v2465_v52 = vor.u32 %v2714_v50, %v2464_v48  ;;  %v2674_v48 = vld [vmem:[%s3785_s8 + $0xb4] sm:$0xf0] }
 0x5d5   : > { %v2466_v53 = vld [vmem:[%s3785_s8 + $0x1f8] sm:$0xf0] }
 0x5d6   : > { %v3367_v55 = vadd.f32 %v1046_v54, %v3112_v49  ;;  %v2314_v49 = vld [vmem:[%s3785_s8 + $0xe0] sm:$0xf0]  ;;  %v2424_v54 = vld [vmem:[%s3785_s8 + $0x190] sm:$0xf]  ;;  %1535 = vmatpush.bf16.msrb.mxu2 %v2465_v52  ;;  %v2670_v50 = vld [vmem:[%s3785_s8 + $0x9c] sm:$0xf] }
 0x5d7   : > { %v2317_v0 = vor.u32 %v2675_v60, %v2314_v49  ;;  %v2426_v60 = vld [vmem:[%s3785_s8 + $0x1b0] sm:$0xf0] }
 0x5d8   : > { %v1050_v56 = vmul.f32 %v3367_v55, %v3367_v55  ;;  %v2429_v49 = vor.u32 %v2701_v59, %v2426_v60  ;;  %v2272_v59 = vld [vmem:[%s3785_s8 + $0x58] sm:$0xf] }
 0x5d9   : > { %1474 = vmatpush.bf16.msra.mxu1 %v2317_v0  ;;  %v2434_v0 = vld [vmem:[%s3785_s8 + $0x1b8] sm:$0xf0] }
 0x5da   : > { %1051 = vadd.xlane.f32.xlu2 %v1050_v56  ;;  %v2705_v56 = vld [vmem:[%s3785_s8 + $0x1ac] sm:$0xf0]  ;;  %v2437_v3 = vor.u32 %v2702_v63, %v2434_v0  ;;  %1536 = vmatpush.bf16.msrb.mxu2 %v2433_v2  ;;  %v2274_v0 = vld [vmem:[%s3785_s8 + $0x78] sm:$0xf0] }
 0x5db   : > { %v986_v57 = vpop.f32.mrf.mxu2  ;;  %v2425_v58 = vor.u32 %v2705_v56, %v2424_v54  ;;  %v2264_v54 = vld [vmem:[%s3785_s8 + $0x50] sm:$0xf] }
 0x5dc   : > { %v2469_v57 = vor.u32 %v2710_v51, %v2466_v53  ;;  %v2306_v53 = vld [vmem:[%s3785_s8 + $0xb8] sm:$0xf0]  ;;  %v2665_v56 = vld [vmem:[%s3785_s8 + $0x6c] sm:$0xf0] }
 0x5dd   : > { %1475 = vmatpush.bf16.msra.mxu1 %v2285_v14  ;;  %1510 = vmatpush.bf16.msrb.mxu0 %v2425_v58  ;;  %v2694_v14 = vld [vmem:[%s3785_s8 + $0x15c] sm:$0xf]  ;;  %v2266_v58 = vld [vmem:[%s3785_s8 + $0x70] sm:$0xf0]  ;;  %v2265_v62 = vor.u32 %v2665_v56, %v2264_v54  ;;  %v2232_v2 = vld [vmem:[%s3785_s8 + $0x10] sm:$0xf] }
 0x5de   : > { %1548 = vmatpush.bf16.msrb.mxu3 %v2469_v57  ;;  %v2405_v16 = vor.u32 %v2694_v14, %v2402_v15  ;;  %1537 = vmatpush.bf16.msrb.mxu2 %v2401_v13  ;;  %v2309_v57 = vor.u32 %v2670_v50, %v2306_v53  ;;  %v2233_v13 = vor.u32 %v2657_v5, %v2232_v2  ;;  %v2734_v50 = vld [vmem:[%s3786_s9 + $0x98] sm:$0xff]  ;;  %v2724_v53 = vld [vmem:[%s3786_s9 + $0x48] sm:$0xff]  ;;  %v2733_v54 = vld [vmem:[%s3786_s9 + $0x90] sm:$0xff] }
 0x5df   : > { %v2237_v14 = vor.u32 %v2653_v6, %v2234_v7  ;;  %v2241_v15 = vor.u32 %v2658_v10, %v2240_v9  ;;  %v2741_v56 = vld [vmem:[%s3786_s9 + $0xd0] sm:$0xff] }
 0x5e1   : > { %1476 = vmatpush.bf16.msra.mxu1 %v2253_v26  ;;  %1511 = vmatpush.bf16.msrb.mxu0 %v2393_v8  ;;  %v2686_v26 = vld [vmem:[%s3785_s8 + $0x11c] sm:$0xf] }
 0x5e2   : > { %1549 = vmatpush.bf16.msrb.mxu3 %v2437_v3  ;;  %v2373_v28 = vor.u32 %v2686_v26, %v2370_v27  ;;  %1538 = vmatpush.bf16.msrb.mxu2 %v2369_v25  ;;  %v2273_v3 = vor.u32 %v2666_v61, %v2272_v59  ;;  %v1069_v25 = vperm.slane %v1067_v22, 0  ;;  %v2740_v59 = vld [vmem:[%s3786_s9 + $0xc8] sm:$0xff]  ;;  %v2739_v61 = vld [vmem:[%s3786_s9 + $0xc0] sm:$0xff] }
 0x5e5   : > { %1477 = vmatpush.bf16.msra.mxu1 %v2221_v37  ;;  %1512 = vmatpush.bf16.msrb.mxu0 %v2361_v20  ;;  %v2678_v37 = vld [vmem:[%s3785_s8 + $0xdc] sm:$0xf] }
 0x5e6   : > { %1550 = vmatpush.bf16.msrb.mxu3 %v2405_v16  ;;  %v2341_v40 = vor.u32 %v2678_v37, %v2338_v38  ;;  %1539 = vmatpush.bf16.msrb.mxu2 %v2337_v35  ;;  %v2728_v35 = vld [vmem:[%s3786_s9 + $0x68] sm:$0xff]  ;;  %v2737_v37 = vld [vmem:[%s3786_s9 + $0xb0] sm:$0xff] }
 0x5e7   : > { %v2745_v38 = vld [vmem:[%s3786_s9 + $0xf0] sm:$0xff] }
 0x5e9   : > { %1522 = vmatpush.bf16.msrb.mxu1 %v2461_v47  ;;  %1513 = vmatpush.bf16.msrb.mxu0 %v2329_v32  ;;  %v2304_v47 = vld [vmem:[%s3785_s8 + $0x98] sm:$0xf]  ;;  %v2721_v32 = vld [vmem:[%s3786_s9 + $0x30] sm:$0xff] }
 0x5ea   : > { %1551 = vmatpush.bf16.msrb.mxu3 %v2373_v28  ;;  %v2305_v52 = vor.u32 %v2674_v48, %v2304_v47  ;;  %v2717_v47 = vld [vmem:[%s3786_s9 + $0x10] sm:$0xff] }
 0x5eb   : > { %v2725_v48 = vld [vmem:[%s3786_s9 + $0x50] sm:$0xff] }
 0x5ec   : > { %1540 = vmatpush.bf16.msrb.mxu2 %v2305_v52  ;;  %v2716_v52 = vld [vmem:[%s3786_s9 + $0x8] sm:$0xff] }
 0x5ed   : > { %1523 = vmatpush.bf16.msrb.mxu1 %v2429_v49  ;;  %v2662_v49 = vld [vmem:[%s3785_s8 + $0x5c] sm:$0xf]  ;;  %1514 = vmatpush.bf16.msrb.mxu0 %v2297_v45  ;;  %v2735_v45 = vld [vmem:[%s3786_s9 + $0xa0] sm:$0xff] }
 0x5ee   : > { %1552 = vmatpush.bf16.msrb.mxu3 %v2341_v40  ;;  %v2277_v8 = vor.u32 %v2662_v49, %v2274_v0  ;;  %v2727_v40 = vld [vmem:[%s3786_s9 + $0x60] sm:$0xff] }
 0x5f0   : > { %1541 = vmatpush.bf16.msrb.mxu2 %v2273_v3 }
 0x5f1   : > { %1524 = vmatpush.bf16.msrb.mxu1 %v2397_v12  ;;  %v2242_v12 = vld [vmem:[%s3785_s8 + $0x38] sm:$0xf0]  ;;  %1515 = vmatpush.bf16.msrb.mxu0 %v2265_v62 }
 0x5f2   : > { %1553 = vmatpush.bf16.msrb.mxu3 %v2309_v57  ;;  %v2245_v16 = vor.u32 %v2654_v11, %v2242_v12  ;;  %v2715_v57 = vld [vmem:[%s3786_s9] sm:$0xff] }
 0x5f4   : > { %1542 = vmatpush.bf16.msrb.mxu2 %v2241_v15 }
 0x5f5   : > { %1525 = vmatpush.bf16.msrb.mxu1 %v2365_v24  ;;  %1516 = vmatpush.bf16.msrb.mxu0 %v2233_v13 }
 0x5f6   : > { %1554 = vmatpush.bf16.msrb.mxu3 %v2277_v8 }
 0x5f9   : > { %1526 = vmatpush.bf16.msrb.mxu1 %v2333_v34  ;;  %v2720_v34 = vld [vmem:[%s3786_s9 + $0x28] sm:$0xff] }
 0x5fa   : > { %1555 = vmatpush.bf16.msrb.mxu3 %v2245_v16 }
 0x5fd   : > { %1527 = vmatpush.bf16.msrb.mxu1 %v2301_v46  ;;  %v2743_v46 = vld [vmem:[%s3786_s9 + $0xe0] sm:$0xff] }
 0x64d   : > { %v1052_v44 = vpop.xlane.xlu2 %1051 }
 0x64e   : > { %v1053_v51 = vmul.f32 %v1052_v44, %v3200_v36  ;;  %v2661_v36 = vld [vmem:[%s3785_s8 + $0x54] sm:$0xf]  ;;  %v2726_v44 = vld [vmem:[%s3786_s9 + $0x58] sm:$0xff] }
 0x64f   : > { %v2269_v63 = vor.u32 %v2661_v36, %v2266_v58  ;;  %v2723_v36 = vld [vmem:[%s3786_s9 + $0x40] sm:$0xff]  ;;  %v2732_v58 = vld [vmem:[%s3786_s9 + $0x88] sm:$0xff] }
 0x650   : > { %v1054_v60 = vadd.f32 1e-06, %v1053_v51  ;;  %v2742_v51 = vld [vmem:[%s3786_s9 + $0xd8] sm:$0xff] }
 0x651   : > { %1528 = vmatpush.bf16.msrb.mxu1 %v2269_v63 }
 0x652   : > { %2819 = vrsqrt.f32 %v1054_v60  ;;  %vm1061_vm14 = vweird.f32 %v1054_v60 }
 0x655   : > { %1529 = vmatpush.bf16.msrb.mxu1 %v2237_v14 }
 0x658   : > { %v2820_v17 = vpop.eup %2819 }
 0x659   : > { %v1056_v18 = vmul.f32 %v2820_v17, %v1054_v60  ;;  %vm1062_vm13 = vweird.f32 %v2820_v17  ;;  %v2731_v60 = vld [vmem:[%s3786_s9 + $0x80] sm:$0xff] }
 0x65a   : > { %vm1063_vm15 = vmor %vm1061_vm14, %vm1062_vm13 }
 0x65b   : > { %v1057_v20 = vmul.f32 %v2820_v17, %v1056_v18 }
 0x65d   : > { %v1058_v21 = vmul.f32 0.5, %v1057_v20 }
 0x65f   : > { %v1059_v23 = vsub.f32 1.5, %v1058_v21 }
 0x661   : > { %v1060_v24 = vmul.f32 %v2820_v17, %v1059_v23 }
 0x663   : > { %v1064_v26 = vsel %vm1063_vm15, %v2820_v17, %v1060_v24 }
 0x664   : > { %v1065_v27 = vmul.f32 %v1064_v26, %v3367_v55 }
 0x666   : > { %v1071_v28 = vmul.f32 %v1069_v25, %v1065_v27 }
 0x668   : > { %v1072_v29 = vpack.c.bf16 %v1071_v28, %v1071_v28 }
 0x66a   : > { %1465 = vmatmul.bf16.vlgmr.msra.gmra.mxu0 %v1072_v29  ;;  %1478 = vmatmul.bf16.vlgmr.msra.gmra.mxu1 %v1072_v29 }
 0x66b   : > { %1491 = vmatmul.bf16.vlgmr.msra.gmra.mxu2 %v1072_v29  ;;  %1504 = vmatmul.bf16.vlgmr.msra.gmra.mxu3 %v1072_v29 }
 0x66c   : > { %1861 = vmatpush.bf16.msra.mxu0 %v2722_v30  ;;  %1874 = vmatpush.bf16.msra.mxu1 %v2730_v31 }
 0x66d   : > { %1887 = vmatpush.bf16.msra.mxu2 %v2738_v4  ;;  %1900 = vmatpush.bf16.msra.mxu3 %v2746_v33 }
 0x670   : > { %1862 = vmatpush.bf16.msra.mxu0 %v2721_v32  ;;  %1875 = vmatpush.bf16.msra.mxu1 %v2729_v1 }
 0x671   : > { %1888 = vmatpush.bf16.msra.mxu2 %v2737_v37  ;;  %1901 = vmatpush.bf16.msra.mxu3 %v2745_v38 }
 0x674   : > { %1863 = vmatpush.bf16.msra.mxu0 %v2720_v34  ;;  %1876 = vmatpush.bf16.msra.mxu1 %v2728_v35 }
 0x675   : > { %1889 = vmatpush.bf16.msra.mxu2 %v2736_v41  ;;  %1902 = vmatpush.bf16.msra.mxu3 %v2744_v42 }
 0x678   : > { %1864 = vmatpush.bf16.msra.mxu0 %v2719_v39  ;;  %1877 = vmatpush.bf16.msra.mxu1 %v2727_v40 }
 0x679   : > { %1890 = vmatpush.bf16.msra.mxu2 %v2735_v45  ;;  %1903 = vmatpush.bf16.msra.mxu3 %v2743_v46 }
 0x67a   : > { %1517 = vmatmul.bf16.vlgmr.msrb.gmra.mxu0 %v1072_v29  ;;  %1530 = vmatmul.bf16.vlgmr.msrb.gmra.mxu1 %v1072_v29 }
 0x67b   : > { %1543 = vmatmul.bf16.vlgmr.msrb.gmra.mxu2 %v1072_v29  ;;  %1556 = vmatmul.bf16.vlgmr.msrb.gmra.mxu3 %v1072_v29 }
 0x67c   : > { %1865 = vmatpush.bf16.msra.mxu0 %v2718_v43  ;;  %1878 = vmatpush.bf16.msra.mxu1 %v2726_v44 }
 0x67d   : > { %1891 = vmatpush.bf16.msra.mxu2 %v2734_v50  ;;  %1904 = vmatpush.bf16.msra.mxu3 %v2742_v51 }
 0x680   : > { %1866 = vmatpush.bf16.msra.mxu0 %v2717_v47  ;;  %1879 = vmatpush.bf16.msra.mxu1 %v2725_v48 }
 0x681   : > { %1892 = vmatpush.bf16.msra.mxu2 %v2733_v54  ;;  %1905 = vmatpush.bf16.msra.mxu3 %v2741_v56 }
 0x684   : > { %1867 = vmatpush.bf16.msra.mxu0 %v2716_v52  ;;  %1880 = vmatpush.bf16.msra.mxu1 %v2724_v53 }
 0x685   : > { %1893 = vmatpush.bf16.msra.mxu2 %v2732_v58  ;;  %1906 = vmatpush.bf16.msra.mxu3 %v2740_v59 }
 0x688   : > { %1868 = vmatpush.bf16.msra.mxu0 %v2715_v57  ;;  %1881 = vmatpush.bf16.msra.mxu1 %v2723_v36 }
 0x689   : > { %1894 = vmatpush.bf16.msra.mxu2 %v2731_v60  ;;  %1907 = vmatpush.bf16.msra.mxu3 %v2739_v61 }
 0x6e7   : > { %v1466_v49 = vpop.f32.mrf.mxu0  ;;  %v1479_v62 = vpop.f32.mrf.mxu1 }
 0x6e8   : > { %v1561_v63 = vmul.f32 %v1466_v49, %v1466_v49  ;;  %v1562_v0 = vmul.f32 %v1479_v62, %v1479_v62 }
 0x6ea   : > { %v1565_v2 = vmul.f32 %v1561_v63, %v1466_v49  ;;  %v1566_v3 = vmul.f32 %v1562_v0, %v1479_v62 }
 0x6ec   : > { %v1569_v5 = vmul.f32 0.044715, %v1565_v2  ;;  %v1570_v6 = vmul.f32 0.044715, %v1566_v3 }
 0x6ee   : > { %v1573_v7 = vadd.f32 %v1569_v5, %v1466_v49  ;;  %v1574_v8 = vadd.f32 %v1570_v6, %v1479_v62  ;;  %v1492_v9 = vpop.f32.mrf.mxu2  ;;  %v1505_v10 = vpop.f32.mrf.mxu3 }
 0x6ef   : > { %v1563_v11 = vmul.f32 %v1492_v9, %v1492_v9  ;;  %v1564_v12 = vmul.f32 %v1505_v10, %v1505_v10  ;;  %v1468_v13 = vpop.f32.mrf.mxu0  ;;  %v1481_v14 = vpop.f32.mrf.mxu1 }
 0x6f0   : > { %v1577_v15 = vmul.f32 0.7978846, %v1573_v7  ;;  %v1578_v16 = vmul.f32 0.7978846, %v1574_v8 }
 0x6f1   : > { %v1567_v17 = vmul.f32 %v1563_v11, %v1492_v9  ;;  %v1568_v18 = vmul.f32 %v1564_v12, %v1505_v10 }
 0x6f2   : > { %2821 = vtanh.f32 %v1577_v15 }
 0x6f3   : > { %v1571_v19 = vmul.f32 0.044715, %v1567_v17  ;;  %v1572_v20 = vmul.f32 0.044715, %v1568_v18  ;;  %2823 = vtanh.f32 %v1578_v16 }
 0x6f5   : > { %v1575_v21 = vadd.f32 %v1571_v19, %v1492_v9  ;;  %v1576_v22 = vadd.f32 %v1572_v20, %v1505_v10 }
 0x6f6   : > { %v1494_v23 = vpop.f32.mrf.mxu2  ;;  %v1507_v24 = vpop.f32.mrf.mxu3 }
 0x6f7   : > { %v1579_v25 = vmul.f32 0.7978846, %v1575_v21  ;;  %v1580_v26 = vmul.f32 0.7978846, %v1576_v22  ;;  %v1518_v27 = vpop.f32.mrf.mxu0  ;;  %v1531_v28 = vpop.f32.mrf.mxu1 }
 0x6f8   : > { %v2822_v29 = vpop.eup %2821 }
 0x6f9   : > { %v2824_v30 = vpop.eup %2823  ;;  %v1585_v31 = vadd.f32 1.0, %v2822_v29  ;;  %2825 = vtanh.f32 %v1579_v25 }
 0x6fa   : > { %v1586_v32 = vadd.f32 1.0, %v2824_v30  ;;  %2827 = vtanh.f32 %v1580_v26 }
 0x6fb   : > { %v1589_v1 = vmul.f32 0.5, %v1585_v31 }
 0x6fc   : > { %v1590_v4 = vmul.f32 0.5, %v1586_v32 }
 0x6fd   : > { %v1593_v33 = vmul.f32 %v1589_v1, %v1466_v49 }
 0x6fe   : > { %v1594_v34 = vmul.f32 %v1590_v4, %v1479_v62  ;;  %v1544_v35 = vpop.f32.mrf.mxu2  ;;  %v1557_v37 = vpop.f32.mrf.mxu3 }
 0x6ff   : > { %v2826_v38 = vpop.eup %2825  ;;  %v1597_v39 = vmul.f32 %v1593_v33, %v1518_v27  ;;  %v1520_v40 = vpop.f32.mrf.mxu0 }
 0x700   : > { %v1533_v41 = vpop.f32.mrf.mxu1  ;;  %v2828_v42 = vpop.eup %2827  ;;  %v1598_v43 = vmul.f32 %v1594_v34, %v1531_v28  ;;  %v1587_v44 = vadd.f32 1.0, %v2826_v38 }
 0x701   : > { %v1601_v45 = vpack.c.bf16 %v1597_v39, %v1597_v39  ;;  %v1588_v46 = vadd.f32 1.0, %v2828_v42 }
 0x702   : > { %v1602_v47 = vpack.c.bf16 %v1598_v43, %v1598_v43  ;;  %v1591_v48 = vmul.f32 0.5, %v1587_v44 }
 0x703   : > { %v1592_v50 = vmul.f32 0.5, %v1588_v46  ;;  %1869 = vmatmul.bf16.vlgmr.msra.gmra.mxu0 %v1601_v45 }
 0x704   : > { %v1595_v51 = vmul.f32 %v1591_v48, %v1492_v9  ;;  %1882 = vmatmul.bf16.vlgmr.msra.gmra.mxu1 %v1602_v47 }
 0x705   : > { %v1596_v52 = vmul.f32 %v1592_v50, %v1505_v10 }
 0x706   : > { %v1599_v53 = vmul.f32 %v1595_v51, %v1544_v35  ;;  %v1546_v54 = vpop.f32.mrf.mxu2  ;;  %v1559_v56 = vpop.f32.mrf.mxu3 }
 0x707   : > { %v1600_v57 = vmul.f32 %v1596_v52, %v1557_v37 }
 0x708   : > { %v1603_v36 = vpack.c.bf16 %v1599_v53, %v1599_v53 }
 0x709   : > { %v1604_v58 = vpack.c.bf16 %v1600_v57, %v1600_v57 }
 0x70a   : > { %1895 = vmatmul.bf16.vlgmr.msra.gmra.mxu2 %v1603_v36 }
 0x70b   : > { %1908 = vmatmul.bf16.vlgmr.msra.gmra.mxu3 %v1604_v58 }
 0x780   : > { %v1870_v59 = vpop.f32.mrf.mxu0 }
 0x781   : > { %v1883_v60 = vpop.f32.mrf.mxu1 }
 0x782   : > { %v1884_v62 = vadd.f32 %v1883_v60, %v1870_v59 }
 0x788   : > { %v1872_v61 = vpop.f32.mrf.mxu0 }
 0x789   : > { %v1885_v49 = vpop.f32.mrf.mxu1 }
 0x78d   : > { %v1896_v63 = vpop.f32.mrf.mxu2 }
 0x78e   : > { %v1897_v0 = vadd.f32 %v1896_v63, %v1884_v62  ;;  %v1909_v2 = vpop.f32.mrf.mxu3 }
 0x790   : > { %v1910_v3 = vadd.f32 %v1909_v2, %v1897_v0 }
 0x792   : > { %v1913_v5 = vadd.f32 %v1910_v3, %v3367_v55 }
 0x794   : > { %1914 = vst [vmem:[%s2973_s15] sm:$0xff] %v1913_v5 }
 0x795   : > { %v1898_v6 = vpop.f32.mrf.mxu2 }
 0x796   : > { %v1911_v7 = vpop.f32.mrf.mxu3 }
 0x797 PF: > { %s21_s21 = sadd.s32 1, %s2867_s21   ;;  %s3789_s17 = smov %s2859_s19 }
 0x798   : > { %p18_p8 = scmp.ge.s32.totalorder %s21_s21, 6   ;;  %s3790_s18 = smov %s2863_s20 }
 0x799   : > { %s3791_s19 = smov %s3794_s10  ;;  %s3792_s20 = smov %s3798_s22 }
 0x79a   :  { %20 = sbr.rel (!%p18_p8) target bundleno = 3 (0x3), region = 101 }

</bundles_post_ra>
